<compile_context>
chip_gen: v5e
topology: v5e:2x2
jax: 0.10.0
libtpu: 0.0.40
codegen_flags: <defaults>
</compile_context>

<pallas_src>
import jax
import jax.numpy as jnp
from jax import lax
from jax.experimental import pallas as pl
from jax.experimental.pallas import tpu as pltpu

FEAT = 3136        # BatchNorm1d(3136) / Linear(3136, z_dim)
Z_DIM = 256        # default z_dim of the module
W_DIM = 512        # hyper-net "w" output width  (stand-in)
B_DIM = 128        # hyper-net "b" output width  (stand-in)
OUT_DIM = W_DIM + B_DIM
BN_EPS = 1e-5


# --------------------------------------------------------------------------
# Fused kernel:
#   BatchNorm1d (batch stats, fully folded into scale+shift on z)
#   + Linear(bf16 W) + ReLU + batch-mean
#   + linear hyper-network (single concatenated bf16 matmul)
# --------------------------------------------------------------------------
def fused_embed_kernel(z_ref, gamma_ref, beta_ref, w_ref, b_ref,
                       hw_ref, hb_ref, out_ref):
    z = z_ref[...]                                            # (B, FEAT) f32
    gamma = gamma_ref[...]                                    # (1, FEAT) f32
    beta = beta_ref[...]                                      # (1, FEAT) f32

    # BatchNorm1d, training mode: biased batch statistics over dim 0 (f32),
    # one-pass variance, folded into per-feature scale `a` and shift `c`.
    mu = jnp.mean(z, axis=0, keepdims=True)                   # (1, FEAT)
    var = jnp.mean(z * z, axis=0, keepdims=True) - mu * mu    # (1, FEAT)
    a = gamma * lax.rsqrt(var + BN_EPS)                       # (1, FEAT)
    c = beta - mu * a                                         # (1, FEAT)

    # bn(z) = z*a + c  (computed in f32, cast to bf16 once -> single matmul)
    zs = (z * a + c).astype(jnp.bfloat16)                     # (B, FEAT) bf16
    h = jnp.dot(zs, w_ref[...],
                preferred_element_type=jnp.float32)           # (B, Z_DIM) f32
    h = jnp.maximum(h + b_ref[...], 0.0)                      # Linear bias + ReLU

    # mean over the batch dimension (f32)
    z_mean = jnp.mean(h, axis=0, keepdims=True)               # (1, Z_DIM)

    # Fused linear hyper-network: single (Z_DIM, W_DIM+B_DIM) matmul.
    out_ref[...] = (jnp.dot(z_mean.astype(jnp.bfloat16), hw_ref[...],
                            preferred_element_type=jnp.float32)
                    + hb_ref[...])                            # (1, OUT_DIM)


def embedding_forward(params, z):
    """z: (B, FEAT) -> [w (1, W_DIM), b (1, B_DIM)]"""
    B = z.shape[0]
    cost = pl.CostEstimate(
        flops=2 * B * FEAT * Z_DIM + 2 * Z_DIM * OUT_DIM,
        transcendentals=0,
        bytes_accessed=(4 * B * FEAT                 # z (f32)
                        + 2 * FEAT * Z_DIM           # lin_w (bf16)
                        + 2 * Z_DIM * OUT_DIM        # hyper_w (bf16)
                        + 4 * (2 * FEAT + Z_DIM + OUT_DIM)   # gamma/beta/biases
                        + 4 * OUT_DIM),              # output
    )
    out = pl.pallas_call(
        fused_embed_kernel,
        out_shape=jax.ShapeDtypeStruct((1, OUT_DIM), jnp.float32),
        in_specs=[
            pl.BlockSpec((B, FEAT), lambda: (0, 0)),
            pl.BlockSpec((1, FEAT), lambda: (0, 0)),
            pl.BlockSpec((1, FEAT), lambda: (0, 0)),
            pl.BlockSpec((FEAT, Z_DIM), lambda: (0, 0)),
            pl.BlockSpec((1, Z_DIM), lambda: (0, 0)),
            pl.BlockSpec((Z_DIM, OUT_DIM), lambda: (0, 0)),
            pl.BlockSpec((1, OUT_DIM), lambda: (0, 0)),
        ],
        out_specs=pl.BlockSpec((1, OUT_DIM), lambda: (0, 0)),
        cost_estimate=cost,
        compiler_params=pltpu.CompilerParams(vmem_limit_bytes=8 * 1024 * 1024),
    )(z, params["bn_gamma"], params["bn_beta"], params["lin_w"],
      params["lin_b"], params["hyper_w"], params["hyper_b"])
    # Slice the merged lane-dense output into the two hyper-net results.
    return out[:, :W_DIM], out[:, W_DIM:]


# --------------------------------------------------------------------------
# Parameter init
# --------------------------------------------------------------------------
def init_params(key):
    # TODO(synk): the real `hyper_net` is an external nn.Module passed into
    # forward(); its architecture is unknown, so a deterministic linear
    # hyper-network (single concatenated weight) stands in for it here.
    # TODO(synk): PyTorch BatchNorm1d in training mode also updates
    # running_mean/running_var with momentum; that stateful update is not
    # modelled here (only batch statistics are applied in the forward).
    k1, k2, k3, k4 = jax.random.split(key, 4)

    # BatchNorm1d affine params (PyTorch init: gamma=1, beta=0)
    bn_gamma = jnp.ones((1, FEAT), jnp.float32)
    bn_beta = jnp.zeros((1, FEAT), jnp.float32)

    # Linear(3136, z_dim): weight stored transposed (in, out), bf16 stream.
    bound = 1.0 / (FEAT ** 0.5)
    lin_w = jax.random.uniform(k1, (FEAT, Z_DIM), jnp.float32,
                               -bound, bound).astype(jnp.bfloat16)
    lin_b = jax.random.uniform(k2, (1, Z_DIM), jnp.float32, -bound, bound)

    # Stand-in hyper-net: concatenated (Z_DIM, W_DIM + B_DIM) weight, bf16.
    hyper_w = (jax.random.normal(k3, (Z_DIM, OUT_DIM), jnp.float32)
               * 0.02).astype(jnp.bfloat16)
    hyper_b = jax.random.normal(k4, (1, OUT_DIM), jnp.float32) * 0.02

    return dict(bn_gamma=bn_gamma, bn_beta=bn_beta,
                lin_w=lin_w, lin_b=lin_b,
                hyper_w=hyper_w, hyper_b=hyper_b)


if __name__ == "__main__":
    key = jax.random.PRNGKey(0)
    k_in, k_par = jax.random.split(key)

    B = 8
    z = jax.random.normal(k_in, (B, FEAT), jnp.float32)
    params = init_params(k_par)

    w, b = embedding_forward(params, z)
    jax.block_until_ready(w)
    jax.block_until_ready(b)

    assert w.shape == (1, W_DIM) and b.shape == (1, B_DIM)
    assert bool(jnp.all(jnp.isfinite(w))) and bool(jnp.all(jnp.isfinite(b)))
    print("KERNEL_OK")
</pallas_src>

<mosaic_0001>
module attributes {stable_mosaic.version = 11 : i64} {
  func.func @fused_embed_kernel(%arg0: memref<8x3136xf32, #tpu.memory_space<vmem>>, %arg1: memref<1x3136xf32, #tpu.memory_space<vmem>>, %arg2: memref<1x3136xf32, #tpu.memory_space<vmem>>, %arg3: memref<3136x256xbf16, #tpu.memory_space<vmem>>, %arg4: memref<1x256xf32, #tpu.memory_space<vmem>>, %arg5: memref<256x640xbf16, #tpu.memory_space<vmem>>, %arg6: memref<1x640xf32, #tpu.memory_space<vmem>>, %arg7: memref<1x640xf32, #tpu.memory_space<vmem>>) attributes {dimension_semantics = [], scalar_prefetch = 0 : i64, scratch_operands = 0 : i64, tpu.core_type = #tpu.core_type<tc>} {
    %c0 = arith.constant 0 : index
    %c0_0 = arith.constant 0 : index
    %0 = vector.load %arg0[%c0, %c0_0] : memref<8x3136xf32, #tpu.memory_space<vmem>>, vector<8x3136xf32>
    %c0_1 = arith.constant 0 : index
    %c0_2 = arith.constant 0 : index
    %1 = vector.load %arg1[%c0_1, %c0_2] : memref<1x3136xf32, #tpu.memory_space<vmem>>, vector<1x3136xf32>
    %c0_3 = arith.constant 0 : index
    %c0_4 = arith.constant 0 : index
    %2 = vector.load %arg2[%c0_3, %c0_4] : memref<1x3136xf32, #tpu.memory_space<vmem>>, vector<1x3136xf32>
    %cst = arith.constant dense<0.000000e+00> : vector<3136xf32>
    %3 = vector.multi_reduction <add>, %0, %cst [0] : vector<8x3136xf32> to vector<3136xf32>
    %4 = vector.shape_cast %3 : vector<3136xf32> to vector<1x3136xf32>
    %cst_5 = arith.constant 8.000000e+00 : f32
    %5 = vector.broadcast %cst_5 : f32 to vector<1x3136xf32>
    %6 = arith.divf %4, %5 : vector<1x3136xf32>
    %7 = arith.mulf %0, %0 : vector<8x3136xf32>
    %cst_6 = arith.constant dense<0.000000e+00> : vector<3136xf32>
    %8 = vector.multi_reduction <add>, %7, %cst_6 [0] : vector<8x3136xf32> to vector<3136xf32>
    %9 = vector.shape_cast %8 : vector<3136xf32> to vector<1x3136xf32>
    %cst_7 = arith.constant 8.000000e+00 : f32
    %10 = vector.broadcast %cst_7 : f32 to vector<1x3136xf32>
    %11 = arith.divf %9, %10 : vector<1x3136xf32>
    %12 = arith.mulf %6, %6 : vector<1x3136xf32>
    %13 = arith.subf %11, %12 : vector<1x3136xf32>
    %cst_8 = arith.constant 9.99999974E-6 : f32
    %14 = vector.broadcast %cst_8 : f32 to vector<1x3136xf32>
    %15 = arith.addf %13, %14 : vector<1x3136xf32>
    %16 = math.rsqrt %15 : vector<1x3136xf32>
    %17 = arith.mulf %1, %16 : vector<1x3136xf32>
    %18 = arith.mulf %6, %17 : vector<1x3136xf32>
    %19 = arith.subf %2, %18 : vector<1x3136xf32>
    %20 = vector.broadcast %17 : vector<1x3136xf32> to vector<8x3136xf32>
    %21 = arith.mulf %0, %20 : vector<8x3136xf32>
    %22 = vector.broadcast %19 : vector<1x3136xf32> to vector<8x3136xf32>
    %23 = arith.addf %21, %22 : vector<8x3136xf32>
    %24 = arith.truncf %23 : vector<8x3136xf32> to vector<8x3136xbf16>
    %c0_9 = arith.constant 0 : index
    %c0_10 = arith.constant 0 : index
    %25 = vector.load %arg3[%c0_9, %c0_10] : memref<3136x256xbf16, #tpu.memory_space<vmem>>, vector<3136x256xbf16>
    %cst_11 = arith.constant dense<0.000000e+00> : vector<8x256xf32>
    %26 = tpu.matmul %24, %25, %cst_11 {dimension_numbers = #tpu.dot_dimension_numbers<[1], [0], [0], [1], [0, 0, 1, 1], [], []>} : vector<8x3136xbf16>, vector<3136x256xbf16>, vector<8x256xf32> -> vector<8x256xf32>
    %c0_12 = arith.constant 0 : index
    %c0_13 = arith.constant 0 : index
    %27 = vector.load %arg4[%c0_12, %c0_13] : memref<1x256xf32, #tpu.memory_space<vmem>>, vector<1x256xf32>
    %28 = vector.broadcast %27 : vector<1x256xf32> to vector<8x256xf32>
    %29 = arith.addf %26, %28 : vector<8x256xf32>
    %cst_14 = arith.constant 0.000000e+00 : f32
    %30 = vector.broadcast %cst_14 : f32 to vector<8x256xf32>
    %31 = arith.maximumf %29, %30 : vector<8x256xf32>
    %cst_15 = arith.constant dense<0.000000e+00> : vector<256xf32>
    %32 = vector.multi_reduction <add>, %31, %cst_15 [0] : vector<8x256xf32> to vector<256xf32>
    %33 = vector.shape_cast %32 : vector<256xf32> to vector<1x256xf32>
    %cst_16 = arith.constant 8.000000e+00 : f32
    %34 = vector.broadcast %cst_16 : f32 to vector<1x256xf32>
    %35 = arith.divf %33, %34 : vector<1x256xf32>
    %36 = arith.truncf %35 : vector<1x256xf32> to vector<1x256xbf16>
    %c0_17 = arith.constant 0 : index
    %c0_18 = arith.constant 0 : index
    %37 = vector.load %arg5[%c0_17, %c0_18] : memref<256x640xbf16, #tpu.memory_space<vmem>>, vector<256x640xbf16>
    %cst_19 = arith.constant dense<0.000000e+00> : vector<1x640xf32>
    %38 = tpu.matmul %36, %37, %cst_19 {dimension_numbers = #tpu.dot_dimension_numbers<[1], [0], [0], [1], [0, 0, 1, 1], [], []>} : vector<1x256xbf16>, vector<256x640xbf16>, vector<1x640xf32> -> vector<1x640xf32>
    %c0_20 = arith.constant 0 : index
    %c0_21 = arith.constant 0 : index
    %39 = vector.load %arg6[%c0_20, %c0_21] : memref<1x640xf32, #tpu.memory_space<vmem>>, vector<1x640xf32>
    %40 = arith.addf %38, %39 : vector<1x640xf32>
    %c0_22 = arith.constant 0 : index
    %c0_23 = arith.constant 0 : index
    %41 = vector.load %arg7[%c0_22, %c0_23] : memref<1x640xf32, #tpu.memory_space<vmem>>, vector<1x640xf32>
    tpu.vector_store %arg7[%c0_22, %c0_23], %40 {strides = array<i32>} : memref<1x640xf32, #tpu.memory_space<vmem>>, vector<1x640xf32>,
    return
  }
}

</mosaic_0001>

<bundles_post_ra>
// kernel: tpu_custom_call.1
= control target key start
LH: loop header
LB: loop body
LE: loop exit
PB: predicated region body
PF: predicated region fallthrough
CT: control target
= control target key end

     0   :  { %12 = vsyncpa [#allocation3], 0  ;;  %s9793_s0 = inlined_call_operand.hbm [shape: f32[8,3136], index: 0, kind: input, shape index: {}]   ;;  %s9794_s1 = inlined_call_operand.hbm [shape: f32[1,3136], index: 1, kind: input, shape index: {}]   ;;  %s9795_s2 = inlined_call_operand.hbm [shape: f32[1,3136], index: 2, kind: input, shape index: {}]   ;;  %s9796_s3 = inlined_call_operand.hbm [shape: bf16[3136,256], index: 3, kind: input, shape index: {}]   ;;  %s9797_s4 = inlined_call_operand.hbm [shape: f32[1,256], index: 4, kind: input, shape index: {}]   ;;  %s9798_s5 = inlined_call_operand.hbm [shape: bf16[256,640], index: 5, kind: input, shape index: {}]   ;;  %s9799_s6 = inlined_call_operand.hbm [shape: f32[1,640], index: 6, kind: input, shape index: {}]   ;;  %s9800_s7 = inlined_call_operand.hbm [shape: f32[1,640], index: 7, kind: output, shape index: {}]  }
   0x1   :  { %13 = vsyncpa [#allocation6], 0 }
   0x2   :  { %14 = vsyncpa [#allocation9], 0 }
   0x3   :  { %15 = vsyncpa [#allocation12], 0  ;;  %s33_s26 = sshll.u32 %s9794_s1, 4  ;;  %s34_s26 = int_to_ptr.hbm [resolvable:$true] %s33_s26 }
   0x4   :  { %16 = vsyncpa [#allocation4], 0  ;;  %s7598_s27 = smov [#allocation5]   ;;  %s54_s8 = sshll.u32 %s9796_s3, 4  ;;  %s55_s8 = int_to_ptr.hbm [resolvable:$true] %s54_s8 }
   0x5   :  { %s35_s28 = sshll.u32 %s7598_s27, 4  ;;  %s7599_s9 = smov [#allocation8]   ;;  %s36_s28 = int_to_ptr.vmem [resolvable:$true] %s35_s28 }
   0x6   :  { %38 = dma.hbm_to_vmem [thread:$0]  %s34_s26, 400, %s36_s28, [#allocation6]  }
   0x7   :  { %s56_s10 = sshll.u32 %s7599_s9, 4  ;;  %s7600_s11 = smov 128   ;;  %s57_s10 = int_to_ptr.vmem [resolvable:$true] %s56_s10 }
   0x8   :  { %s7601_s12 = smov 8   ;;  %s78_s1 = sshll.u32 %s9798_s5, 4  ;;  %s79_s1 = int_to_ptr.hbm [resolvable:$true] %s78_s1 }
   0x9   :  { %62 = dma.hbm_to_vmem [thread:$0]  %s55_s8, 50176, %s57_s10, [#allocation9], %s7600_s11, %s7600_s11, %s7601_s12  }
   0xa   :  { %s7602_s15 = smov [#allocation11]   ;;  %s22_s3 = sshll.u32 %s9793_s0, 4  ;;  %s23_s3 = int_to_ptr.hbm [resolvable:$true] %s22_s3 }
   0xb   :  { %s80_s16 = sshll.u32 %s7602_s15, 4  ;;  %s7603_s19 = smov 320   ;;  %s81_s16 = int_to_ptr.vmem [resolvable:$true] %s80_s16 }
   0xc   :  { %s7604_s20 = smov 20   ;;  %s7605_s21 = smov [#allocation2]  }
   0xd   :  { %86 = dma.hbm_to_vmem [thread:$0]  %s79_s1, 10240, %s81_s16, [#allocation12], %s7603_s19, %s7603_s19, %s7604_s20  }
   0xe   :  { %s24_s22 = sshll.u32 %s7605_s21, 4  ;;  %s44_s25 = sshll.u32 %s9795_s2, 4  ;;  %s25_s22 = int_to_ptr.vmem [resolvable:$true] %s24_s22  ;;  %s45_s25 = int_to_ptr.hbm [resolvable:$true] %s44_s25 }
   0xf   :  { %27 = dma.hbm_to_vmem [thread:$0]  %s23_s3, 3200, %s25_s22, [#allocation3]  }
  0x10   :  { %s68_s27 = sshll.u32 %s9797_s4, 4  ;;  %s7606_s28 = smov [#allocation7]   ;;  %s69_s27 = int_to_ptr.hbm [resolvable:$true] %s68_s27 }
  0x11   :  { %s46_s29 = sshll.u32 %s7606_s28, 4  ;;  %s7607_s0 = smov [#allocation10]   ;;  %s47_s29 = int_to_ptr.vmem [resolvable:$true] %s46_s29 }
  0x12   :  { %49 = dma.hbm_to_vmem [thread:$0]  %s45_s25, 400, %s47_s29, [#allocation6]  }
  0x13   :  { %s70_s30 = sshll.u32 %s7607_s0, 4  ;;  %s92_s10 = sshll.u32 %s9799_s6, 4  ;;  %s71_s30 = int_to_ptr.vmem [resolvable:$true] %s70_s30  ;;  %s93_s10 = int_to_ptr.hbm [resolvable:$true] %s92_s10 }
  0x14   :  { %73 = dma.hbm_to_vmem [thread:$0]  %s69_s27, 32, %s71_s30, [#allocation9]  }
  0x15   :  { %s7608_s2 = smov [#allocation13]  }
  0x16   :  { %s94_s11 = sshll.u32 %s7608_s2, 4  ;;  %s95_s11 = int_to_ptr.vmem [resolvable:$true] %s94_s11 }
  0x17   :  { %97 = dma.hbm_to_vmem [thread:$0]  %s93_s10, 80, %s95_s11, [#allocation12]  }
  0x18   :  { %7588 = dma.done.wait [#allocation3], 3200  }
  0x19   :  { %7589 = vsyncadd [#allocation3], 4294964096 }
  0x1a   :  { %7590 = dma.done.wait [#allocation6], 800  }
  0x1b   :  { %7591 = vsyncadd [#allocation6], 4294966496 }
  0x1c   :  { %7592 = dma.done.wait [#allocation9], 50208  }
  0x1d   :  { %7593 = vsyncadd [#allocation9], 4294917088 }
  0x1e   :  { %7594 = dma.done.wait [#allocation12], 10320  }
  0x1f   :  { %7595 = vsyncadd [#allocation12], 4294956976  ;;  %v5013_v0 = vld [vmem:[#allocation8 + $0x70] sm:$0xf]  ;;  %v6860_v1 = vld [vmem:[#allocation8 + $0x74] sm:$0xf0] }
  0x20   :  { %v5077_v2 = vld [vmem:[#allocation8 + $0xf0] sm:$0xf]  ;;  %v5014_v3 = vor.u32 %v6860_v1, %v5013_v0  ;;  %v6876_v4 = vld [vmem:[#allocation8 + $0xf4] sm:$0xf0]  ;;  %v5005_v11 = vld [vmem:[#allocation8 + $0x60] sm:$0xf] }
  0x21   :  { %v5141_v5 = vld [vmem:[#allocation8 + $0x170] sm:$0xf]  ;;  %v6892_v6 = vld [vmem:[#allocation8 + $0x174] sm:$0xf0]  ;;  %v5078_v7 = vor.u32 %v6876_v4, %v5077_v2  ;;  %v6858_v13 = vld [vmem:[#allocation8 + $0x64] sm:$0xf0] }
  0x22   :  { %v5142_v8 = vor.u32 %v6892_v6, %v5141_v5  ;;  %v5205_v9 = vld [vmem:[#allocation8 + $0x1f0] sm:$0xf]  ;;  %v6908_v10 = vld [vmem:[#allocation8 + $0x1f4] sm:$0xf0]  ;;  %3592 = vmatpush.bf16.msra.mxu0 %v5014_v3  ;;  %v5069_v14 = vld [vmem:[#allocation8 + $0xe0] sm:$0xf]  ;;  %v5006_v16 = vor.u32 %v6858_v13, %v5005_v11 }
  0x23   :  { %v5206_v12 = vor.u32 %v6908_v10, %v5205_v9  ;;  %v6874_v15 = vld [vmem:[#allocation8 + $0xe4] sm:$0xf0]  ;;  %3605 = vmatpush.bf16.msra.mxu1 %v5078_v7  ;;  %v5133_v18 = vld [vmem:[#allocation8 + $0x160] sm:$0xf]  ;;  %v4997_v23 = vld [vmem:[#allocation8 + $0x50] sm:$0xf] }
  0x24   :  { %3618 = vmatpush.bf16.msra.mxu2 %v5142_v8  ;;  %v5070_v17 = vor.u32 %v6874_v15, %v5069_v14  ;;  %v6890_v19 = vld [vmem:[#allocation8 + $0x164] sm:$0xf0]  ;;  %v5197_v20 = vld [vmem:[#allocation8 + $0x1e0] sm:$0xf]  ;;  %v6856_v24 = vld [vmem:[#allocation8 + $0x54] sm:$0xf0] }
  0x25   :  { %3631 = vmatpush.bf16.msra.mxu3 %v5206_v12  ;;  %v5134_v21 = vor.u32 %v6890_v19, %v5133_v18  ;;  %v6906_v22 = vld [vmem:[#allocation8 + $0x1e4] sm:$0xf0]  ;;  %v5061_v26 = vld [vmem:[#allocation8 + $0xd0] sm:$0xf]  ;;  %v6872_v27 = vld [vmem:[#allocation8 + $0xd4] sm:$0xf0]  ;;  %v4998_v29 = vor.u32 %v6856_v24, %v4997_v23 }
  0x26   :  { %v5198_v25 = vor.u32 %v6906_v22, %v5197_v20  ;;  %v5125_v28 = vld [vmem:[#allocation8 + $0x150] sm:$0xf]  ;;  %3593 = vmatpush.bf16.msra.mxu0 %v5006_v16  ;;  %v6888_v30 = vld [vmem:[#allocation8 + $0x154] sm:$0xf0]  ;;  %v5062_v33 = vor.u32 %v6872_v27, %v5061_v26  ;;  %v4989_v35 = vld [vmem:[#allocation8 + $0x40] sm:$0xf] }
  0x27   :  { %v5189_v31 = vld [vmem:[#allocation8 + $0x1d0] sm:$0xf]  ;;  %v6904_v32 = vld [vmem:[#allocation8 + $0x1d4] sm:$0xf0]  ;;  %3606 = vmatpush.bf16.msra.mxu1 %v5070_v17  ;;  %v5126_v34 = vor.u32 %v6888_v30, %v5125_v28  ;;  %v6854_v36 = vld [vmem:[#allocation8 + $0x44] sm:$0xf0] }
  0x28   :  { %3619 = vmatpush.bf16.msra.mxu2 %v5134_v21  ;;  %v5053_v37 = vld [vmem:[#allocation8 + $0xc0] sm:$0xf]  ;;  %v5190_v38 = vor.u32 %v6904_v32, %v5189_v31  ;;  %v6870_v39 = vld [vmem:[#allocation8 + $0xc4] sm:$0xf0]  ;;  %v4990_v44 = vor.u32 %v6854_v36, %v4989_v35  ;;  %v4981_v47 = vld [vmem:[#allocation8 + $0x30] sm:$0xf] }
  0x29   :  { %3632 = vmatpush.bf16.msra.mxu3 %v5198_v25  ;;  %v5117_v40 = vld [vmem:[#allocation8 + $0x140] sm:$0xf]  ;;  %v6886_v41 = vld [vmem:[#allocation8 + $0x144] sm:$0xf0]  ;;  %v5054_v45 = vor.u32 %v6870_v39, %v5053_v37  ;;  %v6852_v48 = vld [vmem:[#allocation8 + $0x34] sm:$0xf0] }
  0x2a   :  { %v5181_v42 = vld [vmem:[#allocation8 + $0x1c0] sm:$0xf]  ;;  %v6902_v43 = vld [vmem:[#allocation8 + $0x1c4] sm:$0xf0]  ;;  %3594 = vmatpush.bf16.msra.mxu0 %v4998_v29  ;;  %v5118_v46 = vor.u32 %v6886_v41, %v5117_v40  ;;  %v5045_v49 = vld [vmem:[#allocation8 + $0xb0] sm:$0xf]  ;;  %v4982_v56 = vor.u32 %v6852_v48, %v4981_v47 }
  0x2b   :  { %3607 = vmatpush.bf16.msra.mxu1 %v5062_v33  ;;  %v5182_v50 = vor.u32 %v6902_v43, %v5181_v42  ;;  %v6868_v51 = vld [vmem:[#allocation8 + $0xb4] sm:$0xf0]  ;;  %v5109_v52 = vld [vmem:[#allocation8 + $0x130] sm:$0xf]  ;;  %v4973_v59 = vld [vmem:[#allocation8 + $0x20] sm:$0xf] }
  0x2c   :  { %3620 = vmatpush.bf16.msra.mxu2 %v5126_v34  ;;  %v6884_v53 = vld [vmem:[#allocation8 + $0x134] sm:$0xf0]  ;;  %v5173_v54 = vld [vmem:[#allocation8 + $0x1b0] sm:$0xf]  ;;  %v5046_v57 = vor.u32 %v6868_v51, %v5045_v49  ;;  %v6850_v60 = vld [vmem:[#allocation8 + $0x24] sm:$0xf0] }
  0x2d   :  { %3633 = vmatpush.bf16.msra.mxu3 %v5190_v38  ;;  %v6900_v55 = vld [vmem:[#allocation8 + $0x1b4] sm:$0xf0]  ;;  %v5110_v58 = vor.u32 %v6884_v53, %v5109_v52  ;;  %v5037_v61 = vld [vmem:[#allocation8 + $0xa0] sm:$0xf]  ;;  %v6866_v63 = vld [vmem:[#allocation8 + $0xa4] sm:$0xf0]  ;;  %v4974_v4 = vor.u32 %v6850_v60, %v4973_v59 }
  0x2e   :  { %3595 = vmatpush.bf16.msra.mxu0 %v4990_v44  ;;  %v5174_v62 = vor.u32 %v6900_v55, %v5173_v54  ;;  %v5101_v0 = vld [vmem:[#allocation8 + $0x120] sm:$0xf]  ;;  %v6882_v1 = vld [vmem:[#allocation8 + $0x124] sm:$0xf0]  ;;  %v5038_v5 = vor.u32 %v6866_v63, %v5037_v61  ;;  %v4965_v7 = vld [vmem:[#allocation8 + $0x10] sm:$0xf] }
  0x2f   :  { %3608 = vmatpush.bf16.msra.mxu1 %v5054_v45  ;;  %v5165_v2 = vld [vmem:[#allocation8 + $0x1a0] sm:$0xf]  ;;  %v6898_v3 = vld [vmem:[#allocation8 + $0x1a4] sm:$0xf0]  ;;  %v5102_v6 = vor.u32 %v6882_v1, %v5101_v0  ;;  %v6848_v8 = vld [vmem:[#allocation8 + $0x14] sm:$0xf0] }
  0x30   :  { %3621 = vmatpush.bf16.msra.mxu2 %v5118_v46  ;;  %v5029_v9 = vld [vmem:[#allocation8 + $0x90] sm:$0xf]  ;;  %v5166_v10 = vor.u32 %v6898_v3, %v5165_v2  ;;  %v6864_v11 = vld [vmem:[#allocation8 + $0x94] sm:$0xf0]  ;;  %v4966_v16 = vor.u32 %v6848_v8, %v4965_v7  ;;  %v4957_v17 = vld [vmem:[#allocation8] sm:$0xf] }
  0x31   :  { %3634 = vmatpush.bf16.msra.mxu3 %v5182_v50  ;;  %v5093_v12 = vld [vmem:[#allocation8 + $0x110] sm:$0xf]  ;;  %v6880_v13 = vld [vmem:[#allocation8 + $0x114] sm:$0xf0]  ;;  %v6846_v18 = vld [vmem:[#allocation8 + $0x4] sm:$0xf0]  ;;  %v5030_v19 = vor.u32 %v6864_v11, %v5029_v9 }
  0x32   :  { %3596 = vmatpush.bf16.msra.mxu0 %v4982_v56  ;;  %v5157_v14 = vld [vmem:[#allocation8 + $0x190] sm:$0xf]  ;;  %v6896_v15 = vld [vmem:[#allocation8 + $0x194] sm:$0xf0]  ;;  %v5094_v20 = vor.u32 %v6880_v13, %v5093_v12  ;;  %v5021_v21 = vld [vmem:[#allocation8 + $0x80] sm:$0xf]  ;;  %v4958_v31 = vor.u32 %v6846_v18, %v4957_v17 }
  0x33   :  { %3609 = vmatpush.bf16.msra.mxu1 %v5046_v57  ;;  %v6862_v22 = vld [vmem:[#allocation8 + $0x84] sm:$0xf0]  ;;  %v5085_v23 = vld [vmem:[#allocation8 + $0x100] sm:$0xf]  ;;  %v5158_v24 = vor.u32 %v6896_v15, %v5157_v14  ;;  %v5269_v28 = vld [vmem:[#allocation8 + $0x270] sm:$0xf] }
  0x34   :  { %3622 = vmatpush.bf16.msra.mxu2 %v5110_v58  ;;  %v6878_v25 = vld [vmem:[#allocation8 + $0x104] sm:$0xf0]  ;;  %v5149_v26 = vld [vmem:[#allocation8 + $0x180] sm:$0xf]  ;;  %v6924_v29 = vld [vmem:[#allocation8 + $0x274] sm:$0xf0]  ;;  %v5022_v35 = vor.u32 %v6862_v22, %v5021_v21 }
  0x35   :  { %3635 = vmatpush.bf16.msra.mxu3 %v5174_v62  ;;  %v6894_v27 = vld [vmem:[#allocation8 + $0x184] sm:$0xf0]  ;;  %v5333_v30 = vld [vmem:[#allocation8 + $0x2f0] sm:$0xf]  ;;  %v6940_v32 = vld [vmem:[#allocation8 + $0x2f4] sm:$0xf0]  ;;  %v5086_v36 = vor.u32 %v6878_v25, %v5085_v23  ;;  %v5270_v41 = vor.u32 %v6924_v29, %v5269_v28 }
  0x36   :  { %3597 = vmatpush.bf16.msra.mxu0 %v4974_v4  ;;  %v5397_v33 = vld [vmem:[#allocation8 + $0x370] sm:$0xf]  ;;  %v6956_v34 = vld [vmem:[#allocation8 + $0x374] sm:$0xf0]  ;;  %v5261_v39 = vld [vmem:[#allocation8 + $0x260] sm:$0xf]  ;;  %v5150_v40 = vor.u32 %v6894_v27, %v5149_v26  ;;  %v5334_v45 = vor.u32 %v6940_v32, %v5333_v30 }
  0x37   :  { %3610 = vmatpush.bf16.msra.mxu1 %v5038_v5  ;;  %v5461_v37 = vld [vmem:[#allocation8 + $0x3f0] sm:$0xf]  ;;  %v6972_v38 = vld [vmem:[#allocation8 + $0x3f4] sm:$0xf0]  ;;  %v6922_v42 = vld [vmem:[#allocation8 + $0x264] sm:$0xf0]  ;;  %v5398_v46 = vor.u32 %v6956_v34, %v5397_v33 }
  0x38   :  { %3623 = vmatpush.bf16.msra.mxu2 %v5102_v6  ;;  %v5325_v43 = vld [vmem:[#allocation8 + $0x2e0] sm:$0xf]  ;;  %v6938_v44 = vld [vmem:[#allocation8 + $0x2e4] sm:$0xf0]  ;;  %v5462_v50 = vor.u32 %v6972_v38, %v5461_v37  ;;  %v7674_v52 = vld [vmem:[#allocation8 + $0x250] sm:$0xf]  ;;  %v5262_v62 = vor.u32 %v6922_v42, %v5261_v39 }
  0x39   :  { %3636 = vmatpush.bf16.msra.mxu3 %v5166_v10  ;;  %v5389_v47 = vld [vmem:[#allocation8 + $0x360] sm:$0xf]  ;;  %v6954_v48 = vld [vmem:[#allocation8 + $0x364] sm:$0xf0]  ;;  %v7676_v53 = vld [vmem:[#allocation8 + $0x254] sm:$0xf0]  ;;  %v5326_v5 = vor.u32 %v6938_v44, %v5325_v43 }
  0x3a   :  { %3598 = vmatpush.bf16.msra.mxu0 %v4966_v16  ;;  %v7672_v49 = vld [vmem:[#allocation8 + $0x3e0] sm:$0xf]  ;;  %v6970_v51 = vld [vmem:[#allocation8 + $0x3e4] sm:$0xf0]  ;;  %v7678_v54 = vld [vmem:[#allocation8 + $0x2d0] sm:$0xf]  ;;  %v5390_v6 = vor.u32 %v6954_v48, %v5389_v47 }
  0x3b   :  { %3611 = vmatpush.bf16.msra.mxu1 %v5030_v19  ;;  %v7680_v55 = vld [vmem:[#allocation8 + $0x2d4] sm:$0xf0]  ;;  %v7682_v56 = vld [vmem:[#allocation8 + $0x350] sm:$0xf]  ;;  %v7690_v60 = vld [vmem:[#allocation8 + $0x240] sm:$0xf]  ;;  %v5454_v15 = vor.u32 %v6970_v51, %v7672_v49 }
  0x3c   :  { %3624 = vmatpush.bf16.msra.mxu2 %v5094_v20  ;;  %v7684_v57 = vld [vmem:[#allocation8 + $0x354] sm:$0xf0]  ;;  %v7686_v58 = vld [vmem:[#allocation8 + $0x3d0] sm:$0xf]  ;;  %v7692_v61 = vld [vmem:[#allocation8 + $0x244] sm:$0xf0]  ;;  %v5254_v20 = vor.u32 %v7676_v53, %v7674_v52 }
  0x3d   :  { %3637 = vmatpush.bf16.msra.mxu3 %v5158_v24  ;;  %v7688_v59 = vld [vmem:[#allocation8 + $0x3d4] sm:$0xf0]  ;;  %v7694_v63 = vld [vmem:[#allocation8 + $0x2c0] sm:$0xf]  ;;  %v7696_v0 = vld [vmem:[#allocation8 + $0x2c4] sm:$0xf0]  ;;  %v5318_v24 = vor.u32 %v7680_v55, %v7678_v54  ;;  %v5382_v25 = vor.u32 %v7684_v57, %v7682_v56  ;;  %v5246_v27 = vor.u32 %v7692_v61, %v7690_v60 }
  0x3e   :  { %3599 = vmatpush.bf16.msra.mxu0 %v4958_v31  ;;  %v7698_v1 = vld [vmem:[#allocation8 + $0x340] sm:$0xf]  ;;  %v7700_v2 = vld [vmem:[#allocation8 + $0x344] sm:$0xf0]  ;;  %v7706_v7 = vld [vmem:[#allocation8 + $0x230] sm:$0xf]  ;;  %v5446_v26 = vor.u32 %v7688_v59, %v7686_v58  ;;  %v5310_v31 = vor.u32 %v7696_v0, %v7694_v63 }
  0x3f   :  { %3612 = vmatpush.bf16.msra.mxu1 %v5022_v35  ;;  %v7702_v3 = vld [vmem:[#allocation8 + $0x3c0] sm:$0xf]  ;;  %v7704_v4 = vld [vmem:[#allocation8 + $0x3c4] sm:$0xf0]  ;;  %v7708_v8 = vld [vmem:[#allocation8 + $0x234] sm:$0xf0]  ;;  %v5374_v32 = vor.u32 %v7700_v2, %v7698_v1 }
  0x40   :  { %3625 = vmatpush.bf16.msra.mxu2 %v5086_v36  ;;  %v7710_v9 = vld [vmem:[#allocation8 + $0x2b0] sm:$0xf]  ;;  %v7712_v10 = vld [vmem:[#allocation8 + $0x2b4] sm:$0xf0]  ;;  %v7723_v16 = vld [vmem:[#allocation8 + $0x220] sm:$0xf]  ;;  %v5438_v33 = vor.u32 %v7704_v4, %v7702_v3  ;;  %v5238_v37 = vor.u32 %v7708_v8, %v7706_v7 }
  0x41   :  { %3638 = vmatpush.bf16.msra.mxu3 %v5150_v40  ;;  %v7714_v11 = vld [vmem:[#allocation8 + $0x330] sm:$0xf]  ;;  %v7716_v12 = vld [vmem:[#allocation8 + $0x334] sm:$0xf0]  ;;  %v7725_v17 = vld [vmem:[#allocation8 + $0x224] sm:$0xf0] }
  0x42   :  { %3644 = vmatpush.bf16.msrb.mxu0 %v5270_v41  ;;  %v7718_v13 = vld [vmem:[#allocation8 + $0x3b0] sm:$0xf]  ;;  %v7720_v14 = vld [vmem:[#allocation8 + $0x3b4] sm:$0xf0]  ;;  %v7727_v18 = vld [vmem:[#allocation8 + $0x2a0] sm:$0xf] }
  0x43   :  { %3657 = vmatpush.bf16.msrb.mxu1 %v5334_v45  ;;  %v7729_v19 = vld [vmem:[#allocation8 + $0x2a4] sm:$0xf0]  ;;  %v7733_v21 = vld [vmem:[#allocation8 + $0x320] sm:$0xf]  ;;  %v7749_v29 = vld [vmem:[#allocation8 + $0x210] sm:$0xf]  ;;  %v9884_v7 = vor.u32 %v7720_v14, %v7718_v13 }
  0x44   :  { %3670 = vmatpush.bf16.msrb.mxu2 %v5398_v46  ;;  %v7735_v22 = vld [vmem:[#allocation8 + $0x324] sm:$0xf0]  ;;  %v7737_v23 = vld [vmem:[#allocation8 + $0x3a0] sm:$0xf]  ;;  %v7751_v30 = vld [vmem:[#allocation8 + $0x214] sm:$0xf0]  ;;  %v9886_v13 = vor.u32 %v7729_v19, %v7727_v18 }
  0x45   :  { %3683 = vmatpush.bf16.msrb.mxu3 %v5462_v50  ;;  %v7747_v28 = vld [vmem:[#allocation8 + $0x3a4] sm:$0xf0]  ;;  %v7759_v34 = vld [vmem:[#allocation8 + $0x290] sm:$0xf]  ;;  %v7761_v35 = vld [vmem:[#allocation8 + $0x294] sm:$0xf0]  ;;  %v9887_v14 = vor.u32 %v7735_v22, %v7733_v21  ;;  %v9889_v21 = vor.u32 %v7751_v30, %v7749_v29 }
  0x46   :  { %3645 = vmatpush.bf16.msrb.mxu0 %v5262_v62  ;;  %v7763_v36 = vld [vmem:[#allocation8 + $0x310] sm:$0xf]  ;;  %v7773_v41 = vld [vmem:[#allocation8 + $0x314] sm:$0xf0]  ;;  %v7787_v48 = vld [vmem:[#allocation8 + $0x200] sm:$0xf] }
  0x47   :  { %3658 = vmatpush.bf16.msrb.mxu1 %v5326_v5  ;;  %v7775_v42 = vld [vmem:[#allocation8 + $0x390] sm:$0xf]  ;;  %v7777_v43 = vld [vmem:[#allocation8 + $0x394] sm:$0xf0]  ;;  %v7789_v49 = vld [vmem:[#allocation8 + $0x204] sm:$0xf0] }
  0x48   :  { %3671 = vmatpush.bf16.msrb.mxu2 %v5390_v6  ;;  %v7791_v50 = vld [vmem:[#allocation8 + $0x280] sm:$0xf]  ;;  %v7801_v55 = vld [vmem:[#allocation8 + $0x284] sm:$0xf0]  ;;  %v7821_v1 = vld [vmem:[#allocation2 + $0x8] sm:$0xff]  ;;  %v7609_v5 = vmov 8.0  }
  0x49   :  { %3684 = vmatpush.bf16.msrb.mxu3 %v5454_v15  ;;  %v7803_v56 = vld [vmem:[#allocation8 + $0x300] sm:$0xf]  ;;  %v7805_v57 = vld [vmem:[#allocation8 + $0x304] sm:$0xf0]  ;;  %9881 = vst [vmem:[#allocation23_spill] sm:$0xff] %v7821_v1  ;;  %v7823_v2 = vld [vmem:[#allocation2 + $0x10] sm:$0xff]  ;;  %7330 = vrcp.f32 %v7609_v5  ;;  %v7843_v60 = vmul.f32 %v7821_v1, %v7821_v1 }
  0x4a   :  { %3646 = vmatpush.bf16.msrb.mxu0 %v5254_v20  ;;  %v7813_v61 = vld [vmem:[#allocation8 + $0x380] sm:$0xf]  ;;  %v7815_v62 = vld [vmem:[#allocation8 + $0x384] sm:$0xf0]  ;;  %v7834_v20 = vld [vmem:[#allocation2 + $0x28] sm:$0xff]  ;;  %v346_v18 = vmul.f32 %v7823_v2, %v7823_v2  ;;  %vm9855_vm15 = vcmask 1044484  }
  0x4b   :  { %3659 = vmatpush.bf16.msrb.mxu1 %v5318_v24  ;;  %9878 = vst [vmem:[#allocation20_spill] sm:$0xff] %v7813_v61  ;;  %v7817_v63 = vld [vmem:[#allocation2] sm:$0xff]  ;;  %v7825_v3 = vld [vmem:[#allocation2 + $0x18] sm:$0xff]  ;;  %v7836_v24 = vld [vmem:[#allocation2 + $0x30] sm:$0xff]  ;;  %v190_v54 = vrot.slane %v7834_v20, 4  ;;  %s7610_s4 = smov [#allocation14]  }
  0x4c   :  { %3672 = vmatpush.bf16.msrb.mxu2 %v5382_v25  ;;  %9879 = vst [vmem:[#allocation21_spill] sm:$0xff] %v7815_v62  ;;  %v160_v4 = vrot.slane %v7817_v63, 4  ;;  %v7830_v6 = vmul.f32 %v7817_v63, %v7817_v63  ;;  %v7832_v15 = vld [vmem:[#allocation2 + $0x20] sm:$0xff]  ;;  %v166_v25 = vrot.slane %v7821_v1, 4  ;;  %v178_v0 = vrot.slane %v7825_v3, 4  ;;  %v7845_v5 = vld [vmem:[#allocation2 + $0x38] sm:$0xff] }
  0x4d   :  { %9880 = vst [vmem:[#allocation22_spill] sm:$0xff] %v7817_v63  ;;  %3685 = vmatpush.bf16.msrb.mxu3 %v5446_v26  ;;  %v172_v26 = vrot.slane %v7823_v2, 4  ;;  %v184_v58 = vrot.slane %v7832_v15, 4  ;;  %v196_v53 = vrot.slane %v7836_v24, 4  ;;  %v191_v45 = vadd.f32 %v190_v54, %v7834_v20  ;;  %s4940_s6 = sshll.u32 %s7610_s4, 4  ;;  %s4942_s14 = sshll.u32 %s9800_s7, 4  ;;  %s4941_s6 = int_to_ptr.vmem [resolvable:$true] %s4940_s6  ;;  %s4943_s14 = int_to_ptr.hbm [resolvable:$true] %s4942_s14 }
  0x4e   :  { %3647 = vmatpush.bf16.msrb.mxu0 %v5246_v27  ;;  %v161_v59 = vadd.f32 %v160_v4, %v7817_v63  ;;  %v167_v52 = vadd.f32 %v166_v25, %v7821_v1  ;;  %v179_v47 = vadd.f32 %v178_v0, %v7825_v3  ;;  %v202_v27 = vrot.slane %v7845_v5, 4 }
  0x4f   :  { %3660 = vmatpush.bf16.msrb.mxu1 %v5310_v31  ;;  %v173_v51 = vadd.f32 %v172_v26, %v7823_v2  ;;  %v185_v4 = vadd.f32 %v184_v58, %v7832_v15  ;;  %v197_v44 = vadd.f32 %v196_v53, %v7836_v24  ;;  %v7859_v25 = vpop.eup %7330  ;;  %v192_v26 = vrot.slane %v191_v45, 2 }
  0x50   :  { %3673 = vmatpush.bf16.msrb.mxu2 %v5374_v32  ;;  %v162_v46 = vrot.slane %v161_v59, 2  ;;  %v168_v40 = vrot.slane %v167_v52, 2  ;;  %v180_v31 = vrot.slane %v179_v47, 2  ;;  %v203_v32 = vadd.f32 %v202_v27, %v7845_v5 }
  0x51   :  { %3686 = vmatpush.bf16.msrb.mxu3 %v5438_v33  ;;  %v174_v39 = vrot.slane %v173_v51, 2  ;;  %v186_v33 = vrot.slane %v185_v4, 2  ;;  %v198_v38 = vrot.slane %v197_v44, 2  ;;  %v9882_v54 = vor.u32 %v7712_v10, %v7710_v9 }
  0x52   :  { %3648 = vmatpush.bf16.msrb.mxu0 %v5238_v37  ;;  %v163_v0 = vadd.f32 %v162_v46, %v161_v59  ;;  %v9883_v53 = vor.u32 %v7716_v12, %v7714_v11  ;;  %v169_v58 = vadd.f32 %v168_v40, %v167_v52  ;;  %v181_v1 = vadd.f32 %v180_v31, %v179_v47 }
  0x53   :  { %3661 = vmatpush.bf16.msrb.mxu1 %v9882_v54  ;;  %v175_v27 = vadd.f32 %v174_v39, %v173_v51  ;;  %v204_v63 = vrot.slane %v203_v32, 2  ;;  %v187_v37 = vadd.f32 %v186_v33, %v185_v4  ;;  %v193_v46 = vadd.f32 %v192_v26, %v191_v45 }
  0x54   :  { %3674 = vmatpush.bf16.msrb.mxu2 %v9883_v53  ;;  %v164_v8 = vrot.slane %v163_v0, 1  ;;  %v199_v59 = vadd.f32 %v198_v38, %v197_v44  ;;  %v170_v61 = vrot.slane %v169_v58, 1  ;;  %v182_v9 = vrot.slane %v181_v1, 1 }
  0x55   :  { %3687 = vmatpush.bf16.msrb.mxu3 %v9884_v7  ;;  %v176_v62 = vrot.slane %v175_v27, 1  ;;  %v205_v10 = vadd.f32 %v204_v63, %v203_v32  ;;  %v9885_v11 = vor.u32 %v7725_v17, %v7723_v16  ;;  %v188_v39 = vrot.slane %v187_v37, 1 }
  0x56   :  { %v165_v12 = vadd.f32 %v164_v8, %v163_v0  ;;  %v194_v40 = vrot.slane %v193_v46, 1  ;;  %v200_v47 = vrot.slane %v199_v59, 1  ;;  %v171_v38 = vadd.f32 %v170_v61, %v169_v58 }
  0x57   :  { %3649 = vmatpush.bf16.msrb.mxu0 %v9885_v11  ;;  %3662 = vmatpush.bf16.msrb.mxu1 %v9886_v13  ;;  %v177_v44 = vadd.f32 %v176_v62, %v175_v27  ;;  %v183_v45 = vadd.f32 %v182_v9, %v181_v1  ;;  %v206_v51 = vrot.slane %v205_v10, 1  ;;  %v9888_v16 = vor.u32 %v7747_v28, %v7737_v23 }
  0x58   :  { %3675 = vmatpush.bf16.msrb.mxu2 %v9887_v14  ;;  %v189_v17 = vadd.f32 %v188_v39, %v187_v37  ;;  %v195_v52 = vadd.f32 %v194_v40, %v193_v46  ;;  %v201_v63 = vadd.f32 %v200_v47, %v199_v59  ;;  %v313_v4 = vmul.f32 8.0, %v7859_v25 }
  0x59   :  { %3688 = vmatpush.bf16.msrb.mxu3 %v9888_v16  ;;  %v207_v31 = vadd.f32 %v206_v51, %v205_v10  ;;  %vm317_vm0 = vweird.f32 %v7859_v25  ;;  %v347_v19 = vmul.f32 %v7825_v3, %v7825_v3  ;;  %v348_v23 = vmul.f32 %v7832_v15, %v7832_v15  ;;  %v9896_v10 = vld [vmem:[#allocation21_spill] sm:$0xff] }
  0x5a   :  { %v314_v22 = vsub.f32 1.0, %v313_v4  ;;  %v349_v28 = vmul.f32 %v7834_v20, %v7834_v20  ;;  %v350_v61 = vmul.f32 %v7836_v24, %v7836_v24  ;;  %v9890_v62 = vor.u32 %v7761_v35, %v7759_v34 }
  0x5b   :  { %3650 = vmatpush.bf16.msrb.mxu0 %v9889_v21  ;;  %v9891_v1 = vor.u32 %v7773_v41, %v7763_v36  ;;  %v351_v29 = vmul.f32 %v7845_v5, %v7845_v5  ;;  %v369_v30 = vrot.slane %v7830_v6, 4  ;;  %v375_v32 = vrot.slane %v7843_v60, 4 }
  0x5c   :  { %3663 = vmatpush.bf16.msrb.mxu1 %v9890_v62  ;;  %v381_v0 = vrot.slane %v346_v18, 4  ;;  %v9892_v33 = vor.u32 %v7777_v43, %v7775_v42  ;;  %v315_v26 = vmul.f32 %v7859_v25, %v314_v22  ;;  %v387_v34 = vrot.slane %v347_v19, 4 }
  0x5d   :  { %3676 = vmatpush.bf16.msrb.mxu2 %v9891_v1  ;;  %v393_v35 = vrot.slane %v348_v23, 4  ;;  %v399_v54 = vrot.slane %v349_v28, 4  ;;  %v370_v36 = vadd.f32 %v369_v30, %v7830_v6  ;;  %v376_v41 = vadd.f32 %v375_v32, %v7843_v60 }
  0x5e   :  { %3689 = vmatpush.bf16.msrb.mxu3 %v9892_v33  ;;  %v382_v53 = vadd.f32 %v381_v0, %v346_v18  ;;  %v405_v58 = vrot.slane %v350_v61, 4  ;;  %v9893_v27 = vor.u32 %v7789_v49, %v7787_v48  ;;  %v316_v7 = vadd.f32 %v7859_v25, %v315_v26  ;;  %v9897_v48 = vld [vmem:[#allocation20_spill] sm:$0xff] }
  0x5f   :  { %v388_v8 = vadd.f32 %v387_v34, %v347_v19  ;;  %v394_v42 = vadd.f32 %v393_v35, %v348_v23  ;;  %v400_v43 = vadd.f32 %v399_v54, %v349_v28  ;;  %v9894_v37 = vor.u32 %v7801_v55, %v7791_v50 }
  0x60   :  { %3651 = vmatpush.bf16.msrb.mxu0 %v9893_v27  ;;  %v9895_v6 = vor.u32 %v7805_v57, %v7803_v56  ;;  %v371_v60 = vrot.slane %v370_v36, 2  ;;  %v377_v46 = vrot.slane %v376_v41, 2  ;;  %v383_v59 = vrot.slane %v382_v53, 2 }
  0x61   :  { %3664 = vmatpush.bf16.msrb.mxu1 %v9894_v37  ;;  %v406_v9 = vadd.f32 %v405_v58, %v350_v61  ;;  %v9898_v49 = vor.u32 %v9896_v10, %v9897_v48  ;;  %v7932_v11 = vsel %vm317_vm0, %v7859_v25, %v316_v7  ;;  %v389_v39 = vrot.slane %v388_v8, 2 }
  0x62   :  { %3677 = vmatpush.bf16.msrb.mxu2 %v9895_v6  ;;  %v395_v50 = vrot.slane %v394_v42, 2  ;;  %v401_v55 = vrot.slane %v400_v43, 2  ;;  %v7935_v40 = vmul.f32 %v7932_v11, %v165_v12  ;;  %v7938_v56 = vmul.f32 %v7932_v11, %v171_v38 }
  0x63   :  { %3690 = vmatpush.bf16.msrb.mxu3 %v9898_v49  ;;  %v7941_v57 = vmul.f32 %v7932_v11, %v177_v44  ;;  %v7944_v47 = vmul.f32 %v7932_v11, %v183_v45  ;;  %v7947_v13 = vmul.f32 %v7932_v11, %v189_v17  ;;  %v7950_v25 = vmul.f32 %v7932_v11, %v195_v52 }
  0x64   :  { %v7953_v14 = vmul.f32 %v7932_v11, %v201_v63  ;;  %v7956_v12 = vmul.f32 %v7932_v11, %v207_v31  ;;  %v372_v38 = vadd.f32 %v371_v60, %v370_v36  ;;  %v378_v51 = vadd.f32 %v377_v46, %v376_v41 }
  0x65   :  { %v384_v16 = vadd.f32 %v383_v59, %v382_v53  ;;  %v390_v44 = vadd.f32 %v389_v39, %v388_v8  ;;  %v396_v4 = vadd.f32 %v395_v50, %v394_v42  ;;  %v402_v18 = vadd.f32 %v401_v55, %v400_v43 }
  0x66   :  { %v407_v45 = vrot.slane %v406_v9, 2  ;;  %v411_v19 = vrot.slane %v351_v29, 4  ;;  %v373_v21 = vrot.slane %v372_v38, 1  ;;  %v379_v17 = vrot.slane %v378_v51, 1 }
  0x67   :  { %v385_v22 = vrot.slane %v384_v16, 1  ;;  %v391_v23 = vrot.slane %v390_v44, 1  ;;  %v397_v52 = vrot.slane %v396_v4, 1  ;;  %v403_v28 = vrot.slane %v402_v18, 1 }
  0x68   :  { %v408_v61 = vadd.f32 %v407_v45, %v406_v9  ;;  %v412_v63 = vadd.f32 %v411_v19, %v351_v29  ;;  %v374_v62 = vadd.f32 %v373_v21, %v372_v38  ;;  %v380_v1 = vadd.f32 %v379_v17, %v378_v51 }
  0x69   :  { %v386_v31 = vadd.f32 %v385_v22, %v384_v16  ;;  %v392_v30 = vadd.f32 %v391_v23, %v390_v44  ;;  %v398_v32 = vadd.f32 %v397_v52, %v396_v4  ;;  %v404_v0 = vadd.f32 %v403_v28, %v402_v18  ;;  %v8002_v23 = vld [vmem:[#allocation2 + $0x40] sm:$0xff]  ;;  %v8004_v52 = vld [vmem:[#allocation2 + $0x48] sm:$0xff]  ;;  %v8007_v28 = vld [vmem:[#allocation2 + $0x50] sm:$0xff] }
  0x6a   :  { %v409_v33 = vrot.slane %v408_v61, 1  ;;  %v413_v26 = vrot.slane %v412_v63, 2  ;;  %v520_v34 = vmul.f32 %v374_v62, %v7932_v11  ;;  %v521_v35 = vmul.f32 %v380_v1, %v7932_v11 }
  0x6b   :  { %v522_v54 = vmul.f32 %v386_v31, %v7932_v11  ;;  %v523_v36 = vmul.f32 %v392_v30, %v7932_v11  ;;  %v524_v29 = vmul.f32 %v398_v32, %v7932_v11  ;;  %v525_v58 = vmul.f32 %v404_v0, %v7932_v11 }
  0x6c   :  { %v410_v41 = vadd.f32 %v409_v33, %v408_v61  ;;  %v414_v53 = vadd.f32 %v413_v26, %v412_v63  ;;  %v545_v27 = vmul.f32 %v7935_v40, %v7935_v40  ;;  %v546_v7 = vmul.f32 %v7938_v56, %v7938_v56 }
  0x6d   :  { %v547_v8 = vmul.f32 %v7941_v57, %v7941_v57  ;;  %v548_v42 = vmul.f32 %v7944_v47, %v7944_v47  ;;  %v549_v6 = vmul.f32 %v7947_v13, %v7947_v13  ;;  %v550_v60 = vmul.f32 %v7950_v25, %v7950_v25 }
  0x6e   :  { %v415_v43 = vrot.slane %v414_v53, 1  ;;  %v526_v37 = vmul.f32 %v410_v41, %v7932_v11  ;;  %v551_v46 = vmul.f32 %v7953_v14, %v7953_v14  ;;  %v552_v59 = vmul.f32 %v7956_v12, %v7956_v12 }
  0x6f   :  { %v570_v9 = vsub.f32 %v520_v34, %v545_v27  ;;  %v571_v10 = vsub.f32 %v521_v35, %v546_v7  ;;  %v572_v49 = vsub.f32 %v522_v54, %v547_v8  ;;  %v573_v39 = vsub.f32 %v523_v36, %v548_v42 }
  0x70   :  { %v416_v48 = vadd.f32 %v415_v43, %v414_v53  ;;  %v574_v50 = vsub.f32 %v524_v29, %v549_v6  ;;  %v575_v55 = vsub.f32 %v525_v58, %v550_v60  ;;  %v576_v38 = vsub.f32 %v526_v37, %v551_v46 }
  0x71   :  { %v7981_v51 = vadd.f32 1e-05, %v570_v9  ;;  %v7983_v16 = vadd.f32 1e-05, %v571_v10  ;;  %v7986_v4 = vadd.f32 1e-05, %v572_v49 }
  0x72   :  { %v527_v44 = vmul.f32 %v416_v48, %v7932_v11  ;;  %v7988_v18 = vadd.f32 1e-05, %v573_v39  ;;  %v7990_v45 = vadd.f32 1e-05, %v574_v50  ;;  %v7993_v21 = vadd.f32 1e-05, %v575_v55 }
  0x73   :  { %7332 = vrsqrt.f32 %v7981_v51  ;;  %v7996_v17 = vadd.f32 1e-05, %v576_v38  ;;  %vm626_vm1 = vweird.f32 %v7981_v51  ;;  %vm636_vm2 = vweird.f32 %v7983_v16  ;;  %v8159_v49 = vld [vmem:[#allocation8 + $0x4f0] sm:$0xf] }
  0x74   :  { %v577_v19 = vsub.f32 %v527_v44, %v552_v59  ;;  %7334 = vrsqrt.f32 %v7983_v16  ;;  %vm646_vm3 = vweird.f32 %v7986_v4  ;;  %vm656_vm4 = vweird.f32 %v7988_v18  ;;  %v8169_v44 = vld [vmem:[#allocation8 + $0x574] sm:$0xf0] }
  0x75   :  { %7336 = vrsqrt.f32 %v7986_v4  ;;  %v208_v63 = vrot.slane %v8002_v23, 4  ;;  %v214_v62 = vrot.slane %v8004_v52, 4  ;;  %vm666_vm6 = vweird.f32 %v7990_v45 }
  0x76   :  { %v7999_v22 = vadd.f32 1e-05, %v577_v19  ;;  %7338 = vrsqrt.f32 %v7988_v18  ;;  %v220_v30 = vrot.slane %v8007_v28, 4  ;;  %vm676_vm8 = vweird.f32 %v7993_v21 }
  0x77   :  { %7340 = vrsqrt.f32 %v7990_v45  ;;  %v8034_v33 = vadd.f32 %v208_v63, %v8002_v23  ;;  %v8037_v26 = vadd.f32 %v214_v62, %v8004_v52 }
  0x78   :  { %7342 = vrsqrt.f32 %v7993_v21  ;;  %v8047_v36 = vadd.f32 %v220_v30, %v8007_v28 }
  0x79   :  { %v8013_v61 = vpop.eup %7332  ;;  %7344 = vrsqrt.f32 %v7996_v17  ;;  %v210_v58 = vrot.slane %v8034_v33, 2 }
  0x7a   :  { %v8019_v1 = vpop.eup %7334  ;;  %v621_v31 = vmul.f32 %v8013_v61, %v7981_v51  ;;  %vm627_vm5 = vweird.f32 %v8013_v61  ;;  %7346 = vrsqrt.f32 %v7999_v22 }
  0x7b   :  { %v8027_v32 = vpop.eup %7336  ;;  %v631_v0 = vmul.f32 %v8019_v1, %v7983_v16  ;;  %vm637_vm7 = vweird.f32 %v8019_v1  ;;  %vm8078_vm10 = vmor %vm626_vm1, %vm627_vm5 }
  0x7c   :  { %v8039_v34 = vpop.eup %7338  ;;  %v622_v35 = vmul.f32 %v8013_v61, %v621_v31  ;;  %v641_v54 = vmul.f32 %v8027_v32, %v7986_v4  ;;  %vm647_vm9 = vweird.f32 %v8027_v32  ;;  %vm8089_vm13 = vmor %vm636_vm2, %vm637_vm7  ;;  %vm9853_vm7 = vcmask 1045508   ;;  %v8175_v31 = vld [vmem:[#allocation8 + $0x5f0] sm:$0xf]  ;;  %v8195_v4 = vld [vmem:[#allocation8 + $0x464] sm:$0xf0] }
  0x7d   :  { %v8049_v41 = vpop.eup %7340  ;;  %v632_v53 = vmul.f32 %v8019_v1, %v631_v0  ;;  %v651_v29 = vmul.f32 %v8039_v34, %v7988_v18  ;;  %vm657_vm11 = vweird.f32 %v8039_v34  ;;  %vm8099_vm1 = vmor %vm646_vm3, %vm647_vm9 }
  0x7e   :  { %v8056_v27 = vpop.eup %7342  ;;  %v623_v7 = vmul.f32 0.5, %v622_v35  ;;  %v642_v8 = vmul.f32 %v8027_v32, %v641_v54  ;;  %v661_v42 = vmul.f32 %v8049_v41, %v7990_v45  ;;  %vm667_vm12 = vweird.f32 %v8049_v41  ;;  %vm8113_vm2 = vmor %vm656_vm4, %vm657_vm11  ;;  %v8214_v45 = vld [vmem:[#allocation8 + $0x560] sm:$0xf] }
  0x7f   :  { %v8062_v43 = vpop.eup %7344  ;;  %v633_v37 = vmul.f32 0.5, %v632_v53  ;;  %v652_v6 = vmul.f32 %v8039_v34, %v651_v29  ;;  %v671_v60 = vmul.f32 %v8056_v27, %v7993_v21  ;;  %vm677_vm14 = vweird.f32 %v8056_v27  ;;  %vm8125_vm3 = vmor %vm666_vm6, %vm667_vm12  ;;  %9920 = vst [vmem:[#allocation21_spill] sm:$0xff] %v8214_v45  ;;  %v8274_v21 = vld [vmem:[#allocation8 + $0x5d0] sm:$0xf]  ;;  %v8364_v45 = vld [vmem:[#allocation8 + $0x534] sm:$0xf0] }
  0x80   :  { %v8069_v46 = vpop.eup %7346  ;;  %v624_v59 = vsub.f32 1.5, %v623_v7  ;;  %v643_v9 = vmul.f32 0.5, %v642_v8  ;;  %v662_v10 = vmul.f32 %v8049_v41, %v661_v42  ;;  %v681_v48 = vmul.f32 %v8062_v43, %v7996_v17  ;;  %vm8138_vm5 = vmor %vm676_vm8, %vm677_vm14  ;;  %9934 = vst [vmem:[#allocation36_spill] sm:$0xff] %v8274_v21 }
  0x81   :  { %v634_v39 = vsub.f32 1.5, %v633_v37  ;;  %v653_v50 = vmul.f32 0.5, %v652_v6  ;;  %v672_v55 = vmul.f32 %v8056_v27, %v671_v60  ;;  %vm687_vm0 = vweird.f32 %v8062_v43  ;;  %v8143_v60 = vld [vmem:[#allocation8 + $0x470] sm:$0xf] }
  0x82   :  { %v625_v38 = vmul.f32 %v8013_v61, %v624_v59  ;;  %v644_v51 = vsub.f32 1.5, %v643_v9  ;;  %v663_v19 = vmul.f32 0.5, %v662_v10  ;;  %v682_v63 = vmul.f32 %v8062_v43, %v681_v48  ;;  %v8145_v59 = vld [vmem:[#allocation8 + $0x474] sm:$0xf0] }
  0x83   :  { %v635_v62 = vmul.f32 %v8019_v1, %v634_v39  ;;  %v654_v30 = vsub.f32 1.5, %v653_v50  ;;  %v673_v16 = vmul.f32 0.5, %v672_v55  ;;  %v691_v0 = vmul.f32 %v8069_v46, %v7999_v22  ;;  %v8161_v39 = vld [vmem:[#allocation8 + $0x4f4] sm:$0xf0] }
  0x84   :  { %v629_v35 = vsel %vm8078_vm10, %v8013_v61, %v625_v38  ;;  %v645_v54 = vmul.f32 %v8027_v32, %v644_v51  ;;  %v664_v53 = vsub.f32 1.5, %v663_v19  ;;  %v683_v29 = vmul.f32 0.5, %v682_v63  ;;  %v8205_v61 = vld [vmem:[#allocation2 + $0x58] sm:$0xff] }
  0x85   :  { %v639_v7 = vsel %vm8089_vm13, %v8019_v1, %v635_v62  ;;  %v655_v8 = vmul.f32 %v8039_v34, %v654_v30  ;;  %v674_v18 = vsub.f32 1.5, %v673_v16  ;;  %v692_v42 = vmul.f32 %v8069_v46, %v691_v0  ;;  %v8177_v30 = vld [vmem:[#allocation8 + $0x5f4] sm:$0xf0] }
  0x86   :  { %vm9854_vm4 = vcmask 1046534   ;;  %v649_v37 = vsel %vm8099_vm1, %v8027_v32, %v645_v54  ;;  %v665_v1 = vmul.f32 %v8049_v41, %v664_v53  ;;  %v684_v6 = vsub.f32 1.5, %v683_v29  ;;  %v8193_v54 = vld [vmem:[#allocation8 + $0x460] sm:$0xf] }
  0x87   :  { %vm697_vm6 = vweird.f32 %v8069_v46  ;;  %v659_v32 = vsel %vm8113_vm2, %v8039_v34, %v655_v8  ;;  %v675_v9 = vmul.f32 %v8056_v27, %v674_v18  ;;  %vm9911_vm8 = vweird.f32 %v7996_v17  ;;  %v8167_v17 = vld [vmem:[#allocation8 + $0x570] sm:$0xf]  ;;  %v8203_v8 = vld [vmem:[#allocation8 + $0x4e4] sm:$0xf0] }
  0x88   :  { %vm8155_vm9 = vmor %vm9911_vm8, %vm687_vm0  ;;  %v693_v10 = vmul.f32 0.5, %v692_v42  ;;  %v894_v48 = vrot.slane %v639_v7, 7  ;;  %vm9852_vm10 = vcmask 1043456   ;;  %v669_v34 = vsel %vm8125_vm3, %v8049_v41, %v665_v1  ;;  %v8201_v7 = vld [vmem:[#allocation8 + $0x4e0] sm:$0xf] }
  0x89   :  { %v685_v50 = vmul.f32 %v8062_v43, %v684_v6  ;;  %v895_v55 = vrot.slane %v649_v37, 6  ;;  %v896_v38 = vrot.slane %v659_v32, 5  ;;  %v679_v51 = vsel %vm8138_vm5, %v8056_v27, %v675_v9  ;;  %v8216_v6 = vld [vmem:[#allocation8 + $0x564] sm:$0xf0]  ;;  %v8218_v32 = vld [vmem:[#allocation8 + $0x5e0] sm:$0xf] }
  0x8a   :  { %v694_v19 = vsub.f32 1.5, %v693_v10  ;;  %v897_v63 = vrot.slane %v669_v34, 4  ;;  %vm9914_vm11 = vcmask 1040384   ;;  %vm9915_vm12 = vweird.f32 %v7999_v22  ;;  %9921 = vst [vmem:[#allocation20_spill] sm:$0xff] %v8216_v6  ;;  %v8229_v34 = vld [vmem:[#allocation2 + $0x60] sm:$0xff] }
  0x8b   :  { %v916_v62 = vsel %vm9914_vm11, %v629_v35, %v894_v48  ;;  %v689_v41 = vsel %vm8155_vm9, %v8062_v43, %v685_v50  ;;  %vm8186_vm13 = vmor %vm9915_vm12, %vm697_vm6  ;;  %v898_v27 = vrot.slane %v679_v51, 3  ;;  %vm9918_vm14 = vcmask 1042434   ;;  %9922 = vst [vmem:[#allocation24_spill] sm:$0xff] %v8218_v32  ;;  %v8227_v48 = vld [vmem:[#allocation8 + $0x5e4] sm:$0xf0]  ;;  %v8231_v50 = vld [vmem:[#allocation2 + $0x68] sm:$0xff] }
  0x8c   :  { %v918_v0 = vsel %vm9918_vm14, %v895_v55, %v896_v38  ;;  %v695_v43 = vmul.f32 %v8069_v46, %v694_v19  ;;  %v899_v53 = vrot.slane %v689_v41, 2  ;;  %vm9919_vm0 = vcmask 1041408   ;;  %9923 = vst [vmem:[#allocation25_spill] sm:$0xff] %v8227_v48  ;;  %v152_v38 = vld [vmem:[#allocation5] sm:$0xff]  ;;  %v8272_v10 = vld [vmem:[#allocation8 + $0x554] sm:$0xf0]  ;;  %vm9947_vm1 = vmmov %vm9914_vm11 }
  0x8d   :  { %v920_v29 = vsel %vm9919_vm0, %v916_v62, %v918_v0  ;;  %v922_v18 = vsel %vm9855_vm15, %v897_v63, %v898_v27  ;;  %v211_v55 = vadd.f32 %v210_v58, %v8034_v33  ;;  %v8238_v19 = vld [vmem:[#allocation8 + $0x450] sm:$0xf]  ;;  %v8240_v63 = vld [vmem:[#allocation8 + $0x454] sm:$0xf0]  ;;  %v216_v41 = vrot.slane %v8037_v26, 2  ;;  %9933 = vst [vmem:[#allocation35_spill] sm:$0xff] %v8272_v10  ;;  %vm9948_vm2 = vmmov %vm9918_vm14 }
  0x8e   :  { %v699_v9 = vsel %vm8186_vm13, %v8069_v46, %v695_v43  ;;  %9924 = vst [vmem:[#allocation26_spill] sm:$0xff] %v8238_v19  ;;  %v8242_v62 = vld [vmem:[#allocation2 + $0x70] sm:$0xff]  ;;  %v8247_v16 = vmul.f32 %v8002_v23, %v8002_v23  ;;  %v8251_v58 = vld [vmem:[#allocation8 + $0x4d0] sm:$0xf]  ;;  %v8259_v43 = vmul.f32 %v8004_v52, %v8004_v52  ;;  %v8267_v23 = vmul.f32 %v8205_v61, %v8205_v61  ;;  %v8288_v46 = vld [vmem:[#allocation2 + $0x78] sm:$0xff] }
  0x8f   :  { %v900_v51 = vrot.slane %v699_v9, 1  ;;  %9925 = vst [vmem:[#allocation27_spill] sm:$0xff] %v8240_v63  ;;  %v8253_v27 = vld [vmem:[#allocation8 + $0x4d4] sm:$0xf0]  ;;  %v8255_v0 = vld [vmem:[#allocation8 + $0x550] sm:$0xf]  ;;  %v8263_v9 = vmul.f32 %v8007_v28, %v8007_v28  ;;  %v217_v52 = vadd.f32 %v216_v41, %v8037_v26  ;;  %v8281_v28 = vmul.f32 %v8229_v34, %v8229_v34  ;;  %vm9953_vm3 = vmmov %vm9919_vm0 }
  0x90   :  { %9926 = vst [vmem:[#allocation28_spill] sm:$0xff] %v8247_v16  ;;  %v8276_v1 = vld [vmem:[#allocation8 + $0x5d4] sm:$0xf0]  ;;  %v212_v42 = vrot.slane %v211_v55, 1  ;;  %v8291_v35 = vld [vmem:[#allocation8 + $0x440] sm:$0xf] }
  0x91   :  { %9927 = vst [vmem:[#allocation29_spill] sm:$0xff] %v8251_v58  ;;  %v924_v33 = vsel %vm9854_vm4, %v899_v53, %v900_v51  ;;  %v8293_v26 = vld [vmem:[#allocation8 + $0x444] sm:$0xf0]  ;;  %v218_v41 = vrot.slane %v217_v52, 1  ;;  %v8304_v53 = vld [vmem:[#allocation8 + $0x4c0] sm:$0xf] }
  0x92   :  { %9928 = vst [vmem:[#allocation30_spill] sm:$0xff] %v8253_v27  ;;  %v926_v37 = vsel %vm9853_vm7, %v922_v18, %v924_v33  ;;  %v8298_v18 = vmul.f32 %v8231_v50, %v8231_v50  ;;  %v8341_v10 = vld [vmem:[#allocation8 + $0x540] sm:$0xf]  ;;  %v8343_v58 = vld [vmem:[#allocation8 + $0x544] sm:$0xf0] }
  0x93   :  { %9929 = vst [vmem:[#allocation31_spill] sm:$0xff] %v8255_v0  ;;  %v928_v22 = vsel %vm9852_vm10, %v920_v29, %v926_v37  ;;  %v8308_v29 = vadd.f32 %v212_v42, %v211_v55  ;;  %v8312_v37 = vmul.f32 %v8242_v62, %v8242_v62  ;;  %v156_v63 = vld [vmem:[#allocation7] sm:$0xff]  ;;  %v8358_v48 = vld [vmem:[#allocation8 + $0x530] sm:$0xf] }
  0x94   :  { %9930 = vst [vmem:[#allocation32_spill] sm:$0xff] %v8259_v43  ;;  %v8300_v33 = vmul.f32 %v928_v22, %v152_v38  ;;  %v8323_v38 = vmul.f32 %v8288_v46, %v8288_v46  ;;  %v8366_v6 = vld [vmem:[#allocation8 + $0x5b0] sm:$0xf] }
  0x95   :  { %9931 = vst [vmem:[#allocation33_spill] sm:$0xff] %v8263_v9 }
  0x96   :  { %9932 = vst [vmem:[#allocation34_spill] sm:$0xff] %v8267_v23  ;;  %v8306_v23 = vld [vmem:[#allocation8 + $0x4c4] sm:$0xf0]  ;;  %v954_v51 = vperm.slane %v8300_v33, 0  ;;  %v955_v42 = vperm.slane %v8300_v33, 1  ;;  %v956_v55 = vperm.slane %v8300_v33, 2 }
  0x97   :  { %9935 = vst [vmem:[#allocation37_spill] sm:$0xff] %v8276_v1  ;;  %v8316_v1 = vadd.f32 %v218_v41, %v217_v52  ;;  %v959_v52 = vperm.slane %v8300_v33, 5  ;;  %v960_v41 = vperm.slane %v8300_v33, 6 }
  0x98   :  { %9936 = vst [vmem:[#allocation38_spill] sm:$0xff] %v8281_v28  ;;  %v222_v28 = vrot.slane %v8047_v36, 2  ;;  %v1005_v21 = vmul.f32 %v955_v42, %v7938_v56 }
  0x99   :  { %9937 = vst [vmem:[#allocation39_spill] sm:$0xff] %v8291_v35  ;;  %v1009_v35 = vmul.f32 %v959_v52, %v7950_v25  ;;  %v8352_v25 = vld [vmem:[#allocation8 + $0x434] sm:$0xf0] }
  0x9a   :  { %9938 = vst [vmem:[#allocation40_spill] sm:$0xff] %v8293_v26  ;;  %v8319_v22 = vadd.f32 %v222_v28, %v8047_v36  ;;  %v961_v36 = vperm.slane %v8300_v33, 7  ;;  %v1004_v28 = vmul.f32 %v954_v51, %v7935_v40  ;;  %v1010_v26 = vmul.f32 %v960_v41, %v7953_v14  ;;  %v8347_v40 = vld [vmem:[#allocation8 + $0x5c4] sm:$0xf0]  ;;  %v8354_v14 = vld [vmem:[#allocation8 + $0x4b0] sm:$0xf] }
  0x9b   :  { %9939 = vst [vmem:[#allocation41_spill] sm:$0xff] %v8298_v18  ;;  %v958_v18 = vperm.slane %v8300_v33, 4  ;;  %v1053_v56 = vrot.slane %v1005_v21, 7  ;;  %v1057_v43 = vrot.slane %v1009_v35, 3 }
  0x9c   :  { %9940 = vst [vmem:[#allocation42_spill] sm:$0xff] %v8304_v53  ;;  %v1011_v0 = vmul.f32 %v961_v36, %v7956_v12  ;;  %v8356_v12 = vld [vmem:[#allocation8 + $0x4b4] sm:$0xf0]  ;;  %v1058_v16 = vrot.slane %v1010_v26, 2 }
  0x9d   :  { %9941 = vst [vmem:[#allocation43_spill] sm:$0xff] %v8306_v23  ;;  %v1008_v23 = vmul.f32 %v958_v18, %v7947_v13  ;;  %v8350_v13 = vld [vmem:[#allocation8 + $0x430] sm:$0xf]  ;;  %v1074_v21 = vsel %vm9947_vm1, %v1004_v28, %v1053_v56  ;;  %v8374_v28 = vld [vmem:[#allocation8 + $0x420] sm:$0xf] }
  0x9e   :  { %9942 = vst [vmem:[#allocation44_spill] sm:$0xff] %v8312_v37  ;;  %v957_v37 = vperm.slane %v8300_v33, 3  ;;  %v8345_v33 = vld [vmem:[#allocation8 + $0x5c0] sm:$0xf]  ;;  %v1059_v32 = vrot.slane %v1011_v0, 1 }
  0x9f   :  { %9943 = vst [vmem:[#allocation45_spill] sm:$0xff] %v8316_v1  ;;  %v1056_v9 = vrot.slane %v1008_v23, 4  ;;  %v8368_v1 = vld [vmem:[#allocation8 + $0x5b4] sm:$0xf0] }
  0xa0   :  { %9944 = vst [vmem:[#allocation46_spill] sm:$0xff] %v8323_v38  ;;  %v1006_v38 = vmul.f32 %v956_v55, %v7941_v57  ;;  %v1007_v53 = vmul.f32 %v957_v37, %v7944_v47  ;;  %v9945_v47 = vld [vmem:[#allocation22_spill] sm:$0xff]  ;;  %v1078_v23 = vsel %vm9854_vm4, %v1058_v16, %v1059_v32  ;;  %v1105_v26 = vmul.f32 %v957_v37, %v7825_v3  ;;  %v8390_v3 = vld [vmem:[#allocation8 + $0x524] sm:$0xf0] }
  0xa1   :  { %v1102_v19 = vmul.f32 %v954_v51, %v9945_v47  ;;  %9946 = vst [vmem:[#allocation22_spill] sm:$0xff] %v8358_v48  ;;  %v9949_v51 = vld [vmem:[#allocation23_spill] sm:$0xff]  ;;  %v1104_v47 = vmul.f32 %v956_v55, %v7823_v2  ;;  %v1077_v0 = vsel %vm9855_vm15, %v1056_v9, %v1057_v43  ;;  %v1106_v43 = vmul.f32 %v958_v18, %v7832_v15  ;;  %v8388_v32 = vld [vmem:[#allocation8 + $0x520] sm:$0xf] }
  0xa2   :  { %v1054_v57 = vrot.slane %v1006_v38, 6  ;;  %v1055_v27 = vrot.slane %v1007_v53, 5  ;;  %v1103_v38 = vmul.f32 %v955_v42, %v9949_v51  ;;  %9950 = vst [vmem:[#allocation23_spill] sm:$0xff] %v8364_v45  ;;  %v8378_v42 = vld [vmem:[#allocation8 + $0x4a0] sm:$0xf]  ;;  %v1079_v2 = vsel %vm9853_vm7, %v1077_v0, %v1078_v23 }
  0xa3   :  { %9951 = vst [vmem:[#allocation47_spill] sm:$0xff] %v8366_v6  ;;  %v8386_v9 = vld [vmem:[#allocation8 + $0x4a4] sm:$0xf0]  ;;  %v1108_v37 = vmul.f32 %v960_v41, %v7836_v24  ;;  %v1107_v51 = vmul.f32 %v959_v52, %v7834_v20  ;;  %v1109_v0 = vmul.f32 %v961_v36, %v7845_v5  ;;  %v8410_v20 = vld [vmem:[#allocation8 + $0x5a0] sm:$0xf] }
  0xa4   :  { %v1075_v53 = vsel %vm9948_vm2, %v1054_v57, %v1055_v27  ;;  %9952 = vst [vmem:[#allocation48_spill] sm:$0xff] %v8368_v1  ;;  %v8376_v27 = vld [vmem:[#allocation8 + $0x424] sm:$0xf0]  ;;  %v8414_v52 = vld [vmem:[#allocation8 + $0x410] sm:$0xf] }
  0xa5   :  { %v1076_v35 = vsel %vm9953_vm3, %v1074_v21, %v1075_v53  ;;  %9954 = vst [vmem:[#allocation49_spill] sm:$0xff] %v8374_v28  ;;  %v8412_v5 = vld [vmem:[#allocation8 + $0x5a4] sm:$0xf0]  ;;  %v8416_v36 = vld [vmem:[#allocation8 + $0x414] sm:$0xf0] }
  0xa6   :  { %9955 = vst [vmem:[#allocation50_spill] sm:$0xff] %v8376_v27  ;;  %v1080_v16 = vsel %vm9852_vm10, %v1076_v35, %v1079_v2  ;;  %v8418_v41 = vld [vmem:[#allocation8 + $0x490] sm:$0xf]  ;;  %v8420_v24 = vld [vmem:[#allocation8 + $0x494] sm:$0xf0] }
  0xa7   :  { %9956 = vst [vmem:[#allocation51_spill] sm:$0xff] %v8378_v42  ;;  %v1098_v53 = vsub.f32 %v156_v63, %v1080_v16  ;;  %v8424_v42 = vld [vmem:[#allocation8 + $0x514] sm:$0xf0]  ;;  %v8430_v28 = vld [vmem:[#allocation8 + $0x400] sm:$0xf] }
  0xa8   :  { %9957 = vst [vmem:[#allocation52_spill] sm:$0xff] %v8386_v9  ;;  %v8428_v9 = vld [vmem:[#allocation8 + $0x594] sm:$0xf0]  ;;  %v8432_v27 = vld [vmem:[#allocation8 + $0x404] sm:$0xf0] }
  0xa9   :  { %9958 = vst [vmem:[#allocation53_spill] sm:$0xff] %v8388_v32  ;;  %v1131_v63 = vperm.slane %v1098_v53, 0  ;;  %v1132_v23 = vperm.slane %v1098_v53, 1  ;;  %v1133_v2 = vperm.slane %v1098_v53, 2  ;;  %v1134_v16 = vperm.slane %v1098_v53, 3 }
  0xaa   :  { %9959 = vst [vmem:[#allocation54_spill] sm:$0xff] %v8390_v3  ;;  %v1135_v15 = vperm.slane %v1098_v53, 4  ;;  %v1137_v21 = vperm.slane %v1098_v53, 6  ;;  %v1136_v18 = vperm.slane %v1098_v53, 5  ;;  %v1138_v57 = vperm.slane %v1098_v53, 7 }
  0xab   :  { %v1181_v35 = vadd.f32 %v1131_v63, %v1102_v19  ;;  %v1182_v56 = vadd.f32 %v1132_v23, %v1103_v38  ;;  %v1183_v55 = vadd.f32 %v1133_v2, %v1104_v47  ;;  %v1184_v32 = vadd.f32 %v1134_v16, %v1105_v26  ;;  %v8422_v3 = vld [vmem:[#allocation8 + $0x510] sm:$0xf]  ;;  %9960 = vst [vmem:[#allocation55_spill] sm:$0xff] %v8430_v28  ;;  %v8434_v19 = vld [vmem:[#allocation8 + $0x480] sm:$0xf] }
  0xac   :  { %v8426_v53 = vld [vmem:[#allocation8 + $0x590] sm:$0xf]  ;;  %9961 = vst [vmem:[#allocation56_spill] sm:$0xff] %v8432_v27  ;;  %v1185_v6 = vadd.f32 %v1135_v15, %v1106_v43  ;;  %v1187_v1 = vadd.f32 %v1137_v21, %v1108_v37  ;;  %v1186_v48 = vadd.f32 %v1136_v18, %v1107_v51  ;;  %v1188_v45 = vadd.f32 %v1138_v57, %v1109_v0  ;;  %v8436_v38 = vld [vmem:[#allocation8 + $0x484] sm:$0xf0] }
  0xad   :  { %v8438_v47 = vld [vmem:[#allocation8 + $0x500] sm:$0xf]  ;;  %v8440_v26 = vpack.c.bf16 %v1181_v35, %v1181_v35  ;;  %v8442_v63 = vpack.c.bf16 %v1182_v56, %v1182_v56  ;;  %v8444_v23 = vpack.c.bf16 %v1183_v55, %v1183_v55  ;;  %v8446_v2 = vpack.c.bf16 %v1184_v32, %v1184_v32  ;;  %v8448_v16 = vld [vmem:[#allocation8 + $0x504] sm:$0xf0]  ;;  %v8462_v56 = vld [vmem:[#allocation8 + $0x670] sm:$0xf] }
  0xae   :  { %v8450_v43 = vld [vmem:[#allocation8 + $0x580] sm:$0xf]  ;;  %v8452_v37 = vld [vmem:[#allocation8 + $0x584] sm:$0xf0]  ;;  %v8454_v57 = vpack.c.bf16 %v1185_v6, %v1185_v6  ;;  %v8456_v21 = vpack.c.bf16 %v1187_v1, %v1187_v1  ;;  %v8458_v15 = vpack.c.bf16 %v1186_v48, %v1186_v48  ;;  %v8460_v18 = vpack.c.bf16 %v1188_v45, %v1188_v45  ;;  %9970 = vst [vmem:[#allocation65_spill] sm:$0xff] %v8462_v56  ;;  %v9991_v1 = vld [vmem:[#allocation32_spill] sm:$0xff] }
  0xaf   :  { %9962 = vst [vmem:[#allocation57_spill] sm:$0xff] %v8440_v26  ;;  %v8464_v55 = vld [vmem:[#allocation8 + $0x674] sm:$0xf0]  ;;  %v8466_v32 = vld [vmem:[#allocation8 + $0x6f0] sm:$0xf]  ;;  %3600 = vmatmul.bf16.vlgmr.msra.gmra.mxu0 %v8440_v26  ;;  %3613 = vmatmul.bf16.vlgmr.msra.gmra.mxu1 %v8442_v63  ;;  %v226_v28 = vrot.slane %v8205_v61, 4  ;;  %v9979_v27 = vor.u32 %v8169_v44, %v8167_v17 }
  0xb0   :  { %9963 = vst [vmem:[#allocation58_spill] sm:$0xff] %v8442_v63  ;;  %v8476_v48 = vld [vmem:[#allocation8 + $0x6f4] sm:$0xf0]  ;;  %v8478_v51 = vld [vmem:[#allocation8 + $0x770] sm:$0xf]  ;;  %3626 = vmatmul.bf16.vlgmr.msra.gmra.mxu2 %v8444_v23  ;;  %3639 = vmatmul.bf16.vlgmr.msra.gmra.mxu3 %v8446_v2  ;;  %v224_v63 = vrot.slane %v8319_v22, 1 }
  0xb1   :  { %9964 = vst [vmem:[#allocation59_spill] sm:$0xff] %v8444_v23  ;;  %v8480_v0 = vld [vmem:[#allocation8 + $0x774] sm:$0xf0]  ;;  %v8490_v45 = vld [vmem:[#allocation8 + $0x7f0] sm:$0xf]  ;;  %v9977_v23 = vor.u32 %v8145_v59, %v8143_v60  ;;  %3722 = vmatpush.bf16.msra.mxu2 %v9979_v27  ;;  %v9980_v60 = vor.u32 %v8177_v30, %v8175_v31  ;;  %v227_v44 = vadd.f32 %v226_v28, %v8205_v61  ;;  %v238_v31 = vrot.slane %v8231_v50, 4 }
  0xb2   :  { %9965 = vst [vmem:[#allocation60_spill] sm:$0xff] %v8446_v2  ;;  %v8492_v26 = vld [vmem:[#allocation8 + $0x7f4] sm:$0xf0]  ;;  %v9978_v2 = vor.u32 %v8161_v39, %v8159_v49  ;;  %v225_v17 = vadd.f32 %v224_v63, %v8319_v22  ;;  %v244_v27 = vrot.slane %v8242_v62, 4  ;;  %v8531_v39 = vmul.f32 %v7932_v11, %v8308_v29  ;;  %v9984_v29 = vld [vmem:[#allocation20_spill] sm:$0xff]  ;;  %v10006_v56 = vld [vmem:[#allocation39_spill] sm:$0xff] }
  0xb3   :  { %9966 = vst [vmem:[#allocation61_spill] sm:$0xff] %v8454_v57  ;;  %3696 = vmatpush.bf16.msra.mxu0 %v9977_v23  ;;  %3735 = vmatpush.bf16.msra.mxu3 %v9980_v60  ;;  %v232_v23 = vrot.slane %v8229_v34, 4  ;;  %v250_v60 = vrot.slane %v8288_v46, 4  ;;  %v9981_v49 = vor.u32 %v8195_v4, %v8193_v54  ;;  %v9982_v22 = vor.u32 %v8203_v8, %v8201_v7  ;;  %v9987_v54 = vld [vmem:[#allocation25_spill] sm:$0xff]  ;;  %v9988_v4 = vld [vmem:[#allocation24_spill] sm:$0xff] }
  0xb4   :  { %9967 = vst [vmem:[#allocation62_spill] sm:$0xff] %v8456_v21  ;;  %3709 = vmatpush.bf16.msra.mxu1 %v9978_v2  ;;  %v228_v61 = vrot.slane %v227_v44, 2  ;;  %v239_v28 = vadd.f32 %v238_v31, %v8231_v50  ;;  %v9985_v2 = vld [vmem:[#allocation21_spill] sm:$0xff]  ;;  %v245_v8 = vadd.f32 %v244_v27, %v8242_v62  ;;  %v9990_v31 = vld [vmem:[#allocation28_spill] sm:$0xff]  ;;  %v9996_v62 = vld [vmem:[#allocation30_spill] sm:$0xff] }
  0xb5   :  { %9968 = vst [vmem:[#allocation63_spill] sm:$0xff] %v8458_v15  ;;  %v233_v30 = vadd.f32 %v232_v23, %v8229_v34  ;;  %v9983_v34 = vld [vmem:[#allocation45_spill] sm:$0xff]  ;;  %v8545_v23 = vmul.f32 %v7932_v11, %v225_v17  ;;  %v9986_v59 = vor.u32 %v9984_v29, %v9985_v2  ;;  %v251_v50 = vadd.f32 %v250_v60, %v8288_v46 }
  0xb6   :  { %9969 = vst [vmem:[#allocation64_spill] sm:$0xff] %v8460_v18  ;;  %v8542_v63 = vmul.f32 %v7932_v11, %v9983_v34  ;;  %v229_v34 = vadd.f32 %v228_v61, %v227_v44  ;;  %v240_v35 = vrot.slane %v239_v28, 2  ;;  %v423_v17 = vrot.slane %v9991_v1, 4  ;;  %v9992_v6 = vld [vmem:[#allocation33_spill] sm:$0xff] }
  0xb7   :  { %9971 = vst [vmem:[#allocation66_spill] sm:$0xff] %v8466_v32  ;;  %3697 = vmatpush.bf16.msra.mxu0 %v9981_v49  ;;  %3723 = vmatpush.bf16.msra.mxu2 %v9986_v59  ;;  %v9989_v49 = vor.u32 %v9987_v54, %v9988_v4  ;;  %v234_v7 = vrot.slane %v233_v30, 2  ;;  %v246_v2 = vrot.slane %v245_v8, 2  ;;  %v252_v59 = vrot.slane %v251_v50, 2  ;;  %v9993_v54 = vld [vmem:[#allocation27_spill] sm:$0xff]  ;;  %v9994_v4 = vld [vmem:[#allocation26_spill] sm:$0xff] }
  0xb8   :  { %9972 = vst [vmem:[#allocation67_spill] sm:$0xff] %v8476_v48  ;;  %3710 = vmatpush.bf16.msra.mxu1 %v9982_v22  ;;  %v417_v22 = vrot.slane %v9990_v31, 4  ;;  %v9997_v27 = vld [vmem:[#allocation29_spill] sm:$0xff]  ;;  %v230_v60 = vrot.slane %v229_v34, 1  ;;  %v241_v44 = vadd.f32 %v240_v35, %v239_v28  ;;  %v424_v61 = vadd.f32 %v423_v17, %v9991_v1 }
  0xb9   :  { %9973 = vst [vmem:[#allocation68_spill] sm:$0xff] %v8478_v51  ;;  %3736 = vmatpush.bf16.msra.mxu3 %v9989_v49  ;;  %v9995_v49 = vor.u32 %v9993_v54, %v9994_v4  ;;  %v9998_v46 = vor.u32 %v9996_v62, %v9997_v27  ;;  %v10002_v32 = vld [vmem:[#allocation37_spill] sm:$0xff]  ;;  %v247_v4 = vadd.f32 %v246_v2, %v245_v8 }
  0xba   :  { %9974 = vst [vmem:[#allocation69_spill] sm:$0xff] %v8480_v0  ;;  %v418_v29 = vadd.f32 %v417_v22, %v9990_v31  ;;  %v9999_v0 = vld [vmem:[#allocation35_spill] sm:$0xff]  ;;  %v10003_v31 = vld [vmem:[#allocation36_spill] sm:$0xff]  ;;  %v231_v62 = vadd.f32 %v230_v60, %v229_v34  ;;  %v242_v27 = vrot.slane %v241_v44, 1  ;;  %v10011_v34 = vld [vmem:[#allocation34_spill] sm:$0xff] }
  0xbb   :  { %9975 = vst [vmem:[#allocation70_spill] sm:$0xff] %v8490_v45  ;;  %v429_v45 = vrot.slane %v9992_v6, 4  ;;  %3698 = vmatpush.bf16.msra.mxu0 %v9995_v49  ;;  %v10004_v22 = vor.u32 %v10002_v32, %v10003_v31  ;;  %v253_v49 = vadd.f32 %v252_v59, %v251_v50  ;;  %v248_v1 = vrot.slane %v247_v4, 1 }
  0xbc   :  { %9976 = vst [vmem:[#allocation71_spill] sm:$0xff] %v8492_v26  ;;  %v235_v26 = vadd.f32 %v234_v7, %v233_v30  ;;  %3711 = vmatpush.bf16.msra.mxu1 %v9998_v46  ;;  %v10000_v30 = vld [vmem:[#allocation31_spill] sm:$0xff]  ;;  %v419_v48 = vrot.slane %v418_v29, 2  ;;  %v425_v46 = vrot.slane %v424_v61, 2  ;;  %v243_v31 = vadd.f32 %v242_v27, %v241_v44 }
  0xbd   :  { %v430_v51 = vadd.f32 %v429_v45, %v9992_v6  ;;  %v10001_v7 = vor.u32 %v9999_v0, %v10000_v30  ;;  %3737 = vmatpush.bf16.msra.mxu3 %v10004_v22  ;;  %v254_v17 = vrot.slane %v253_v49, 1  ;;  %v10005_v45 = vld [vmem:[#allocation40_spill] sm:$0xff]  ;;  %v10008_v30 = vld [vmem:[#allocation43_spill] sm:$0xff]  ;;  %v8580_v8 = vmul.f32 %v7932_v11, %v231_v62 }
  0xbe   :  { %v236_v54 = vrot.slane %v235_v26, 1  ;;  %v420_v6 = vadd.f32 %v419_v48, %v418_v29  ;;  %v10007_v0 = vor.u32 %v10005_v45, %v10006_v56  ;;  %v426_v50 = vadd.f32 %v425_v46, %v424_v61 }
  0xbf   :  { %3724 = vmatpush.bf16.msra.mxu2 %v10001_v7  ;;  %v431_v35 = vrot.slane %v430_v51, 2  ;;  %v10009_v7 = vld [vmem:[#allocation42_spill] sm:$0xff]  ;;  %v435_v2 = vrot.slane %v10011_v34, 4  ;;  %v10013_v48 = vor.u32 %v8347_v40, %v8345_v33  ;;  %v249_v56 = vadd.f32 %v248_v1, %v247_v4  ;;  %3652 = vmatmul.bf16.vlgmr.msrb.gmra.mxu0 %v8454_v57  ;;  %v10018_v1 = vld [vmem:[#allocation23_spill] sm:$0xff] }
  0xc0   :  { %v237_v28 = vadd.f32 %v236_v54, %v235_v26  ;;  %3699 = vmatpush.bf16.msra.mxu0 %v10007_v0  ;;  %v10010_v32 = vor.u32 %v10008_v30, %v10009_v7  ;;  %v10012_v26 = vor.u32 %v8343_v58, %v8341_v10  ;;  %v255_v59 = vadd.f32 %v254_v17, %v253_v49  ;;  %v10014_v54 = vld [vmem:[#allocation38_spill] sm:$0xff]  ;;  %v10022_v0 = vld [vmem:[#allocation47_spill] sm:$0xff] }
  0xc1   :  { %3738 = vmatpush.bf16.msra.mxu3 %v10013_v48  ;;  %v421_v60 = vrot.slane %v420_v6, 1  ;;  %3665 = vmatmul.bf16.vlgmr.msrb.gmra.mxu1 %v8458_v15  ;;  %v8595_v44 = vmul.f32 %v7932_v11, %v243_v31  ;;  %v427_v61 = vrot.slane %v426_v50, 1  ;;  %v432_v10 = vadd.f32 %v431_v35, %v430_v51  ;;  %v10017_v35 = vld [vmem:[#allocation41_spill] sm:$0xff]  ;;  %v10019_v17 = vld [vmem:[#allocation22_spill] sm:$0xff] }
  0xc2   :  { %3712 = vmatpush.bf16.msra.mxu1 %v10010_v32  ;;  %v8590_v29 = vmul.f32 %v7932_v11, %v237_v28  ;;  %v436_v58 = vadd.f32 %v435_v2, %v10011_v34  ;;  %3678 = vmatmul.bf16.vlgmr.msrb.gmra.mxu2 %v8456_v21  ;;  %v8601_v33 = vmul.f32 %v7932_v11, %v249_v56  ;;  %v441_v4 = vrot.slane %v10014_v54, 4  ;;  %v10025_v32 = vld [vmem:[#allocation46_spill] sm:$0xff] }
  0xc3   :  { %3725 = vmatpush.bf16.msra.mxu2 %v10012_v26  ;;  %3691 = vmatmul.bf16.vlgmr.msrb.gmra.mxu3 %v8460_v18  ;;  %v8604_v40 = vmul.f32 %v7932_v11, %v255_v59  ;;  %v422_v22 = vadd.f32 %v421_v60, %v420_v6  ;;  %v10015_v49 = vor.u32 %v8352_v25, %v8350_v13  ;;  %v433_v27 = vrot.slane %v432_v10, 1  ;;  %v10021_v6 = vld [vmem:[#allocation48_spill] sm:$0xff]  ;;  %v10026_v60 = vld [vmem:[#allocation50_spill] sm:$0xff]  ;;  %v9198_v18 = vld [vmem:[#allocation8 + $0xa74] sm:$0xf0] }
  0xc4   :  { %v10016_v51 = vor.u32 %v8356_v12, %v8354_v14  ;;  %v428_v62 = vadd.f32 %v427_v61, %v426_v50  ;;  %v437_v46 = vrot.slane %v436_v58, 2  ;;  %v447_v28 = vrot.slane %v10017_v35, 4  ;;  %v10024_v25 = vld [vmem:[#allocation44_spill] sm:$0xff]  ;;  %v10027_v61 = vld [vmem:[#allocation49_spill] sm:$0xff] }
  0xc5   :  { %3700 = vmatpush.bf16.msra.mxu0 %v10015_v49  ;;  %v10020_v45 = vor.u32 %v10018_v1, %v10019_v17  ;;  %v10023_v30 = vor.u32 %v10021_v6, %v10022_v0  ;;  %v442_v13 = vadd.f32 %v441_v4, %v10014_v54  ;;  %v453_v7 = vrot.slane %v10024_v25, 4  ;;  %v10029_v4 = vld [vmem:[#allocation52_spill] sm:$0xff] }
  0xc6   :  { %3713 = vmatpush.bf16.msra.mxu1 %v10016_v51  ;;  %v459_v14 = vrot.slane %v10025_v32, 4  ;;  %v528_v12 = vmul.f32 %v422_v22, %v7932_v11  ;;  %v434_v31 = vadd.f32 %v433_v27, %v432_v10  ;;  %v438_v50 = vadd.f32 %v437_v46, %v436_v58  ;;  %v10030_v22 = vld [vmem:[#allocation51_spill] sm:$0xff]  ;;  %v10032_v27 = vld [vmem:[#allocation54_spill] sm:$0xff]  ;;  %v10033_v46 = vld [vmem:[#allocation53_spill] sm:$0xff] }
  0xc7   :  { %3726 = vmatpush.bf16.msra.mxu2 %v10020_v45  ;;  %3739 = vmatpush.bf16.msra.mxu3 %v10023_v30  ;;  %v448_v34 = vadd.f32 %v447_v28, %v10017_v35  ;;  %v529_v2 = vmul.f32 %v428_v62, %v7932_v11  ;;  %v443_v26 = vrot.slane %v442_v13, 2  ;;  %v454_v48 = vadd.f32 %v453_v7, %v10024_v25 }
  0xc8   :  { %v460_v56 = vadd.f32 %v459_v14, %v10025_v32  ;;  %v553_v59 = vmul.f32 %v8531_v39, %v8531_v39  ;;  %v10028_v54 = vor.u32 %v10026_v60, %v10027_v61  ;;  %v10031_v10 = vor.u32 %v10029_v4, %v10030_v22 }
  0xc9   :  { %v439_v58 = vrot.slane %v438_v50, 1  ;;  %v449_v49 = vrot.slane %v448_v34, 2  ;;  %v530_v51 = vmul.f32 %v434_v31, %v7932_v11  ;;  %v554_v62 = vmul.f32 %v8542_v63, %v8542_v63 }
  0xca   :  { %3701 = vmatpush.bf16.msra.mxu0 %v10028_v54  ;;  %3714 = vmatpush.bf16.msra.mxu1 %v10031_v10  ;;  %v10034_v35 = vor.u32 %v10032_v27, %v10033_v46  ;;  %v10035_v28 = vor.u32 %v8412_v5, %v8410_v20  ;;  %v444_v1 = vadd.f32 %v443_v26, %v442_v13  ;;  %v455_v17 = vrot.slane %v454_v48, 2 }
  0xcb   :  { %v461_v45 = vrot.slane %v460_v56, 2  ;;  %v555_v6 = vmul.f32 %v8545_v23, %v8545_v23  ;;  %v440_v0 = vadd.f32 %v439_v58, %v438_v50  ;;  %v450_v30 = vadd.f32 %v449_v49, %v448_v34 }
  0xcc   :  { %3727 = vmatpush.bf16.msra.mxu2 %v10034_v35  ;;  %3740 = vmatpush.bf16.msra.mxu3 %v10035_v28  ;;  %v556_v25 = vmul.f32 %v8580_v8, %v8580_v8  ;;  %v557_v7 = vmul.f32 %v8590_v29, %v8590_v29  ;;  %v445_v32 = vrot.slane %v444_v1, 1  ;;  %v456_v14 = vadd.f32 %v455_v17, %v454_v48  ;;  %v10046_v28 = vld [vmem:[#allocation65_spill] sm:$0xff]  ;;  %v10048_v17 = vld [vmem:[#allocation67_spill] sm:$0xff] }
  0xcd   :  { %v462_v31 = vadd.f32 %v461_v45, %v460_v56  ;;  %v558_v20 = vmul.f32 %v8595_v44, %v8595_v44  ;;  %v10036_v5 = vor.u32 %v8416_v36, %v8414_v52  ;;  %v10037_v13 = vor.u32 %v8420_v24, %v8418_v41  ;;  %v10049_v45 = vld [vmem:[#allocation66_spill] sm:$0xff] }
  0xce   :  { %v451_v50 = vrot.slane %v450_v30, 1  ;;  %v531_v34 = vmul.f32 %v440_v0, %v7932_v11  ;;  %v559_v26 = vmul.f32 %v8601_v33, %v8601_v33  ;;  %v560_v48 = vmul.f32 %v8604_v40, %v8604_v40  ;;  %v10054_v0 = vld [vmem:[#allocation71_spill] sm:$0xff] }
  0xcf   :  { %3702 = vmatpush.bf16.msra.mxu0 %v10036_v5  ;;  %3715 = vmatpush.bf16.msra.mxu1 %v10037_v13  ;;  %v10038_v56 = vor.u32 %v8424_v42, %v8422_v3  ;;  %v10039_v52 = vor.u32 %v8428_v9, %v8426_v53  ;;  %v446_v36 = vadd.f32 %v445_v32, %v444_v1  ;;  %v457_v24 = vrot.slane %v456_v14, 1  ;;  %v10040_v42 = vld [vmem:[#allocation56_spill] sm:$0xff]  ;;  %v10041_v3 = vld [vmem:[#allocation55_spill] sm:$0xff] }
  0xd0   :  { %v463_v41 = vrot.slane %v462_v31, 1  ;;  %v578_v60 = vsub.f32 %v528_v12, %v553_v59  ;;  %v452_v61 = vadd.f32 %v451_v50, %v450_v30  ;;  %v579_v54 = vsub.f32 %v529_v2, %v554_v62  ;;  %v10055_v30 = vld [vmem:[#allocation70_spill] sm:$0xff] }
  0xd1   :  { %3728 = vmatpush.bf16.msra.mxu2 %v10038_v56  ;;  %3741 = vmatpush.bf16.msra.mxu3 %v10039_v52  ;;  %v580_v4 = vsub.f32 %v530_v51, %v555_v6  ;;  %v581_v22 = vsub.f32 %v531_v34, %v556_v25  ;;  %v458_v10 = vadd.f32 %v457_v24, %v456_v14 }
  0xd2   :  { %v464_v58 = vadd.f32 %v463_v41, %v462_v31  ;;  %v532_v49 = vmul.f32 %v446_v36, %v7932_v11  ;;  %v8671_v27 = vadd.f32 1e-05, %v578_v60  ;;  %v10042_v46 = vor.u32 %v10040_v42, %v10041_v3 }
  0xd3   :  { %v10043_v9 = vor.u32 %v8436_v38, %v8434_v19  ;;  %v533_v53 = vmul.f32 %v452_v61, %v7932_v11  ;;  %v8680_v12 = vadd.f32 1e-05, %v579_v54  ;;  %v8682_v2 = vadd.f32 1e-05, %v580_v4 }
  0xd4   :  { %3703 = vmatpush.bf16.msra.mxu0 %v10042_v46  ;;  %v8684_v59 = vadd.f32 1e-05, %v581_v22  ;;  %v10044_v51 = vor.u32 %v8448_v16, %v8438_v47  ;;  %v10045_v62 = vor.u32 %v8452_v37, %v8450_v43  ;;  %v534_v35 = vmul.f32 %v458_v10, %v7932_v11  ;;  %v10051_v16 = vld [vmem:[#allocation69_spill] sm:$0xff]  ;;  %v10052_v43 = vld [vmem:[#allocation68_spill] sm:$0xff] }
  0xd5   :  { %3716 = vmatpush.bf16.msra.mxu1 %v10043_v9  ;;  %v535_v19 = vmul.f32 %v464_v58, %v7932_v11  ;;  %v582_v38 = vsub.f32 %v532_v49, %v557_v7  ;;  %7348 = vrsqrt.f32 %v8671_v27  ;;  %v10047_v1 = vor.u32 %v8464_v55, %v10046_v28 }
  0xd6   :  { %3729 = vmatpush.bf16.msra.mxu2 %v10044_v51  ;;  %3742 = vmatpush.bf16.msra.mxu3 %v10045_v62  ;;  %v10050_v6 = vor.u32 %v10048_v17, %v10049_v45  ;;  %v583_v47 = vsub.f32 %v533_v53, %v558_v20  ;;  %7350 = vrsqrt.f32 %v8680_v12  ;;  %v10053_v37 = vor.u32 %v10051_v16, %v10052_v43 }
  0xd7   :  { %v10056_v25 = vor.u32 %v10054_v0, %v10055_v30  ;;  %v584_v7 = vsub.f32 %v534_v35, %v559_v26  ;;  %v585_v32 = vsub.f32 %v535_v19, %v560_v48  ;;  %v8708_v14 = vadd.f32 1e-05, %v582_v38 }
  0xd8   :  { %3748 = vmatpush.bf16.msrb.mxu0 %v10047_v1  ;;  %7352 = vrsqrt.f32 %v8682_v2  ;;  %v8711_v55 = vadd.f32 1e-05, %v583_v47  ;;  %vm706_vm5 = vweird.f32 %v8671_v27  ;;  %vm716_vm6 = vweird.f32 %v8680_v12 }
  0xd9   :  { %3761 = vmatpush.bf16.msrb.mxu1 %v10050_v6  ;;  %7354 = vrsqrt.f32 %v8684_v59  ;;  %v8714_v31 = vadd.f32 1e-05, %v584_v7  ;;  %v8716_v20 = vadd.f32 1e-05, %v585_v32  ;;  %vm726_vm8 = vweird.f32 %v8682_v2 }
  0xda   :  { %3774 = vmatpush.bf16.msrb.mxu2 %v10053_v37  ;;  %3787 = vmatpush.bf16.msrb.mxu3 %v10056_v25  ;;  %7356 = vrsqrt.f32 %v8708_v14  ;;  %vm736_vm9 = vweird.f32 %v8684_v59  ;;  %vm746_vm11 = vweird.f32 %v8708_v14  ;;  %vm756_vm12 = vweird.f32 %v8711_v55 }
  0xdb   :  { %7358 = vrsqrt.f32 %v8711_v55  ;;  %v8720_v5 = vpop.eup %7348  ;;  %vm766_vm0 = vweird.f32 %v8714_v31 }
  0xdc   :  { %7360 = vrsqrt.f32 %v8714_v31  ;;  %v8724_v13 = vpop.eup %7350  ;;  %v701_v50 = vmul.f32 %v8720_v5, %v8671_v27  ;;  %vm707_vm13 = vweird.f32 %v8720_v5 }
  0xdd   :  { %7362 = vrsqrt.f32 %v8716_v20  ;;  %v711_v26 = vmul.f32 %v8724_v13, %v8680_v12  ;;  %vm717_vm14 = vweird.f32 %v8724_v13  ;;  %vm8775_vm4 = vmor %vm706_vm5, %vm707_vm13  ;;  %vm10076_vm13 = vcmask 1044484  }
  0xde   :  { %v8731_v34 = vpop.eup %7352  ;;  %v702_v56 = vmul.f32 %v8720_v5, %v701_v50  ;;  %vm8786_vm7 = vmor %vm716_vm6, %vm717_vm14  ;;  %v5773_v50 = vld [vmem:[#allocation8 + $0x660] sm:$0xf]  ;;  %vm10077_vm14 = vcmask 1041408  }
  0xdf   :  { %v8738_v48 = vpop.eup %7354  ;;  %v721_v52 = vmul.f32 %v8731_v34, %v8682_v2  ;;  %v712_v24 = vmul.f32 %v8724_v13, %v711_v26  ;;  %vm727_vm1 = vweird.f32 %v8731_v34  ;;  %v7050_v26 = vld [vmem:[#allocation8 + $0x664] sm:$0xf0] }
  0xe0   :  { %v8746_v36 = vpop.eup %7356  ;;  %v731_v41 = vmul.f32 %v8738_v48, %v8684_v59  ;;  %vm737_vm2 = vweird.f32 %v8738_v48  ;;  %v703_v61 = vmul.f32 0.5, %v702_v56  ;;  %vm8796_vm5 = vmor %vm726_vm8, %vm727_vm1  ;;  %vm10079_vm1 = vcmask 1045508  }
  0xe1   :  { %v8753_v60 = vpop.eup %7358  ;;  %v722_v54 = vmul.f32 %v8731_v34, %v721_v52  ;;  %v741_v4 = vmul.f32 %v8746_v36, %v8708_v14  ;;  %vm747_vm3 = vweird.f32 %v8746_v36  ;;  %v713_v10 = vmul.f32 0.5, %v712_v24  ;;  %vm8810_vm6 = vmor %vm736_vm9, %vm737_vm2  ;;  %v5837_v24 = vld [vmem:[#allocation8 + $0x6e0] sm:$0xf] }
  0xe2   :  { %v8759_v22 = vpop.eup %7360  ;;  %v732_v58 = vmul.f32 %v8738_v48, %v731_v41  ;;  %v751_v49 = vmul.f32 %v8753_v60, %v8711_v55  ;;  %vm757_vm10 = vweird.f32 %v8753_v60  ;;  %v704_v3 = vsub.f32 1.5, %v703_v61  ;;  %v7066_v41 = vld [vmem:[#allocation8 + $0x6e4] sm:$0xf0] }
  0xe3   :  { %v8766_v42 = vpop.eup %7362  ;;  %v723_v46 = vmul.f32 0.5, %v722_v54  ;;  %v742_v9 = vmul.f32 %v8746_v36, %v741_v4  ;;  %v761_v53 = vmul.f32 %v8759_v22, %v8714_v31  ;;  %v714_v62 = vsub.f32 1.5, %v713_v10  ;;  %v5901_v10 = vld [vmem:[#allocation8 + $0x760] sm:$0xf] }
  0xe4   :  { %v733_v35 = vmul.f32 0.5, %v732_v58  ;;  %v752_v19 = vmul.f32 %v8753_v60, %v751_v49  ;;  %vm767_vm15 = vweird.f32 %v8759_v22  ;;  %v705_v38 = vmul.f32 %v8720_v5, %v704_v3  ;;  %v7082_v58 = vld [vmem:[#allocation8 + $0x764] sm:$0xf0] }
  0xe5   :  { %v724_v27 = vsub.f32 1.5, %v723_v46  ;;  %v743_v1 = vmul.f32 0.5, %v742_v9  ;;  %v762_v17 = vmul.f32 %v8759_v22, %v761_v53  ;;  %v715_v45 = vmul.f32 %v8724_v13, %v714_v62  ;;  %vm8848_vm9 = vmor %vm766_vm0, %vm767_vm15  ;;  %v5965_v9 = vld [vmem:[#allocation8 + $0x7e0] sm:$0xf]  ;;  %v7098_v53 = vld [vmem:[#allocation8 + $0x7e4] sm:$0xf0] }
  0xe6   :  { %v734_v47 = vsub.f32 1.5, %v733_v35  ;;  %v753_v12 = vmul.f32 0.5, %v752_v19  ;;  %v771_v16 = vmul.f32 %v8766_v42, %v8716_v20  ;;  %v709_v43 = vsel %vm8775_vm4, %v8720_v5, %v705_v38  ;;  %vm8822_vm4 = vmor %vm746_vm11, %vm747_vm3  ;;  %v5765_v62 = vld [vmem:[#allocation8 + $0x650] sm:$0xf]  ;;  %v7048_v35 = vld [vmem:[#allocation8 + $0x654] sm:$0xf0] }
  0xe7   :  { %v725_v37 = vmul.f32 %v8731_v34, %v724_v27  ;;  %v744_v0 = vsub.f32 1.5, %v743_v1  ;;  %v763_v30 = vmul.f32 0.5, %v762_v17  ;;  %v719_v25 = vsel %vm8786_vm7, %v8724_v13, %v715_v45  ;;  %vm8835_vm7 = vmor %vm756_vm12, %vm757_vm10  ;;  %v5829_v1 = vld [vmem:[#allocation8 + $0x6d0] sm:$0xf] }
  0xe8   :  { %v735_v7 = vmul.f32 %v8738_v48, %v734_v47  ;;  %v754_v59 = vsub.f32 1.5, %v753_v12  ;;  %v772_v5 = vmul.f32 %v8766_v42, %v771_v16  ;;  %vm777_vm8 = vweird.f32 %v8766_v42  ;;  %v7080_v12 = vld [vmem:[#allocation8 + $0x754] sm:$0xf0] }
  0xe9   :  { %v729_v56 = vsel %vm8796_vm5, %v8731_v34, %v725_v37  ;;  %v745_v13 = vmul.f32 %v8746_v36, %v744_v0  ;;  %v764_v52 = vsub.f32 1.5, %v763_v30  ;;  %v901_v4 = vrot.slane %v719_v25, 7  ;;  %v5957_v0 = vld [vmem:[#allocation8 + $0x7d0] sm:$0xf]  ;;  %v7096_v30 = vld [vmem:[#allocation8 + $0x7d4] sm:$0xf0] }
  0xea   :  { %v739_v61 = vsel %vm8810_vm6, %v8738_v48, %v735_v7  ;;  %v755_v34 = vmul.f32 %v8753_v60, %v754_v59  ;;  %v773_v54 = vmul.f32 0.5, %v772_v5  ;;  %v902_v3 = vrot.slane %v729_v56, 6  ;;  %v5757_v25 = vld [vmem:[#allocation8 + $0x640] sm:$0xf]  ;;  %v7046_v59 = vld [vmem:[#allocation8 + $0x644] sm:$0xf0]  ;;  %vm10083_vm6 = vmmov %vm10077_vm14 }
  0xeb   :  { %v749_v49 = vsel %vm8822_vm4, %v8746_v36, %v745_v13  ;;  %v765_v48 = vmul.f32 %v8759_v22, %v764_v52  ;;  %v903_v46 = vrot.slane %v739_v61, 5  ;;  %vm10071_vm15 = vweird.f32 %v8716_v20  ;;  %v7062_v5 = vld [vmem:[#allocation8 + $0x6c4] sm:$0xf0]  ;;  %v5885_v52 = vld [vmem:[#allocation8 + $0x740] sm:$0xf]  ;;  %vm10084_vm4 = vmmov %vm10076_vm13 }
  0xec   :  { %v759_v31 = vsel %vm8835_vm7, %v8753_v60, %v755_v34  ;;  %v774_v51 = vsub.f32 1.5, %v773_v54  ;;  %vm8866_vm10 = vmor %vm10071_vm15, %vm777_vm8  ;;  %v904_v38 = vrot.slane %v749_v49, 4  ;;  %v5774_v27 = vor.u32 %v7050_v26, %v5773_v50  ;;  %v7064_v60 = vld [vmem:[#allocation8 + $0x6d4] sm:$0xf0]  ;;  %v5949_v61 = vld [vmem:[#allocation8 + $0x7c0] sm:$0xf] }
  0xed   :  { %v769_v19 = vsel %vm8848_vm9, %v8759_v22, %v765_v48  ;;  %v905_v28 = vrot.slane %v759_v31, 3  ;;  %vm10074_vm11 = vcmask 1040384   ;;  %v5838_v47 = vor.u32 %v7066_v41, %v5837_v24  ;;  %v5893_v22 = vld [vmem:[#allocation8 + $0x750] sm:$0xf]  ;;  %v153_v50 = vld [vmem:[#allocation5 + $0x8] sm:$0xff]  ;;  %vm10086_vm8 = vmmov %vm10079_vm1 }
  0xee   :  { %v775_v17 = vmul.f32 %v8766_v42, %v774_v51  ;;  %v906_v45 = vrot.slane %v769_v19, 2  ;;  %v929_v6 = vsel %vm10074_vm11, %v709_v43, %v901_v4  ;;  %vm10075_vm12 = vcmask 1042434   ;;  %3749 = vmatpush.bf16.msrb.mxu0 %v5774_v27  ;;  %v5821_v43 = vld [vmem:[#allocation8 + $0x6c0] sm:$0xf]  ;;  %v7078_v24 = vld [vmem:[#allocation8 + $0x744] sm:$0xf0]  ;;  %vm10081_vm3 = vmmov %vm10074_vm11 }
  0xef   :  { %v930_v16 = vsel %vm10075_vm12, %v902_v3, %v903_v46  ;;  %v5902_v20 = vor.u32 %v7082_v58, %v5901_v10  ;;  %v5966_v37 = vor.u32 %v7098_v53, %v5965_v9  ;;  %v5766_v2 = vor.u32 %v7048_v35, %v5765_v62  ;;  %3762 = vmatpush.bf16.msrb.mxu1 %v5838_v47  ;;  %v7094_v34 = vld [vmem:[#allocation8 + $0x7c4] sm:$0xf0]  ;;  %v7044_v4 = vld [vmem:[#allocation8 + $0x634] sm:$0xf0]  ;;  %v5813_v10 = vld [vmem:[#allocation8 + $0x6b0] sm:$0xf] }
  0xf0   :  { %v779_v7 = vsel %vm8866_vm10, %v8766_v42, %v775_v17  ;;  %v5830_v32 = vor.u32 %v7064_v60, %v5829_v1  ;;  %v932_v56 = vsel %vm10076_vm13, %v904_v38, %v905_v28  ;;  %v5894_v13 = vor.u32 %v7080_v12, %v5893_v22  ;;  %v5749_v42 = vld [vmem:[#allocation8 + $0x630] sm:$0xf]  ;;  %v7060_v58 = vld [vmem:[#allocation8 + $0x6b4] sm:$0xf0]  ;;  %v5741_v35 = vld [vmem:[#allocation8 + $0x620] sm:$0xf] }
  0xf1   :  { %v907_v26 = vrot.slane %v779_v7, 1  ;;  %3775 = vmatpush.bf16.msrb.mxu2 %v5902_v20  ;;  %3788 = vmatpush.bf16.msrb.mxu3 %v5966_v37  ;;  %v5958_v14 = vor.u32 %v7096_v30, %v5957_v0  ;;  %v931_v41 = vsel %vm10077_vm14, %v929_v6, %v930_v16  ;;  %vm10078_vm0 = vcmask 1046534   ;;  %v5877_v3 = vld [vmem:[#allocation8 + $0x730] sm:$0xf]  ;;  %v7076_v46 = vld [vmem:[#allocation8 + $0x734] sm:$0xf0]  ;;  %vm10082_vm5 = vmmov %vm10075_vm12 }
  0xf2   :  { %3750 = vmatpush.bf16.msrb.mxu0 %v5766_v2  ;;  %v5758_v54 = vor.u32 %v7046_v59, %v5757_v25  ;;  %v5822_v48 = vor.u32 %v7062_v5, %v5821_v43  ;;  %v5941_v9 = vld [vmem:[#allocation8 + $0x7b0] sm:$0xf]  ;;  %vm10080_vm2 = vcmask 1043456   ;;  %v5886_v31 = vor.u32 %v7078_v24, %v5885_v52  ;;  %v7092_v62 = vld [vmem:[#allocation8 + $0x7b4] sm:$0xf0]  ;;  %vm10085_vm7 = vmmov %vm10078_vm0 }
  0xf3   :  { %v933_v55 = vsel %vm10078_vm0, %v906_v45, %v907_v26  ;;  %3763 = vmatpush.bf16.msrb.mxu1 %v5830_v32  ;;  %v5950_v51 = vor.u32 %v7094_v34, %v5949_v61  ;;  %v7042_v19 = vld [vmem:[#allocation8 + $0x624] sm:$0xf0]  ;;  %v5750_v38 = vor.u32 %v7044_v4, %v5749_v42  ;;  %v5814_v28 = vor.u32 %v7060_v58, %v5813_v10  ;;  %v5805_v22 = vld [vmem:[#allocation8 + $0x6a0] sm:$0xf]  ;;  %v7056_v42 = vld [vmem:[#allocation8 + $0x694] sm:$0xf0] }
  0xf4   :  { %v934_v49 = vsel %vm10079_vm1, %v932_v56, %v933_v55  ;;  %v5878_v27 = vor.u32 %v7076_v46, %v5877_v3  ;;  %v5942_v1 = vor.u32 %v7092_v62, %v5941_v9  ;;  %v5742_v60 = vor.u32 %v7042_v19, %v5741_v35  ;;  %v7058_v2 = vld [vmem:[#allocation8 + $0x6a4] sm:$0xf0]  ;;  %v5869_v59 = vld [vmem:[#allocation8 + $0x720] sm:$0xf]  ;;  %v5861_v55 = vld [vmem:[#allocation8 + $0x710] sm:$0xf] }
  0xf5   :  { %v935_v53 = vsel %vm10080_vm2, %v931_v41, %v934_v49  ;;  %3776 = vmatpush.bf16.msrb.mxu2 %v5894_v13  ;;  %3789 = vmatpush.bf16.msrb.mxu3 %v5958_v14  ;;  %v7074_v43 = vld [vmem:[#allocation8 + $0x724] sm:$0xf0]  ;;  %v5806_v13 = vor.u32 %v7058_v2, %v5805_v22  ;;  %v157_v14 = vld [vmem:[#allocation7 + $0x8] sm:$0xff]  ;;  %v7088_v46 = vld [vmem:[#allocation8 + $0x794] sm:$0xf0] }
  0xf6   :  { %v8881_v36 = vmul.f32 %v935_v53, %v153_v50  ;;  %3751 = vmatpush.bf16.msrb.mxu0 %v5758_v54  ;;  %v7090_v5 = vld [vmem:[#allocation8 + $0x7a4] sm:$0xf0]  ;;  %v5733_v50 = vld [vmem:[#allocation8 + $0x610] sm:$0xf]  ;;  %v7072_v54 = vld [vmem:[#allocation8 + $0x714] sm:$0xf0] }
  0xf7   :  { %3764 = vmatpush.bf16.msrb.mxu1 %v5822_v48  ;;  %v7382_v49 = vld [vmem:[#allocation2 + $0x40] sm:$0xff]  ;;  %v5925_v3 = vld [vmem:[#allocation8 + $0x790] sm:$0xf]  ;;  %v5725_v9 = vld [vmem:[#allocation8 + $0x600] sm:$0xf] }
  0xf8   :  { %v962_v17 = vperm.slane %v8881_v36, 0  ;;  %v963_v45 = vperm.slane %v8881_v36, 1  ;;  %v964_v6 = vperm.slane %v8881_v36, 2  ;;  %v965_v47 = vperm.slane %v8881_v36, 3  ;;  %v7038_v35 = vld [vmem:[#allocation8 + $0x604] sm:$0xf0]  ;;  %vm10087_vm9 = vmmov %vm10080_vm2 }
  0xf9   :  { %v966_v12 = vperm.slane %v8881_v36, 4  ;;  %v967_v16 = vperm.slane %v8881_v36, 5  ;;  %v968_v20 = vperm.slane %v8881_v36, 6  ;;  %v969_v37 = vperm.slane %v8881_v36, 7  ;;  %3777 = vmatpush.bf16.msrb.mxu2 %v5886_v31  ;;  %3790 = vmatpush.bf16.msrb.mxu3 %v5950_v51  ;;  %v5789_v19 = vld [vmem:[#allocation8 + $0x680] sm:$0xf] }
  0xfa   :  { %v1012_v0 = vmul.f32 %v962_v17, %v8531_v39  ;;  %v1013_v30 = vmul.f32 %v963_v45, %v8542_v63  ;;  %v1014_v25 = vmul.f32 %v964_v6, %v8545_v23  ;;  %v1015_v7 = vmul.f32 %v965_v47, %v8580_v8  ;;  %3752 = vmatpush.bf16.msrb.mxu0 %v5750_v38  ;;  %v5933_v8 = vld [vmem:[#allocation8 + $0x7a0] sm:$0xf]  ;;  %v7054_v38 = vld [vmem:[#allocation8 + $0x684] sm:$0xf0] }
  0xfb   :  { %v1016_v32 = vmul.f32 %v966_v12, %v8590_v29  ;;  %v1017_v39 = vmul.f32 %v967_v16, %v8595_v44  ;;  %v1018_v63 = vmul.f32 %v968_v20, %v8601_v33  ;;  %v1019_v23 = vmul.f32 %v969_v37, %v8604_v40  ;;  %3765 = vmatpush.bf16.msrb.mxu1 %v5814_v28  ;;  %v7040_v44 = vld [vmem:[#allocation8 + $0x614] sm:$0xf0]  ;;  %v5797_v40 = vld [vmem:[#allocation8 + $0x690] sm:$0xf]  ;;  %v8924_v2 = vld [vmem:[#allocation8 + $0x700] sm:$0xf] }
  0xfc   :  { %v1060_v26 = vrot.slane %v1013_v30, 7  ;;  %v1061_v29 = vrot.slane %v1014_v25, 6  ;;  %v1062_v56 = vrot.slane %v1015_v7, 5  ;;  %v1110_v48 = vmul.f32 %v7382_v49, %v962_v17  ;;  %v7384_v17 = vld [vmem:[#allocation2 + $0x48] sm:$0xff]  ;;  %v7385_v30 = vld [vmem:[#allocation2 + $0x58] sm:$0xff] }
  0xfd   :  { %v1063_v52 = vrot.slane %v1016_v32, 4  ;;  %v1064_v24 = vrot.slane %v1017_v39, 3  ;;  %v1065_v33 = vrot.slane %v1018_v63, 2  ;;  %v1066_v41 = vrot.slane %v1019_v23, 1  ;;  %3778 = vmatpush.bf16.msrb.mxu2 %v5878_v27  ;;  %3791 = vmatpush.bf16.msrb.mxu3 %v5942_v1  ;;  %v7383_v27 = vld [vmem:[#allocation2 + $0x50] sm:$0xff] }
  0xfe   :  { %v1081_v61 = vsel %vm10081_vm3, %v1012_v0, %v1060_v26  ;;  %v1082_v34 = vsel %vm10082_vm5, %v1061_v29, %v1062_v56  ;;  %3753 = vmatpush.bf16.msrb.mxu0 %v5742_v60  ;;  %v5870_v31 = vor.u32 %v7074_v43, %v5869_v59  ;;  %v5934_v51 = vor.u32 %v7090_v5, %v5933_v8  ;;  %v8930_v32 = vld [vmem:[#allocation8 + $0x704] sm:$0xf0]  ;;  %v8932_v39 = vld [vmem:[#allocation8 + $0x780] sm:$0xf]  ;;  %v8944_v26 = vld [vmem:[#allocation8 + $0x870] sm:$0xf] }
  0xff   :  { %v1083_v4 = vsel %vm10083_vm6, %v1081_v61, %v1082_v34  ;;  %v1084_v10 = vsel %vm10084_vm4, %v1063_v52, %v1064_v24  ;;  %v1085_v58 = vsel %vm10085_vm7, %v1065_v33, %v1066_v41  ;;  %3766 = vmatpush.bf16.msrb.mxu1 %v5806_v13  ;;  %v5734_v62 = vor.u32 %v7040_v44, %v5733_v50  ;;  %v8946_v29 = vld [vmem:[#allocation8 + $0x874] sm:$0xf0]  ;;  %v8948_v56 = vld [vmem:[#allocation8 + $0x8f0] sm:$0xf]  ;;  %v7386_v13 = vld [vmem:[#allocation2 + $0x60] sm:$0xff] }
 0x100   :  { %v1086_v53 = vsel %vm10086_vm8, %v1084_v10, %v1085_v58  ;;  %v1112_v1 = vmul.f32 %v7383_v27, %v964_v6  ;;  %v1111_v60 = vmul.f32 %v7384_v17, %v963_v45  ;;  %v5798_v22 = vor.u32 %v7056_v42, %v5797_v40  ;;  %v8934_v6 = vld [vmem:[#allocation8 + $0x784] sm:$0xf0]  ;;  %v7132_v40 = vld [vmem:[#allocation8 + $0x8f4] sm:$0xf0]  ;;  %v8954_v61 = vld [vmem:[#allocation8 + $0x970] sm:$0xf] }
 0x101   :  { %v1087_v28 = vsel %vm10087_vm9, %v1083_v4, %v1086_v53  ;;  %v1113_v25 = vmul.f32 %v7385_v30, %v965_v47  ;;  %3779 = vmatpush.bf16.msrb.mxu2 %v5870_v31  ;;  %3792 = vmatpush.bf16.msrb.mxu3 %v5934_v51  ;;  %v5862_v7 = vor.u32 %v7072_v54, %v5861_v55  ;;  %v8956_v34 = vld [vmem:[#allocation8 + $0x974] sm:$0xf0]  ;;  %v8958_v42 = vld [vmem:[#allocation8 + $0x9f0] sm:$0xf]  ;;  %v8974_v53 = vld [vmem:[#allocation8 + $0x860] sm:$0xf] }
 0x102   :  { %v8926_v0 = vsub.f32 %v157_v14, %v1087_v28  ;;  %3754 = vmatpush.bf16.msrb.mxu0 %v5734_v62  ;;  %v5926_v45 = vor.u32 %v7088_v46, %v5925_v3  ;;  %v5726_v63 = vor.u32 %v7038_v35, %v5725_v9  ;;  %v5790_v23 = vor.u32 %v7054_v38, %v5789_v19  ;;  %v8952_v14 = vld [vmem:[#allocation2 + $0x80] sm:$0xff]  ;;  %v7164_v55 = vld [vmem:[#allocation8 + $0x9f4] sm:$0xf0]  ;;  %v7388_v58 = vld [vmem:[#allocation2 + $0x68] sm:$0xff] }
 0x103   :  { %3767 = vmatpush.bf16.msrb.mxu1 %v5798_v22  ;;  %v5854_v5 = vor.u32 %v8930_v32, %v8924_v2  ;;  %v5918_v50 = vor.u32 %v8934_v6, %v8932_v39  ;;  %v1114_v44 = vmul.f32 %v7386_v13, %v966_v12  ;;  %v7387_v12 = vld [vmem:[#allocation2 + $0x70] sm:$0xff]  ;;  %v1115_v49 = vmul.f32 %v7388_v58, %v967_v16  ;;  %v8976_v31 = vld [vmem:[#allocation8 + $0x864] sm:$0xf0]  ;;  %v7389_v19 = vld [vmem:[#allocation2 + $0x78] sm:$0xff] }
 0x104   :  { %v1139_v59 = vperm.slane %v8926_v0, 0  ;;  %v1141_v43 = vperm.slane %v8926_v0, 2  ;;  %v1140_v8 = vperm.slane %v8926_v0, 1  ;;  %v1142_v47 = vperm.slane %v8926_v0, 3  ;;  %v8980_v51 = vld [vmem:[#allocation8 + $0x8e4] sm:$0xf0] }
 0x105   :  { %3780 = vmatpush.bf16.msrb.mxu2 %v5862_v7  ;;  %3793 = vmatpush.bf16.msrb.mxu3 %v5926_v45  ;;  %v1143_v54 = vperm.slane %v8926_v0, 4  ;;  %v1116_v4 = vmul.f32 %v7387_v12, %v968_v20  ;;  %v1145_v10 = vperm.slane %v8926_v0, 6  ;;  %v8978_v20 = vld [vmem:[#allocation8 + $0x8e0] sm:$0xf]  ;;  %v6038_v16 = vor.u32 %v8946_v29, %v8944_v26  ;;  %v8990_v27 = vld [vmem:[#allocation8 + $0x964] sm:$0xf0] }
 0x106   :  { %v1189_v52 = vadd.f32 %v1139_v59, %v1110_v48  ;;  %v1191_v24 = vadd.f32 %v1141_v43, %v1112_v1  ;;  %v1190_v33 = vadd.f32 %v1140_v8, %v1111_v60  ;;  %v1192_v41 = vadd.f32 %v1142_v47, %v1113_v25  ;;  %3755 = vmatpush.bf16.msrb.mxu0 %v5726_v63  ;;  %v8988_v28 = vld [vmem:[#allocation8 + $0x960] sm:$0xf]  ;;  %v8994_v17 = vld [vmem:[#allocation8 + $0x9e4] sm:$0xf0]  ;;  %v9004_v2 = vld [vmem:[#allocation8 + $0x854] sm:$0xf0] }
 0x107   :  { %3768 = vmatpush.bf16.msrb.mxu1 %v5790_v23  ;;  %v6102_v62 = vor.u32 %v7132_v40, %v8948_v56  ;;  %v1144_v35 = vperm.slane %v8926_v0, 5  ;;  %v1117_v38 = vmul.f32 %v7389_v19, %v969_v37  ;;  %v8992_v1 = vld [vmem:[#allocation8 + $0x9e0] sm:$0xf]  ;;  %v6166_v60 = vor.u32 %v8956_v34, %v8954_v61  ;;  %v9002_v37 = vld [vmem:[#allocation8 + $0x850] sm:$0xf] }
 0x108   :  { %v8966_v48 = vpack.c.bf16 %v1189_v52, %v1189_v52  ;;  %v8968_v3 = vpack.c.bf16 %v1191_v24, %v1191_v24  ;;  %v8970_v46 = vpack.c.bf16 %v1190_v33, %v1190_v33  ;;  %v8972_v9 = vpack.c.bf16 %v1192_v41, %v1192_v41  ;;  %v9009_v32 = vld [vmem:[#allocation8 + $0x8d0] sm:$0xf]  ;;  %v9011_v39 = vld [vmem:[#allocation8 + $0x8d4] sm:$0xf0]  ;;  %v9021_v59 = vld [vmem:[#allocation8 + $0x840] sm:$0xf] }
 0x109   :  { %v6230_v22 = vor.u32 %v7164_v55, %v8958_v42  ;;  %v1146_v36 = vperm.slane %v8926_v0, 7  ;;  %v256_v30 = vrot.slane %v8952_v14, 4  ;;  %v1193_v25 = vadd.f32 %v1143_v54, %v1114_v44  ;;  %v9013_v6 = vld [vmem:[#allocation8 + $0x950] sm:$0xf]  ;;  %v9015_v45 = vld [vmem:[#allocation8 + $0x954] sm:$0xf0]  ;;  %3781 = vmatpush.bf16.msrb.mxu2 %v5854_v5  ;;  %3794 = vmatpush.bf16.msrb.mxu3 %v5918_v50 }
 0x10a   :  { %10088 = vst [vmem:[#allocation45_spill] sm:$0xff] %v8966_v48  ;;  %3704 = vmatmul.bf16.vlgmr.msra.gmra.mxu0 %v8966_v48  ;;  %3730 = vmatmul.bf16.vlgmr.msra.gmra.mxu2 %v8968_v3  ;;  %v1195_v7 = vadd.f32 %v1145_v10, %v1116_v4  ;;  %v9017_v0 = vld [vmem:[#allocation8 + $0x9d0] sm:$0xf]  ;;  %v9019_v63 = vld [vmem:[#allocation8 + $0x9d4] sm:$0xf0]  ;;  %v1194_v23 = vadd.f32 %v1144_v35, %v1115_v49 }
 0x10b   :  { %10089 = vst [vmem:[#allocation20_spill] sm:$0xff] %v8968_v3  ;;  %3717 = vmatmul.bf16.vlgmr.msra.gmra.mxu1 %v8970_v46  ;;  %3743 = vmatmul.bf16.vlgmr.msra.gmra.mxu3 %v8972_v9  ;;  %v9023_v43 = vld [vmem:[#allocation8 + $0x844] sm:$0xf0]  ;;  %v9025_v8 = vld [vmem:[#allocation8 + $0x8c0] sm:$0xf]  ;;  %v1196_v26 = vadd.f32 %v1146_v36, %v1117_v38  ;;  %v6030_v29 = vor.u32 %v8976_v31, %v8974_v53  ;;  %v9071_v53 = vld [vmem:[#allocation2 + $0x88] sm:$0xff] }
 0x10c   :  { %10090 = vst [vmem:[#allocation21_spill] sm:$0xff] %v8970_v46  ;;  %v9027_v47 = vld [vmem:[#allocation8 + $0x8c4] sm:$0xf0]  ;;  %3800 = vmatpush.bf16.msra.mxu0 %v6038_v16  ;;  %3813 = vmatpush.bf16.msra.mxu1 %v6102_v62  ;;  %v6094_v56 = vor.u32 %v8980_v51, %v8978_v20  ;;  %v9033_v5 = vld [vmem:[#allocation8 + $0x940] sm:$0xf]  ;;  %v6158_v33 = vor.u32 %v8990_v27, %v8988_v28  ;;  %v9073_v31 = vld [vmem:[#allocation2 + $0x90] sm:$0xff] }
 0x10d   :  { %10091 = vst [vmem:[#allocation25_spill] sm:$0xff] %v8972_v9  ;;  %v9035_v50 = vld [vmem:[#allocation8 + $0x944] sm:$0xf0]  ;;  %v9037_v13 = vld [vmem:[#allocation8 + $0x9c0] sm:$0xf]  ;;  %3826 = vmatpush.bf16.msra.mxu2 %v6166_v60  ;;  %3839 = vmatpush.bf16.msra.mxu3 %v6230_v22  ;;  %v6222_v41 = vor.u32 %v8994_v17, %v8992_v1  ;;  %v9059_v54 = vpack.c.bf16 %v1193_v25, %v1193_v25  ;;  %v262_v15 = vrot.slane %v9071_v53, 4 }
 0x10e   :  { %v9039_v44 = vld [vmem:[#allocation8 + $0x9c4] sm:$0xf0]  ;;  %v9041_v52 = vld [vmem:[#allocation8 + $0x830] sm:$0xf]  ;;  %v9043_v24 = vld [vmem:[#allocation8 + $0x834] sm:$0xf0]  ;;  %v9061_v12 = vpack.c.bf16 %v1195_v7, %v1195_v7  ;;  %v6022_v4 = vor.u32 %v9004_v2, %v9002_v37  ;;  %v9076_v20 = vadd.f32 %v256_v30, %v8952_v14  ;;  %v9078_v51 = vpack.c.bf16 %v1194_v23, %v1194_v23 }
 0x10f   :  { %v9049_v40 = vld [vmem:[#allocation8 + $0x8b0] sm:$0xf]  ;;  %v9051_v61 = vld [vmem:[#allocation8 + $0x8b4] sm:$0xf0]  ;;  %10092 = vst [vmem:[#allocation24_spill] sm:$0xff] %v9059_v54  ;;  %v6086_v16 = vor.u32 %v9011_v39, %v9009_v32  ;;  %v6150_v62 = vor.u32 %v9015_v45, %v9013_v6  ;;  %v6214_v35 = vor.u32 %v9019_v63, %v9017_v0  ;;  %v9092_v27 = vld [vmem:[#allocation2 + $0x98] sm:$0xff]  ;;  %v9094_v1 = vpack.c.bf16 %v1196_v26, %v1196_v26 }
 0x110   :  { %v9053_v34 = vld [vmem:[#allocation8 + $0x930] sm:$0xf]  ;;  %v9055_v42 = vld [vmem:[#allocation8 + $0x934] sm:$0xf0]  ;;  %10093 = vst [vmem:[#allocation28_spill] sm:$0xff] %v9061_v12  ;;  %3801 = vmatpush.bf16.msra.mxu0 %v6030_v29  ;;  %3814 = vmatpush.bf16.msra.mxu1 %v6094_v56  ;;  %v6014_v17 = vor.u32 %v9023_v43, %v9021_v59  ;;  %v6078_v60 = vor.u32 %v9027_v47, %v9025_v8  ;;  %v9106_v2 = vld [vmem:[#allocation2 + $0xa0] sm:$0xff] }
 0x111   :  { %v9057_v55 = vld [vmem:[#allocation8 + $0x9b0] sm:$0xf]  ;;  %v9065_v10 = vld [vmem:[#allocation8 + $0x9b4] sm:$0xf0]  ;;  %v9067_v58 = vld [vmem:[#allocation8 + $0x820] sm:$0xf]  ;;  %3827 = vmatpush.bf16.msra.mxu2 %v6158_v33  ;;  %3840 = vmatpush.bf16.msra.mxu3 %v6222_v41  ;;  %v9150_v43 = vmul.f32 %v8952_v14, %v8952_v14  ;;  %v9154_v8 = vmul.f32 %v9071_v53, %v9071_v53  ;;  %v9158_v23 = vmul.f32 %v9073_v31, %v9073_v31 }
 0x112   :  { %v9069_v49 = vld [vmem:[#allocation8 + $0x824] sm:$0xf0]  ;;  %10094 = vst [vmem:[#allocation32_spill] sm:$0xff] %v9078_v51  ;;  %v9086_v19 = vld [vmem:[#allocation8 + $0x8a0] sm:$0xf]  ;;  %v9108_v30 = vld [vmem:[#allocation2 + $0xa8] sm:$0xff]  ;;  %v9172_v9 = vmul.f32 %v9092_v27, %v9092_v27  ;;  %v9184_v3 = vmul.f32 %v9106_v2, %v9106_v2 }
 0x113   :  { %v9088_v38 = vld [vmem:[#allocation8 + $0x8a4] sm:$0xf0]  ;;  %v9090_v28 = vld [vmem:[#allocation8 + $0x920] sm:$0xf]  ;;  %10095 = vst [vmem:[#allocation33_spill] sm:$0xff] %v9094_v1  ;;  %v9122_v0 = vld [vmem:[#allocation2 + $0xb0] sm:$0xff]  ;;  %v9188_v46 = vmul.f32 %v9108_v30, %v9108_v30 }
 0x114   :  { %v9100_v22 = vld [vmem:[#allocation8 + $0x924] sm:$0xf0]  ;;  %v9102_v36 = vld [vmem:[#allocation8 + $0x9a0] sm:$0xf]  ;;  %v9116_v39 = vld [vmem:[#allocation8 + $0x810] sm:$0xf]  ;;  %3802 = vmatpush.bf16.msra.mxu0 %v6022_v4  ;;  %3815 = vmatpush.bf16.msra.mxu1 %v6086_v16  ;;  %v9202_v21 = vmul.f32 %v9122_v0, %v9122_v0 }
 0x115   :  { %v9104_v37 = vld [vmem:[#allocation8 + $0x9a4] sm:$0xf0]  ;;  %v9118_v6 = vld [vmem:[#allocation8 + $0x814] sm:$0xf0]  ;;  %v9120_v45 = vld [vmem:[#allocation8 + $0x890] sm:$0xf]  ;;  %3828 = vmatpush.bf16.msra.mxu2 %v6150_v62  ;;  %3841 = vmatpush.bf16.msra.mxu3 %v6214_v35 }
 0x116   :  { %v9124_v63 = vld [vmem:[#allocation2 + $0xb8] sm:$0xff]  ;;  %v9134_v47 = vld [vmem:[#allocation8 + $0x894] sm:$0xf0]  ;;  %v9136_v26 = vld [vmem:[#allocation8 + $0x910] sm:$0xf]  ;;  %10096 = vst [vmem:[#allocation27_spill] sm:$0xff] %v9172_v9 }
 0x117   :  { %v9138_v29 = vld [vmem:[#allocation8 + $0x914] sm:$0xf0]  ;;  %v9142_v33 = vld [vmem:[#allocation8 + $0x990] sm:$0xf]  ;;  %v9146_v59 = vld [vmem:[#allocation8 + $0x800] sm:$0xf]  ;;  %v9206_v57 = vmul.f32 %v9124_v63, %v9124_v63 }
 0x118   :  { %v9144_v41 = vld [vmem:[#allocation8 + $0x994] sm:$0xf0]  ;;  %v9164_v7 = vld [vmem:[#allocation8 + $0x804] sm:$0xf0]  ;;  %v9166_v14 = vld [vmem:[#allocation8 + $0x880] sm:$0xf]  ;;  %3803 = vmatpush.bf16.msra.mxu0 %v6014_v17  ;;  %3816 = vmatpush.bf16.msra.mxu1 %v6078_v60  ;;  %v10106_v17 = vor.u32 %v9035_v50, %v9033_v5  ;;  %v10107_v60 = vor.u32 %v9039_v44, %v9037_v13  ;;  %v10109_v5 = vor.u32 %v9051_v61, %v9049_v40 }
 0x119   :  { %v9168_v25 = vld [vmem:[#allocation8 + $0x884] sm:$0xf0]  ;;  %v9176_v16 = vld [vmem:[#allocation8 + $0x900] sm:$0xf]  ;;  %10099 = vst [vmem:[#allocation29_spill] sm:$0xff] %v9184_v3  ;;  %v258_v62 = vrot.slane %v9076_v20, 2  ;;  %v10110_v61 = vor.u32 %v9055_v42, %v9053_v34 }
 0x11a   :  { %10097 = vst [vmem:[#allocation26_spill] sm:$0xff] %v9176_v16  ;;  %v9178_v56 = vld [vmem:[#allocation8 + $0x904] sm:$0xf0]  ;;  %v9180_v32 = vld [vmem:[#allocation8 + $0x980] sm:$0xf]  ;;  %3756 = vmatmul.bf16.vlgmr.msrb.gmra.mxu0 %v9059_v54  ;;  %3782 = vmatmul.bf16.vlgmr.msrb.gmra.mxu2 %v9061_v12  ;;  %v268_v35 = vrot.slane %v9073_v31, 4 }
 0x11b   :  { %10098 = vst [vmem:[#allocation30_spill] sm:$0xff] %v9180_v32  ;;  %v9194_v4 = vld [vmem:[#allocation8 + $0x984] sm:$0xf0]  ;;  %v9196_v48 = vld [vmem:[#allocation8 + $0xa70] sm:$0xf]  ;;  %3769 = vmatmul.bf16.vlgmr.msrb.gmra.mxu1 %v9078_v51  ;;  %3795 = vmatmul.bf16.vlgmr.msrb.gmra.mxu3 %v9094_v1  ;;  %v274_v54 = vrot.slane %v9092_v27, 4  ;;  %v259_v51 = vadd.f32 %v258_v62, %v9076_v20  ;;  %v263_v1 = vadd.f32 %v262_v15, %v9071_v53 }
 0x11c   :  { %10100 = vst [vmem:[#allocation35_spill] sm:$0xff] %v9188_v46  ;;  %v9216_v3 = vld [vmem:[#allocation8 + $0xaf0] sm:$0xf]  ;;  %v9218_v9 = vld [vmem:[#allocation8 + $0xaf4] sm:$0xf0]  ;;  %v280_v12 = vrot.slane %v9106_v2, 4  ;;  %3829 = vmatpush.bf16.msra.mxu2 %v10106_v17  ;;  %3842 = vmatpush.bf16.msra.mxu3 %v10107_v60  ;;  %v269_v50 = vadd.f32 %v268_v35, %v9073_v31 }
 0x11d   :  { %10101 = vst [vmem:[#allocation31_spill] sm:$0xff] %v9202_v21  ;;  %v9220_v21 = vld [vmem:[#allocation8 + $0xb70] sm:$0xf]  ;;  %v9232_v16 = vld [vmem:[#allocation8 + $0xbf4] sm:$0xf0]  ;;  %v286_v32 = vrot.slane %v9108_v30, 4  ;;  %3817 = vmatpush.bf16.msra.mxu1 %v10109_v5  ;;  %v275_v13 = vadd.f32 %v274_v54, %v9092_v27  ;;  %v10111_v54 = vor.u32 %v9065_v10, %v9057_v55 }
 0x11e   :  { %10102 = vst [vmem:[#allocation37_spill] sm:$0xff] %v9206_v57  ;;  %v9228_v57 = vld [vmem:[#allocation8 + $0xb74] sm:$0xf0]  ;;  %v9230_v46 = vld [vmem:[#allocation8 + $0xbf0] sm:$0xf]  ;;  %v281_v44 = vadd.f32 %v280_v12, %v9106_v2  ;;  %v465_v15 = vrot.slane %v9150_v43, 4 }
 0x11f   :  { %10103 = vst [vmem:[#allocation36_spill] sm:$0xff] %v9220_v21  ;;  %v10108_v21 = vor.u32 %v9043_v24, %v9041_v52  ;;  %v260_v20 = vrot.slane %v259_v51, 1  ;;  %v264_v62 = vrot.slane %v263_v1, 2  ;;  %v287_v17 = vadd.f32 %v286_v32, %v9108_v30 }
 0x120   :  { %10104 = vst [vmem:[#allocation40_spill] sm:$0xff] %v9230_v46  ;;  %v292_v46 = vrot.slane %v9122_v0, 4  ;;  %v270_v52 = vrot.slane %v269_v50, 2  ;;  %v282_v24 = vrot.slane %v281_v44, 2  ;;  %3830 = vmatpush.bf16.msra.mxu2 %v10110_v61  ;;  %3843 = vmatpush.bf16.msra.mxu3 %v10111_v54  ;;  %v10113_v30 = vor.u32 %v9088_v38, %v9086_v19 }
 0x121   :  { %10105 = vst [vmem:[#allocation39_spill] sm:$0xff] %v9232_v16  ;;  %v298_v16 = vrot.slane %v9124_v63, 4  ;;  %3804 = vmatpush.bf16.msra.mxu0 %v10108_v21  ;;  %v276_v21 = vrot.slane %v275_v13, 2  ;;  %v261_v12 = vadd.f32 %v260_v20, %v259_v51  ;;  %v265_v2 = vadd.f32 %v264_v62, %v263_v1 }
 0x122   :  { %v293_v60 = vadd.f32 %v292_v46, %v9122_v0  ;;  %v288_v35 = vrot.slane %v287_v17, 2  ;;  %v10112_v46 = vor.u32 %v9069_v49, %v9067_v58  ;;  %3818 = vmatpush.bf16.msra.mxu1 %v10113_v30  ;;  %v271_v32 = vadd.f32 %v270_v52, %v269_v50 }
 0x123   :  { %v299_v40 = vadd.f32 %v298_v16, %v9124_v63  ;;  %v277_v0 = vadd.f32 %v276_v21, %v275_v13  ;;  %v283_v34 = vadd.f32 %v282_v24, %v281_v44  ;;  %v266_v63 = vrot.slane %v265_v2, 1 }
 0x124   :  { %v294_v5 = vrot.slane %v293_v60, 2  ;;  %v289_v16 = vadd.f32 %v288_v35, %v287_v17  ;;  %v9284_v10 = vmul.f32 %v7932_v11, %v261_v12  ;;  %v272_v51 = vrot.slane %v271_v32, 1 }
 0x125   :  { %3805 = vmatpush.bf16.msra.mxu0 %v10112_v46  ;;  %v300_v42 = vrot.slane %v299_v40, 2  ;;  %v278_v1 = vrot.slane %v277_v0, 1  ;;  %v284_v20 = vrot.slane %v283_v34, 1  ;;  %v10114_v58 = vor.u32 %v9100_v22, %v9090_v28 }
 0x126   :  { %v295_v55 = vadd.f32 %v294_v5, %v293_v60  ;;  %v10115_v49 = vor.u32 %v9104_v37, %v9102_v36  ;;  %v267_v19 = vadd.f32 %v266_v63, %v265_v2  ;;  %v290_v38 = vrot.slane %v289_v16, 1  ;;  %v10123_v5 = vld [vmem:[#allocation29_spill] sm:$0xff] }
 0x127   :  { %v301_v62 = vadd.f32 %v300_v42, %v299_v40  ;;  %3831 = vmatpush.bf16.msra.mxu2 %v10114_v58  ;;  %v466_v13 = vadd.f32 %v465_v15, %v9150_v43  ;;  %v10116_v44 = vor.u32 %v9118_v6, %v9116_v39  ;;  %v10117_v17 = vor.u32 %v9134_v47, %v9120_v45 }
 0x128   :  { %3844 = vmatpush.bf16.msra.mxu3 %v10115_v49  ;;  %v296_v50 = vrot.slane %v295_v55, 1  ;;  %v273_v60 = vadd.f32 %v272_v51, %v271_v32  ;;  %v279_v28 = vadd.f32 %v278_v1, %v277_v0  ;;  %v285_v22 = vadd.f32 %v284_v20, %v283_v34  ;;  %v10127_v0 = vld [vmem:[#allocation31_spill] sm:$0xff] }
 0x129   :  { %3806 = vmatpush.bf16.msra.mxu0 %v10116_v44  ;;  %3819 = vmatpush.bf16.msra.mxu1 %v10117_v17  ;;  %v302_v52 = vrot.slane %v301_v62, 1  ;;  %v291_v21 = vadd.f32 %v290_v38, %v289_v16  ;;  %v9300_v37 = vmul.f32 %v7932_v11, %v267_v19  ;;  %v467_v24 = vrot.slane %v466_v13, 2  ;;  %v10135_v49 = vld [vmem:[#allocation39_spill] sm:$0xff]  ;;  %v10136_v19 = vld [vmem:[#allocation40_spill] sm:$0xff] }
 0x12a   :  { %v297_v36 = vadd.f32 %v296_v50, %v295_v55  ;;  %v9303_v43 = vmul.f32 %v7932_v11, %v273_v60  ;;  %v9306_v39 = vmul.f32 %v7932_v11, %v279_v28  ;;  %v9309_v6 = vmul.f32 %v7932_v11, %v285_v22  ;;  %v10128_v55 = vld [vmem:[#allocation37_spill] sm:$0xff] }
 0x12b   :  { %v303_v40 = vadd.f32 %v302_v52, %v301_v62  ;;  %v10118_v45 = vor.u32 %v9138_v29, %v9136_v26  ;;  %v10119_v47 = vor.u32 %v9144_v41, %v9142_v33  ;;  %v9318_v15 = vmul.f32 %v7932_v11, %v291_v21  ;;  %v10122_v41 = vld [vmem:[#allocation27_spill] sm:$0xff]  ;;  %v10133_v62 = vld [vmem:[#allocation36_spill] sm:$0xff] }
 0x12c   :  { %v9321_v61 = vmul.f32 %v7932_v11, %v297_v36  ;;  %v468_v54 = vadd.f32 %v467_v24, %v466_v13  ;;  %v471_v12 = vrot.slane %v9154_v8, 4  ;;  %v10120_v2 = vor.u32 %v9164_v7, %v9146_v59 }
 0x12d   :  { %3832 = vmatpush.bf16.msra.mxu2 %v10118_v45  ;;  %3845 = vmatpush.bf16.msra.mxu3 %v10119_v47  ;;  %v10121_v26 = vor.u32 %v9168_v25, %v9166_v14  ;;  %v9331_v29 = vmul.f32 %v7932_v11, %v303_v40  ;;  %v477_v33 = vrot.slane %v9158_v23, 4  ;;  %v483_v35 = vrot.slane %v10122_v41, 4  ;;  %v10126_v14 = vld [vmem:[#allocation35_spill] sm:$0xff] }
 0x12e   :  { %3807 = vmatpush.bf16.msra.mxu0 %v10120_v2  ;;  %v489_v46 = vrot.slane %v10123_v5, 4  ;;  %v10124_v30 = vor.u32 %v9198_v18, %v9196_v48  ;;  %v10125_v7 = vor.u32 %v9218_v9, %v9216_v3  ;;  %v469_v59 = vrot.slane %v468_v54, 1  ;;  %v10129_v48 = vld [vmem:[#allocation26_spill] sm:$0xff] }
 0x12f   :  { %3820 = vmatpush.bf16.msra.mxu1 %v10121_v26  ;;  %v472_v25 = vadd.f32 %v471_v12, %v9154_v8  ;;  %v495_v32 = vrot.slane %v10126_v14, 4  ;;  %v501_v34 = vrot.slane %v10127_v0, 4  ;;  %v478_v42 = vadd.f32 %v477_v33, %v9158_v23  ;;  %v10131_v3 = vld [vmem:[#allocation30_spill] sm:$0xff] }
 0x130   :  { %v484_v63 = vadd.f32 %v483_v35, %v10122_v41  ;;  %v490_v16 = vadd.f32 %v489_v46, %v10123_v5  ;;  %v507_v18 = vrot.slane %v10128_v55, 4  ;;  %v10130_v51 = vor.u32 %v9178_v56, %v10129_v48 }
 0x131   :  { %v10132_v9 = vor.u32 %v9194_v4, %v10131_v3  ;;  %v470_v8 = vadd.f32 %v469_v59, %v468_v54  ;;  %v473_v1 = vrot.slane %v472_v25, 2  ;;  %v496_v20 = vadd.f32 %v495_v32, %v10126_v14 }
 0x132   :  { %3852 = vmatpush.bf16.msrb.mxu0 %v10124_v30  ;;  %3833 = vmatpush.bf16.msra.mxu2 %v10130_v51  ;;  %v502_v23 = vadd.f32 %v501_v34, %v10127_v0  ;;  %v10134_v58 = vor.u32 %v9228_v57, %v10133_v62  ;;  %v10137_v38 = vor.u32 %v10135_v49, %v10136_v19  ;;  %v479_v56 = vrot.slane %v478_v42, 2 }
 0x133   :  { %3865 = vmatpush.bf16.msrb.mxu1 %v10125_v7  ;;  %3846 = vmatpush.bf16.msra.mxu3 %v10132_v9  ;;  %v485_v50 = vrot.slane %v484_v63, 2  ;;  %v491_v13 = vrot.slane %v490_v16, 2  ;;  %v508_v4 = vadd.f32 %v507_v18, %v10128_v55  ;;  %v474_v44 = vadd.f32 %v473_v1, %v472_v25 }
 0x134   :  { %v497_v17 = vrot.slane %v496_v20, 2  ;;  %v503_v60 = vrot.slane %v502_v23, 2  ;;  %v536_v28 = vmul.f32 %v470_v8, %v7932_v11  ;;  %v480_v22 = vadd.f32 %v479_v56, %v478_v42 }
 0x135   :  { %v486_v52 = vadd.f32 %v485_v50, %v484_v63  ;;  %v492_v21 = vadd.f32 %v491_v13, %v490_v16  ;;  %v509_v36 = vrot.slane %v508_v4, 2  ;;  %v475_v57 = vrot.slane %v474_v44, 1 }
 0x136   :  { %3878 = vmatpush.bf16.msrb.mxu2 %v10134_v58  ;;  %v498_v24 = vadd.f32 %v497_v17, %v496_v20  ;;  %v504_v40 = vadd.f32 %v503_v60, %v502_v23  ;;  %v561_v45 = vmul.f32 %v9284_v10, %v9284_v10  ;;  %v481_v47 = vrot.slane %v480_v22, 1 }
 0x137   :  { %3891 = vmatpush.bf16.msrb.mxu3 %v10137_v38  ;;  %v487_v54 = vrot.slane %v486_v52, 1  ;;  %v493_v12 = vrot.slane %v492_v21, 1  ;;  %v510_v2 = vadd.f32 %v509_v36, %v508_v4  ;;  %v476_v26 = vadd.f32 %v475_v57, %v474_v44 }
 0x138   :  { %v499_v33 = vrot.slane %v498_v24, 1  ;;  %v505_v41 = vrot.slane %v504_v40, 1  ;;  %v562_v35 = vmul.f32 %v9300_v37, %v9300_v37  ;;  %v482_v5 = vadd.f32 %v481_v47, %v480_v22 }
 0x139   :  { %v488_v46 = vadd.f32 %v487_v54, %v486_v52  ;;  %v494_v30 = vadd.f32 %v493_v12, %v492_v21  ;;  %v511_v7 = vrot.slane %v510_v2, 1  ;;  %v537_v14 = vmul.f32 %v476_v26, %v7932_v11 }
 0x13a   :  { %v500_v59 = vadd.f32 %v499_v33, %v498_v24  ;;  %v506_v25 = vadd.f32 %v505_v41, %v504_v40  ;;  %v563_v32 = vmul.f32 %v9303_v43, %v9303_v43  ;;  %v538_v34 = vmul.f32 %v482_v5, %v7932_v11 }
 0x13b   :  { %v512_v0 = vadd.f32 %v511_v7, %v510_v2  ;;  %v539_v42 = vmul.f32 %v488_v46, %v7932_v11  ;;  %v540_v63 = vmul.f32 %v494_v30, %v7932_v11  ;;  %v564_v18 = vmul.f32 %v9306_v39, %v9306_v39 }
 0x13c   :  { %v541_v16 = vmul.f32 %v500_v59, %v7932_v11  ;;  %v542_v55 = vmul.f32 %v506_v25, %v7932_v11  ;;  %v565_v48 = vmul.f32 %v9309_v6, %v9309_v6  ;;  %v566_v3 = vmul.f32 %v9318_v15, %v9318_v15 }
 0x13d   :  { %v543_v51 = vmul.f32 %v512_v0, %v7932_v11  ;;  %v567_v9 = vmul.f32 %v9321_v61, %v9321_v61  ;;  %v568_v8 = vmul.f32 %v9331_v29, %v9331_v29  ;;  %v586_v1 = vsub.f32 %v536_v28, %v561_v45 }
 0x13e   :  { %v587_v20 = vsub.f32 %v537_v14, %v562_v35  ;;  %v588_v23 = vsub.f32 %v538_v34, %v563_v32  ;;  %v589_v62 = vsub.f32 %v539_v42, %v564_v18  ;;  %v590_v58 = vsub.f32 %v540_v63, %v565_v48 }
 0x13f   :  { %v591_v49 = vsub.f32 %v541_v16, %v566_v3  ;;  %v592_v19 = vsub.f32 %v542_v55, %v567_v9  ;;  %v611_v38 = vadd.f32 1e-05, %v586_v1  ;;  %v593_v13 = vsub.f32 %v543_v51, %v568_v8 }
 0x140   :  { %v612_v56 = vadd.f32 1e-05, %v587_v20  ;;  %v9388_v50 = vadd.f32 1e-05, %v588_v23  ;;  %v9390_v4 = vadd.f32 1e-05, %v589_v62 }
 0x141   :  { %v9392_v44 = vadd.f32 1e-05, %v590_v58  ;;  %7364 = vrsqrt.f32 %v611_v38  ;;  %v9394_v17 = vadd.f32 1e-05, %v591_v49  ;;  %v9396_v60 = vadd.f32 1e-05, %v592_v19 }
 0x142   :  { %7366 = vrsqrt.f32 %v612_v56  ;;  %v9399_v28 = vadd.f32 1e-05, %v593_v13  ;;  %vm786_vm15 = vweird.f32 %v611_v38  ;;  %vm796_vm10 = vweird.f32 %v612_v56  ;;  %v6469_v58 = vld [vmem:[#allocation8 + $0xbd0] sm:$0xf] }
 0x143   :  { %7368 = vrsqrt.f32 %v9388_v50  ;;  %vm806_vm11 = vweird.f32 %v9388_v50  ;;  %vm816_vm12 = vweird.f32 %v9390_v4  ;;  %vm826_vm13 = vweird.f32 %v9392_v44 }
 0x144   :  { %7370 = vrsqrt.f32 %v9390_v4  ;;  %vm836_vm14 = vweird.f32 %v9394_v17  ;;  %vm846_vm2 = vweird.f32 %v9396_v60 }
 0x145   :  { %7372 = vrsqrt.f32 %v9392_v44 }
 0x146   :  { %7374 = vrsqrt.f32 %v9394_v17 }
 0x147   :  { %v9404_v22 = vpop.eup %7364  ;;  %7376 = vrsqrt.f32 %v9396_v60 }
 0x148   :  { %v9407_v52 = vpop.eup %7366  ;;  %v781_v21 = vmul.f32 %v9404_v22, %v611_v38  ;;  %7378 = vrsqrt.f32 %v9399_v28  ;;  %vm787_vm0 = vweird.f32 %v9404_v22 }
 0x149   :  { %v9412_v36 = vpop.eup %7368  ;;  %v791_v57 = vmul.f32 %v9407_v52, %v612_v56  ;;  %vm797_vm1 = vweird.f32 %v9407_v52  ;;  %vm9454_vm8 = vmor %vm786_vm15, %vm787_vm0 }
 0x14a   :  { %v9418_v24 = vpop.eup %7370  ;;  %v782_v40 = vmul.f32 %v9404_v22, %v781_v21  ;;  %v801_v45 = vmul.f32 %v9412_v36, %v9388_v50  ;;  %vm807_vm3 = vweird.f32 %v9412_v36  ;;  %vm9464_vm7 = vmor %vm796_vm10, %vm797_vm1  ;;  %v154_v50 = vld [vmem:[#allocation5 + $0x10] sm:$0xff] }
 0x14b   :  { %v9426_v47 = vpop.eup %7372  ;;  %v792_v54 = vmul.f32 %v9407_v52, %v791_v57  ;;  %v811_v12 = vmul.f32 %v9418_v24, %v9390_v4  ;;  %vm817_vm5 = vweird.f32 %v9418_v24  ;;  %vm9474_vm15 = vmor %vm806_vm11, %vm807_vm3  ;;  %v6285_v57 = vld [vmem:[#allocation8 + $0xa60] sm:$0xf]  ;;  %vm10156_vm3 = vcmask 1042434  }
 0x14c   :  { %v9433_v2 = vpop.eup %7374  ;;  %v783_v26 = vmul.f32 0.5, %v782_v40  ;;  %v802_v33 = vmul.f32 %v9412_v36, %v801_v45  ;;  %v821_v41 = vmul.f32 %v9426_v47, %v9392_v44  ;;  %vm827_vm6 = vweird.f32 %v9426_v47  ;;  %vm9488_vm10 = vmor %vm816_vm12, %vm817_vm5  ;;  %v7178_v40 = vld [vmem:[#allocation8 + $0xa64] sm:$0xf0] }
 0x14d   :  { %v9439_v35 = vpop.eup %7376  ;;  %v793_v5 = vmul.f32 0.5, %v792_v54  ;;  %v812_v46 = vmul.f32 %v9418_v24, %v811_v12  ;;  %v831_v30 = vmul.f32 %v9433_v2, %v9394_v17  ;;  %vm837_vm4 = vweird.f32 %v9433_v2  ;;  %vm9500_vm11 = vmor %vm826_vm13, %vm827_vm6 }
 0x14e   :  { %v9446_v7 = vpop.eup %7378  ;;  %v784_v59 = vsub.f32 1.5, %v783_v26  ;;  %v803_v25 = vmul.f32 0.5, %v802_v33  ;;  %v822_v14 = vmul.f32 %v9426_v47, %v821_v41  ;;  %v841_v32 = vmul.f32 %v9439_v35, %v9396_v60  ;;  %vm9513_vm12 = vmor %vm836_vm14, %vm837_vm4  ;;  %v6349_v26 = vld [vmem:[#allocation8 + $0xae0] sm:$0xf]  ;;  %v7194_v33 = vld [vmem:[#allocation8 + $0xae4] sm:$0xf0] }
 0x14f   :  { %v794_v34 = vsub.f32 1.5, %v793_v5  ;;  %v813_v42 = vmul.f32 0.5, %v812_v46  ;;  %v832_v63 = vmul.f32 %v9433_v2, %v831_v30  ;;  %vm847_vm9 = vweird.f32 %v9439_v35  ;;  %v6413_v30 = vld [vmem:[#allocation8 + $0xb60] sm:$0xf] }
 0x150   :  { %v785_v16 = vmul.f32 %v9404_v22, %v784_v59  ;;  %v804_v18 = vsub.f32 1.5, %v803_v25  ;;  %v823_v48 = vmul.f32 0.5, %v822_v14  ;;  %v842_v51 = vmul.f32 %v9439_v35, %v841_v32  ;;  %vm9526_vm0 = vmor %vm846_vm2, %vm847_vm9  ;;  %v7210_v59 = vld [vmem:[#allocation8 + $0xb64] sm:$0xf0]  ;;  %v6477_v14 = vld [vmem:[#allocation8 + $0xbe0] sm:$0xf] }
 0x151   :  { %v795_v3 = vmul.f32 %v9407_v52, %v794_v34  ;;  %v814_v8 = vsub.f32 1.5, %v813_v42  ;;  %v833_v1 = vmul.f32 0.5, %v832_v63  ;;  %v851_v20 = vmul.f32 %v9446_v7, %v9399_v28  ;;  %v7226_v32 = vld [vmem:[#allocation8 + $0xbe4] sm:$0xf0] }
 0x152   :  { %v789_v23 = vsel %vm9454_vm8, %v9404_v22, %v785_v16  ;;  %v805_v62 = vmul.f32 %v9412_v36, %v804_v18  ;;  %v824_v49 = vsub.f32 1.5, %v823_v48  ;;  %v843_v19 = vmul.f32 0.5, %v842_v51  ;;  %v6277_v16 = vld [vmem:[#allocation8 + $0xa50] sm:$0xf] }
 0x153   :  { %v799_v38 = vsel %vm9464_vm7, %v9407_v52, %v795_v3  ;;  %v815_v56 = vmul.f32 %v9418_v24, %v814_v8  ;;  %v834_v13 = vsub.f32 1.5, %v833_v1  ;;  %v852_v4 = vmul.f32 %v9446_v7, %v851_v20  ;;  %v7192_v3 = vld [vmem:[#allocation8 + $0xad4] sm:$0xf0]  ;;  %v6405_v20 = vld [vmem:[#allocation8 + $0xb50] sm:$0xf] }
 0x154   :  { %v809_v22 = vsel %vm9474_vm15, %v9412_v36, %v805_v62  ;;  %v825_v21 = vmul.f32 %v9426_v47, %v824_v49  ;;  %v844_v44 = vsub.f32 1.5, %v843_v19  ;;  %vm857_vm13 = vweird.f32 %v9446_v7  ;;  %v7208_v62 = vld [vmem:[#allocation8 + $0xb54] sm:$0xf0]  ;;  %v6333_v52 = vld [vmem:[#allocation8 + $0xac0] sm:$0xf]  ;;  %vm10163_vm15 = vmmov %vm10156_vm3 }
 0x155   :  { %v819_v45 = vsel %vm9488_vm10, %v9418_v24, %v815_v56  ;;  %v835_v36 = vmul.f32 %v9433_v2, %v834_v13  ;;  %v853_v54 = vmul.f32 0.5, %v852_v4  ;;  %v908_v12 = vrot.slane %v799_v38, 7  ;;  %v7224_v38 = vld [vmem:[#allocation8 + $0xbd4] sm:$0xf0]  ;;  %v7174_v56 = vld [vmem:[#allocation8 + $0xa44] sm:$0xf0] }
 0x156   :  { %v829_v41 = vsel %vm9500_vm11, %v9426_v47, %v825_v21  ;;  %v845_v24 = vmul.f32 %v9439_v35, %v844_v44  ;;  %v909_v5 = vrot.slane %v809_v22, 6  ;;  %v910_v46 = vrot.slane %v819_v45, 5  ;;  %v7190_v44 = vld [vmem:[#allocation8 + $0xac4] sm:$0xf0] }
 0x157   :  { %v839_v60 = vsel %vm9513_vm12, %v9433_v2, %v835_v36  ;;  %v854_v25 = vsub.f32 1.5, %v853_v54  ;;  %vm10152_vm14 = vweird.f32 %v9399_v28  ;;  %v911_v34 = vrot.slane %v829_v41, 4  ;;  %v7176_v2 = vld [vmem:[#allocation8 + $0xa54] sm:$0xf0]  ;;  %v7206_v45 = vld [vmem:[#allocation8 + $0xb44] sm:$0xf0] }
 0x158   :  { %v849_v0 = vsel %vm9526_vm0, %v9439_v35, %v845_v24  ;;  %vm9544_vm1 = vmor %vm10152_vm14, %vm857_vm13  ;;  %v912_v42 = vrot.slane %v839_v60, 3  ;;  %v6286_v63 = vor.u32 %v7178_v40, %v6285_v57  ;;  %vm10155_vm2 = vcmask 1040384   ;;  %v6341_v35 = vld [vmem:[#allocation8 + $0xad0] sm:$0xf]  ;;  %v6397_v40 = vld [vmem:[#allocation8 + $0xb40] sm:$0xf] }
 0x159   :  { %v855_v55 = vmul.f32 %v9446_v7, %v854_v25  ;;  %v913_v18 = vrot.slane %v849_v0, 2  ;;  %v936_v48 = vsel %vm10155_vm2, %v789_v23, %v908_v12  ;;  %v6350_v51 = vor.u32 %v7194_v33, %v6349_v26  ;;  %v6269_v23 = vld [vmem:[#allocation8 + $0xa40] sm:$0xf]  ;;  %v7222_v54 = vld [vmem:[#allocation8 + $0xbc4] sm:$0xf0]  ;;  %vm10162_vm9 = vmmov %vm10155_vm2 }
 0x15a   :  { %v937_v9 = vsel %vm10156_vm3, %v909_v5, %v910_v46  ;;  %3853 = vmatpush.bf16.msrb.mxu0 %v6286_v63  ;;  %v6414_v28 = vor.u32 %v7210_v59, %v6413_v30  ;;  %v6478_v8 = vor.u32 %v7226_v32, %v6477_v14  ;;  %v6278_v1 = vor.u32 %v7176_v2, %v6277_v16  ;;  %v6261_v12 = vld [vmem:[#allocation8 + $0xa30] sm:$0xf]  ;;  %v7172_v26 = vld [vmem:[#allocation8 + $0xa34] sm:$0xf0] }
 0x15b   :  { %v859_v49 = vsel %vm9544_vm1, %v9446_v7, %v855_v55  ;;  %3866 = vmatpush.bf16.msrb.mxu1 %v6350_v51  ;;  %v6342_v19 = vor.u32 %v7192_v3, %v6341_v35  ;;  %vm10157_vm5 = vcmask 1044484   ;;  %v6406_v22 = vor.u32 %v7208_v62, %v6405_v20  ;;  %v6461_v7 = vld [vmem:[#allocation8 + $0xbc0] sm:$0xf]  ;;  %v6325_v24 = vld [vmem:[#allocation8 + $0xab0] sm:$0xf] }
 0x15c   :  { %v914_v13 = vrot.slane %v859_v49, 1  ;;  %v939_v4 = vsel %vm10157_vm5, %v911_v34, %v912_v42  ;;  %3879 = vmatpush.bf16.msrb.mxu2 %v6414_v28  ;;  %3892 = vmatpush.bf16.msrb.mxu3 %v6478_v8  ;;  %v6470_v21 = vor.u32 %v7224_v38, %v6469_v58  ;;  %vm10158_vm6 = vcmask 1041408   ;;  %v7188_v5 = vld [vmem:[#allocation8 + $0xab4] sm:$0xf0]  ;;  %v6389_v46 = vld [vmem:[#allocation8 + $0xb30] sm:$0xf]  ;;  %vm10165_vm11 = vmmov %vm10157_vm5 }
 0x15d   :  { %v938_v57 = vsel %vm10158_vm6, %v936_v48, %v937_v9  ;;  %vm10159_vm4 = vcmask 1046534   ;;  %v6270_v17 = vor.u32 %v7174_v56, %v6269_v23  ;;  %vm10160_vm7 = vcmask 1045508   ;;  %v7204_v25 = vld [vmem:[#allocation8 + $0xb34] sm:$0xf0]  ;;  %v6453_v14 = vld [vmem:[#allocation8 + $0xbb0] sm:$0xf]  ;;  %vm10164_vm10 = vmmov %vm10158_vm6 }
 0x15e   :  { %v940_v36 = vsel %vm10159_vm4, %v913_v18, %v914_v13  ;;  %3854 = vmatpush.bf16.msrb.mxu0 %v6278_v1  ;;  %v6334_v41 = vor.u32 %v7190_v44, %v6333_v52  ;;  %vm10161_vm8 = vcmask 1043456   ;;  %v6398_v59 = vor.u32 %v7206_v45, %v6397_v40  ;;  %v7220_v32 = vld [vmem:[#allocation8 + $0xbb4] sm:$0xf0]  ;;  %v6253_v34 = vld [vmem:[#allocation8 + $0xa20] sm:$0xf]  ;;  %v9595_v40 = vpop.f32.mrf.mxu2  ;;  %v9597_v45 = vpop.f32.mrf.mxu3  ;;  %vm10166_vm12 = vmmov %vm10159_vm4 }
 0x15f   :  { %v941_v33 = vsel %vm10160_vm7, %v939_v4, %v940_v36  ;;  %3867 = vmatpush.bf16.msrb.mxu1 %v6342_v19  ;;  %v6462_v60 = vor.u32 %v7222_v54, %v6461_v7  ;;  %v6262_v47 = vor.u32 %v7172_v26, %v6261_v12  ;;  %v7170_v42 = vld [vmem:[#allocation8 + $0xa24] sm:$0xf0]  ;;  %v6326_v63 = vor.u32 %v7188_v5, %v6325_v24  ;;  %v6317_v19 = vld [vmem:[#allocation8 + $0xaa0] sm:$0xf]  ;;  %v6309_v54 = vld [vmem:[#allocation8 + $0xa90] sm:$0xf] }
 0x160   :  { %v942_v30 = vsel %vm10161_vm8, %v938_v57, %v941_v33  ;;  %3880 = vmatpush.bf16.msrb.mxu2 %v6406_v22  ;;  %3893 = vmatpush.bf16.msrb.mxu3 %v6470_v21  ;;  %v6390_v16 = vor.u32 %v7204_v25, %v6389_v46  ;;  %v6454_v2 = vor.u32 %v7220_v32, %v6453_v14  ;;  %v7186_v38 = vld [vmem:[#allocation8 + $0xaa4] sm:$0xf0]  ;;  %v6445_v56 = vld [vmem:[#allocation8 + $0xba0] sm:$0xf]  ;;  %v6245_v57 = vld [vmem:[#allocation8 + $0xa10] sm:$0xf] }
 0x161   :  { %v9559_v0 = vmul.f32 %v942_v30, %v154_v50  ;;  %v6254_v55 = vor.u32 %v7170_v42, %v6253_v34  ;;  %v7202_v23 = vld [vmem:[#allocation8 + $0xb24] sm:$0xf0]  ;;  %v9591_v50 = vpop.f32.mrf.mxu0  ;;  %v7184_v12 = vld [vmem:[#allocation8 + $0xa94] sm:$0xf0]  ;;  %v6373_v46 = vld [vmem:[#allocation8 + $0xb10] sm:$0xf]  ;;  %v6318_v25 = vor.u32 %v7186_v38, %v6317_v19 }
 0x162   :  { %3855 = vmatpush.bf16.msrb.mxu0 %v6270_v17  ;;  %v7218_v22 = vld [vmem:[#allocation8 + $0xba4] sm:$0xf0]  ;;  %v7168_v17 = vld [vmem:[#allocation8 + $0xa14] sm:$0xf0]  ;;  %vm10167_vm13 = vmmov %vm10160_vm7  ;;  %vm304_vm14 = vcmask 523264   ;;  %vm4925_vm4 = vcmask 1043459  }
 0x163   :  { %v970_v18 = vperm.slane %v9559_v0, 0  ;;  %v971_v48 = vperm.slane %v9559_v0, 1  ;;  %v972_v51 = vperm.slane %v9559_v0, 2  ;;  %v973_v35 = vperm.slane %v9559_v0, 3  ;;  %3868 = vmatpush.bf16.msrb.mxu1 %v6334_v41  ;;  %v7390_v24 = vld [vmem:[#allocation2 + $0x80] sm:$0xff]  ;;  %vm10168_vm0 = vmmov %vm10161_vm8 }
 0x164   :  { %v974_v3 = vperm.slane %v9559_v0, 4  ;;  %v975_v9 = vperm.slane %v9559_v0, 5  ;;  %v976_v28 = vperm.slane %v9559_v0, 6  ;;  %v977_v8 = vperm.slane %v9559_v0, 7  ;;  %3881 = vmatpush.bf16.msrb.mxu2 %v6398_v59  ;;  %3894 = vmatpush.bf16.msrb.mxu3 %v6462_v60  ;;  %v7200_v30 = vld [vmem:[#allocation8 + $0xb14] sm:$0xf0]  ;;  %vm10187_vm5 = vmmov %vm10162_vm9 }
 0x165   :  { %v1020_v1 = vmul.f32 %v970_v18, %v9284_v10  ;;  %v1021_v20 = vmul.f32 %v971_v48, %v9300_v37  ;;  %v1022_v62 = vmul.f32 %v972_v51, %v9303_v43  ;;  %v1023_v58 = vmul.f32 %v973_v35, %v9306_v39  ;;  %v6381_v39 = vld [vmem:[#allocation8 + $0xb20] sm:$0xf]  ;;  %v6437_v59 = vld [vmem:[#allocation8 + $0xb90] sm:$0xf]  ;;  %v7166_v42 = vld [vmem:[#allocation8 + $0xa04] sm:$0xf0] }
 0x166   :  { %v1024_v49 = vmul.f32 %v974_v3, %v9309_v6  ;;  %v1025_v10 = vmul.f32 %v975_v9, %v9318_v15  ;;  %v1026_v37 = vmul.f32 %v976_v28, %v9321_v61  ;;  %v1027_v43 = vmul.f32 %v977_v8, %v9331_v29  ;;  %3856 = vmatpush.bf16.msrb.mxu0 %v6262_v47  ;;  %v9593_v6 = vpop.f32.mrf.mxu1  ;;  %v158_v61 = vld [vmem:[#allocation7 + $0x10] sm:$0xff]  ;;  %v6237_v34 = vld [vmem:[#allocation8 + $0xa00] sm:$0xf] }
 0x167   :  { %v1067_v13 = vrot.slane %v1021_v20, 7  ;;  %v1068_v15 = vrot.slane %v1022_v62, 6  ;;  %v1069_v4 = vrot.slane %v1023_v58, 5  ;;  %3869 = vmatpush.bf16.msrb.mxu1 %v6326_v63  ;;  %v1118_v5 = vmul.f32 %v7390_v24, %v970_v18  ;;  %v7216_v47 = vld [vmem:[#allocation8 + $0xb94] sm:$0xf0] }
 0x168   :  { %v1070_v21 = vrot.slane %v1024_v49, 4  ;;  %v1071_v52 = vrot.slane %v1025_v10, 3  ;;  %v1072_v44 = vrot.slane %v1026_v37, 2  ;;  %v1073_v29 = vrot.slane %v1027_v43, 1  ;;  %3882 = vmatpush.bf16.msrb.mxu2 %v6390_v16  ;;  %3895 = vmatpush.bf16.msrb.mxu3 %v6454_v2  ;;  %v6365_v10 = vld [vmem:[#allocation8 + $0xb00] sm:$0xf] }
 0x169   :  { %v1088_v7 = vsel %vm10162_vm9, %v1020_v1, %v1067_v13  ;;  %v1089_v36 = vsel %vm10163_vm15, %v1068_v15, %v1069_v4  ;;  %v6382_v14 = vor.u32 %v7202_v23, %v6381_v39  ;;  %v6446_v32 = vor.u32 %v7218_v22, %v6445_v56  ;;  %v3603_v37 = vpop.f32.mrf.mxu0  ;;  %v6429_v38 = vld [vmem:[#allocation8 + $0xb80] sm:$0xf]  ;;  %v7214_v39 = vld [vmem:[#allocation8 + $0xb84] sm:$0xf0]  ;;  %v3629_v23 = vpop.f32.mrf.mxu2 }
 0x16a   :  { %v1090_v26 = vsel %vm10164_vm10, %v1088_v7, %v1089_v36  ;;  %v1091_v33 = vsel %vm10165_vm11, %v1070_v21, %v1071_v52  ;;  %v1092_v41 = vsel %vm10166_vm12, %v1072_v44, %v1073_v29  ;;  %3857 = vmatpush.bf16.msrb.mxu0 %v6254_v55  ;;  %v1120_v16 = vmul.f32 %v972_v51, %v9073_v31  ;;  %v6301_v31 = vld [vmem:[#allocation8 + $0xa80] sm:$0xf]  ;;  %v7182_v51 = vld [vmem:[#allocation8 + $0xa84] sm:$0xf0]  ;;  %v3642_v56 = vpop.f32.mrf.mxu3  ;;  %v7236_v21 = vld [vmem:[#allocation8 + $0xc34] sm:$0xf0] }
 0x16b   :  { %v1093_v60 = vsel %vm10167_vm13, %v1091_v33, %v1092_v41  ;;  %v1119_v2 = vmul.f32 %v971_v48, %v9071_v53  ;;  %v6246_v55 = vor.u32 %v7168_v17, %v6245_v57  ;;  %v1121_v1 = vmul.f32 %v973_v35, %v9092_v27  ;;  %3870 = vmatpush.bf16.msrb.mxu1 %v6318_v25  ;;  %v7198_v35 = vld [vmem:[#allocation8 + $0xb04] sm:$0xf0]  ;;  %v6859_v52 = vld [vmem:[#allocation8 + $0x74] sm:$0xf]  ;;  %v5015_v57 = vld [vmem:[#allocation8 + $0x78] sm:$0xf0] }
 0x16c   :  { %v1094_v63 = vsel %vm10168_vm0, %v1090_v26, %v1093_v60  ;;  %3883 = vmatpush.bf16.msrb.mxu2 %v6382_v14  ;;  %v6310_v20 = vor.u32 %v7184_v12, %v6309_v54  ;;  %3896 = vmatpush.bf16.msrb.mxu3 %v6446_v32  ;;  %v6374_v62 = vor.u32 %v7200_v30, %v6373_v46  ;;  %v6875_v7 = vld [vmem:[#allocation8 + $0xf4] sm:$0xf]  ;;  %v5079_v36 = vld [vmem:[#allocation8 + $0xf8] sm:$0xf0]  ;;  %v6509_v46 = vld [vmem:[#allocation8 + $0xc20] sm:$0xf] }
 0x16d   :  { %v9612_v18 = vsub.f32 %v158_v61, %v1094_v63  ;;  %v6438_v58 = vor.u32 %v7216_v47, %v6437_v59  ;;  %v6238_v49 = vor.u32 %v7166_v42, %v6237_v34  ;;  %v6517_v61 = vld [vmem:[#allocation8 + $0xc30] sm:$0xf]  ;;  %v6302_v44 = vor.u32 %v7182_v51, %v6301_v31  ;;  %v6891_v33 = vld [vmem:[#allocation8 + $0x174] sm:$0xf]  ;;  %v5143_v41 = vld [vmem:[#allocation8 + $0x178] sm:$0xf0] }
 0x16e   :  { %3858 = vmatpush.bf16.msrb.mxu0 %v6246_v55  ;;  %v3616_v53 = vpop.f32.mrf.mxu1  ;;  %v6366_v29 = vor.u32 %v7198_v35, %v6365_v10  ;;  %v6430_v24 = vor.u32 %v7214_v39, %v6429_v38  ;;  %v7234_v30 = vld [vmem:[#allocation8 + $0xc24] sm:$0xf0]  ;;  %v5018_v59 = vor.u32 %v6859_v52, %v5015_v57  ;;  %v5082_v60 = vor.u32 %v6875_v7, %v5079_v36  ;;  %v6857_v25 = vld [vmem:[#allocation8 + $0x64] sm:$0xf]  ;;  %v5007_v14 = vld [vmem:[#allocation8 + $0x68] sm:$0xf0] }
 0x16f   :  { %v1147_v48 = vperm.slane %v9612_v18, 0  ;;  %v1149_v43 = vperm.slane %v9612_v18, 2  ;;  %v1148_v19 = vperm.slane %v9612_v18, 1  ;;  %v1150_v27 = vperm.slane %v9612_v18, 3  ;;  %3871 = vmatpush.bf16.msrb.mxu1 %v6310_v20  ;;  %v1623_v32 = vld [vmem:[#allocation10] sm:$0x3] }
 0x170   :  { %3884 = vmatpush.bf16.msrb.mxu2 %v6374_v62  ;;  %3897 = vmatpush.bf16.msrb.mxu3 %v6438_v58  ;;  %v5146_v47 = vor.u32 %v6891_v33, %v5143_v41  ;;  %v6873_v34 = vld [vmem:[#allocation8 + $0xe4] sm:$0xf]  ;;  %v5071_v42 = vld [vmem:[#allocation8 + $0xe8] sm:$0xf0]  ;;  %v1625_v63 = vperm.slane %v1623_v32, 0  ;;  %v7392_v20 = vld [vmem:[#allocation2 + $0xb0] sm:$0xff]  ;;  %v6510_v53 = vor.u32 %v7234_v30, %v6509_v46 }
 0x171   :  { %v1197_v13 = vadd.f32 %v1147_v48, %v1118_v5  ;;  %v1199_v15 = vadd.f32 %v1149_v43, %v1120_v16  ;;  %v1198_v4 = vadd.f32 %v1148_v19, %v1119_v2  ;;  %v1200_v22 = vadd.f32 %v1150_v27, %v1121_v1  ;;  %v9633_v16 = vld [vmem:[#allocation2 + $0xc0] sm:$0xff]  ;;  %v5135_v31 = vld [vmem:[#allocation8 + $0x168] sm:$0xf0]  ;;  %v6855_v19 = vld [vmem:[#allocation8 + $0x54] sm:$0xf] }
 0x172   :  { %3859 = vmatpush.bf16.msrb.mxu0 %v6238_v49  ;;  %v6518_v5 = vor.u32 %v7236_v21, %v6517_v61  ;;  %v7391_v2 = vld [vmem:[#allocation2 + $0xa0] sm:$0xff]  ;;  %v1151_v1 = vperm.slane %v9612_v18, 4  ;;  %v1124_v62 = vmul.f32 %v7392_v20, %v976_v28  ;;  %v1153_v58 = vperm.slane %v9612_v18, 6  ;;  %v7393_v51 = vld [vmem:[#allocation2 + $0xa8] sm:$0xff]  ;;  %v7232_v28 = vld [vmem:[#allocation8 + $0xc14] sm:$0xf0] }
 0x173   :  { %v9621_v17 = vpack.c.bf16 %v1197_v13, %v1197_v13  ;;  %v9623_v54 = vpack.c.bf16 %v1199_v15, %v1199_v15  ;;  %v9625_v12 = vpack.c.bf16 %v1198_v4, %v1198_v4  ;;  %v9627_v26 = vpack.c.bf16 %v1200_v22, %v1200_v22  ;;  %3872 = vmatpush.bf16.msrb.mxu1 %v6302_v44  ;;  %v6889_v49 = vld [vmem:[#allocation8 + $0x164] sm:$0xf]  ;;  %v4999_v27 = vld [vmem:[#allocation8 + $0x58] sm:$0xf0]  ;;  %v6871_v56 = vld [vmem:[#allocation8 + $0xd4] sm:$0xf] }
 0x174   :  { %3885 = vmatpush.bf16.msrb.mxu2 %v6366_v29  ;;  %v1122_v55 = vmul.f32 %v7391_v2, %v974_v3  ;;  %3898 = vmatpush.bf16.msrb.mxu3 %v6430_v24  ;;  %v1123_v10 = vmul.f32 %v7393_v51, %v975_v9  ;;  %v1152_v37 = vperm.slane %v9612_v18, 5  ;;  %v6501_v3 = vld [vmem:[#allocation8 + $0xc10] sm:$0xf]  ;;  %v5010_v48 = vor.u32 %v6857_v25, %v5007_v14  ;;  %v7394_v38 = vld [vmem:[#allocation2 + $0xb8] sm:$0xff]  ;;  %v6887_v61 = vld [vmem:[#allocation8 + $0x154] sm:$0xf] }
 0x175   :  { %3808 = vmatmul.bf16.vlgmr.msra.gmra.mxu0 %v9621_v17  ;;  %3834 = vmatmul.bf16.vlgmr.msra.gmra.mxu2 %v9623_v54  ;;  %v5074_v43 = vor.u32 %v6873_v34, %v5071_v42  ;;  %v368_v35 = vmul.f32 %v9633_v16, %v9633_v16  ;;  %v1125_v9 = vmul.f32 %v7394_v38, %v977_v8  ;;  %v1154_v39 = vperm.slane %v9612_v18, 7  ;;  %v5063_v13 = vld [vmem:[#allocation8 + $0xd8] sm:$0xf0]  ;;  %v6493_v57 = vld [vmem:[#allocation8 + $0xc00] sm:$0xf] }
 0x176   :  { %3821 = vmatmul.bf16.vlgmr.msra.gmra.mxu1 %v9625_v12  ;;  %3847 = vmatmul.bf16.vlgmr.msra.gmra.mxu3 %v9627_v26  ;;  %v5138_v23 = vor.u32 %v6889_v49, %v5135_v31  ;;  %v3602_v15 = vadd.f32 %v9591_v50, %v1625_v63  ;;  %v1201_v4 = vadd.f32 %v1151_v1, %v1122_v55  ;;  %v5127_v21 = vld [vmem:[#allocation8 + $0x158] sm:$0xf0]  ;;  %v305_v0 = vsel %vm304_vm14, %v9633_v16, 0.0  ;;  %v7230_v7 = vld [vmem:[#allocation8 + $0xc04] sm:$0xf0] }
 0x177   :  { %3908 = vmatpush.bf16.msra.mxu0 %v6518_v5  ;;  %3917 = vmatpush.bf16.msra.mxu1 %v5018_v59  ;;  %v1203_v22 = vadd.f32 %v1153_v58, %v1124_v62  ;;  %v1202_v52 = vadd.f32 %v1152_v37, %v1123_v10  ;;  %v6502_v44 = vor.u32 %v7232_v28, %v6501_v3  ;;  %v306_v36 = vrot.slane %v305_v0, 4  ;;  %v6853_v46 = vld [vmem:[#allocation8 + $0x44] sm:$0xf]  ;;  %v5055_v25 = vld [vmem:[#allocation8 + $0xc8] sm:$0xf0] }
 0x178   :  { %3930 = vmatpush.bf16.msra.mxu2 %v5082_v60  ;;  %3943 = vmatpush.bf16.msra.mxu3 %v5146_v47  ;;  %v3615_v29 = vadd.f32 %v9593_v6, %v3602_v15  ;;  %v5002_v8 = vor.u32 %v6855_v19, %v4999_v27  ;;  %v5066_v18 = vor.u32 %v6871_v56, %v5063_v13  ;;  %v513_v50 = vsel %vm304_vm14, %v368_v35, 0.0  ;;  %v4991_v6 = vld [vmem:[#allocation8 + $0x48] sm:$0xf0]  ;;  %v6869_v30 = vld [vmem:[#allocation8 + $0xc4] sm:$0xf] }
 0x179   :  { %v1204_v33 = vadd.f32 %v1154_v39, %v1125_v9  ;;  %v5130_v41 = vor.u32 %v6887_v61, %v5127_v21  ;;  %v514_v5 = vrot.slane %v513_v50, 4  ;;  %v307_v59 = vadd.f32 %v306_v36, %v305_v0  ;;  %v6885_v14 = vld [vmem:[#allocation8 + $0x144] sm:$0xf]  ;;  %v5119_v32 = vld [vmem:[#allocation8 + $0x148] sm:$0xf0]  ;;  %v3653_v36 = vpop.f32.mrf.mxu0 }
 0x17a   :  { %v3628_v24 = vadd.f32 %v9595_v40, %v3615_v29  ;;  %v6494_v60 = vor.u32 %v7230_v7, %v6493_v57  ;;  %v9658_v42 = vpack.c.bf16 %v1201_v4, %v1201_v4  ;;  %v9660_v63 = vpack.c.bf16 %v1203_v22, %v1203_v22  ;;  %v6907_v40 = vld [vmem:[#allocation8 + $0x1f4] sm:$0xf]  ;;  %v5207_v2 = vld [vmem:[#allocation8 + $0x1f8] sm:$0xf0]  ;;  %v6905_v19 = vld [vmem:[#allocation8 + $0x1e4] sm:$0xf] }
 0x17b   :  { %3909 = vmatpush.bf16.msra.mxu0 %v6510_v53  ;;  %3918 = vmatpush.bf16.msra.mxu1 %v5010_v48  ;;  %v515_v34 = vadd.f32 %v514_v5, %v513_v50  ;;  %v308_v55 = vrot.slane %v307_v59, 2  ;;  %v9662_v1 = vpack.c.bf16 %v1202_v52, %v1202_v52  ;;  %v9664_v20 = vpack.c.bf16 %v1204_v33, %v1204_v33  ;;  %v4983_v31 = vld [vmem:[#allocation8 + $0x38] sm:$0xf0]  ;;  %v6867_v51 = vld [vmem:[#allocation8 + $0xb4] sm:$0xf]  ;;  %v3666_v50 = vpop.f32.mrf.mxu1 }
 0x17c   :  { %3931 = vmatpush.bf16.msra.mxu2 %v5074_v43  ;;  %3944 = vmatpush.bf16.msra.mxu3 %v5138_v23  ;;  %v9656_v47 = vadd.f32 %v9597_v45, %v3628_v24  ;;  %v4994_v58 = vor.u32 %v6853_v46, %v4991_v6  ;;  %v5058_v49 = vor.u32 %v6869_v30, %v5055_v25  ;;  %v6851_v45 = vld [vmem:[#allocation8 + $0x34] sm:$0xf]  ;;  %v5047_v3 = vld [vmem:[#allocation8 + $0xb8] sm:$0xf0]  ;;  %v5199_v27 = vld [vmem:[#allocation8 + $0x1e8] sm:$0xf0]  ;;  %v3679_v30 = vpop.f32.mrf.mxu2 }
 0x17d   :  { %v516_v62 = vrot.slane %v515_v34, 2  ;;  %v309_v10 = vadd.f32 %v308_v55, %v307_v59  ;;  %v5122_v37 = vor.u32 %v6885_v14, %v5119_v32  ;;  %v5210_v53 = vor.u32 %v6907_v40, %v5207_v2  ;;  %v6883_v48 = vld [vmem:[#allocation8 + $0x134] sm:$0xf]  ;;  %v5111_v43 = vld [vmem:[#allocation8 + $0x138] sm:$0xf0]  ;;  %v3692_v59 = vpop.f32.mrf.mxu3 }
 0x17e   :  { %v4986_v9 = vor.u32 %v6851_v45, %v4983_v31  ;;  %v5050_v39 = vor.u32 %v6867_v51, %v5047_v3  ;;  %v5114_v56 = vor.u32 %v6883_v48, %v5111_v43  ;;  %v5202_v13 = vor.u32 %v6905_v19, %v5199_v27  ;;  %v4975_v29 = vld [vmem:[#allocation8 + $0x28] sm:$0xf0]  ;;  %v6865_v0 = vld [vmem:[#allocation8 + $0xa4] sm:$0xf]  ;;  %v6903_v24 = vld [vmem:[#allocation8 + $0x1d4] sm:$0xf] }
 0x17f   :  { %3910 = vmatpush.bf16.msra.mxu0 %v6502_v44  ;;  %3919 = vmatpush.bf16.msra.mxu1 %v5002_v8  ;;  %v517_v28 = vadd.f32 %v516_v62, %v515_v34  ;;  %v310_v35 = vrot.slane %v309_v10, 1  ;;  %v6849_v44 = vld [vmem:[#allocation8 + $0x24] sm:$0xf]  ;;  %v5103_v7 = vld [vmem:[#allocation8 + $0x128] sm:$0xf0]  ;;  %v3654_v6 = vadd.f32 %v3653_v36, %v9656_v47  ;;  %vm4927_vm7 = vcmask 1042432  }
 0x180   :  { %3932 = vmatpush.bf16.msra.mxu2 %v5066_v18  ;;  %3945 = vmatpush.bf16.msra.mxu3 %v5130_v41  ;;  %v4978_v8 = vor.u32 %v6849_v44, %v4975_v29  ;;  %v5039_v18 = vld [vmem:[#allocation8 + $0xa8] sm:$0xf0]  ;;  %v6881_v57 = vld [vmem:[#allocation8 + $0x124] sm:$0xf]  ;;  %v5191_v5 = vld [vmem:[#allocation8 + $0x1d8] sm:$0xf0] }
 0x181   :  { %v518_v38 = vrot.slane %v517_v28, 1  ;;  %v311_v23 = vadd.f32 %v310_v35, %v309_v10  ;;  %v5042_v33 = vor.u32 %v6865_v0, %v5039_v18  ;;  %v5106_v41 = vor.u32 %v6881_v57, %v5103_v7  ;;  %v6847_v46 = vld [vmem:[#allocation8 + $0x14] sm:$0xf]  ;;  %v4967_v25 = vld [vmem:[#allocation8 + $0x18] sm:$0xf0] }
 0x182   :  { %v6863_v14 = vld [vmem:[#allocation8 + $0x94] sm:$0xf]  ;;  %v5031_v32 = vld [vmem:[#allocation8 + $0x98] sm:$0xf0]  ;;  %v4970_v34 = vor.u32 %v6847_v46, %v4967_v25  ;;  %v6901_v62 = vld [vmem:[#allocation8 + $0x1c4] sm:$0xf] }
 0x183   :  { %3911 = vmatpush.bf16.msra.mxu0 %v6494_v60  ;;  %3920 = vmatpush.bf16.msra.mxu1 %v4994_v58  ;;  %v519_v15 = vadd.f32 %v518_v38, %v517_v28  ;;  %v9671_v4 = vmul.f32 %v7932_v11, %v311_v23  ;;  %v5194_v60 = vor.u32 %v6903_v24, %v5191_v5  ;;  %v6879_v2 = vld [vmem:[#allocation8 + $0x114] sm:$0xf]  ;;  %v5095_v55 = vld [vmem:[#allocation8 + $0x118] sm:$0xf0]  ;;  %v5183_v45 = vld [vmem:[#allocation8 + $0x1c8] sm:$0xf0]  ;;  %v3668_v29 = vpop.f32.mrf.mxu1 }
 0x184   :  { %3933 = vmatpush.bf16.msra.mxu2 %v5058_v49  ;;  %3946 = vmatpush.bf16.msra.mxu3 %v5122_v37  ;;  %v5034_v40 = vor.u32 %v6863_v14, %v5031_v32  ;;  %v3667_v58 = vadd.f32 %v3666_v50, %v3654_v6  ;;  %v5098_v49 = vor.u32 %v6879_v2, %v5095_v55  ;;  %v6845_v31 = vld [vmem:[#allocation8 + $0x4] sm:$0xf]  ;;  %v4959_v47 = vld [vmem:[#allocation8 + $0x8] sm:$0xf0]  ;;  %v6899_v19 = vld [vmem:[#allocation8 + $0x1b4] sm:$0xf]  ;;  %v3681_v36 = vpop.f32.mrf.mxu2 }
 0x185   :  { %3860 = vmatmul.bf16.vlgmr.msrb.gmra.mxu0 %v9658_v42  ;;  %3886 = vmatmul.bf16.vlgmr.msrb.gmra.mxu2 %v9660_v63  ;;  %v544_v22 = vmul.f32 %v519_v15, %v7932_v11  ;;  %v569_v61 = vmul.f32 %v9671_v4, %v9671_v4  ;;  %v5186_v51 = vor.u32 %v6901_v62, %v5183_v45  ;;  %v6861_v10 = vld [vmem:[#allocation8 + $0x84] sm:$0xf]  ;;  %v5023_v37 = vld [vmem:[#allocation8 + $0x88] sm:$0xf0]  ;;  %v5175_v27 = vld [vmem:[#allocation8 + $0x1b8] sm:$0xf0]  ;;  %v3694_v50 = vpop.f32.mrf.mxu3 }
 0x186   :  { %3873 = vmatmul.bf16.vlgmr.msrb.gmra.mxu1 %v9662_v1  ;;  %3899 = vmatmul.bf16.vlgmr.msrb.gmra.mxu3 %v9664_v20  ;;  %v3680_v3 = vadd.f32 %v3679_v30, %v3667_v58  ;;  %v4962_v43 = vor.u32 %v6845_v31, %v4959_v47  ;;  %v5087_v28 = vld [vmem:[#allocation8 + $0x108] sm:$0xf0]  ;;  %v5026_v38 = vor.u32 %v6861_v10, %v5023_v37  ;;  %v5271_v23 = vld [vmem:[#allocation8 + $0x278] sm:$0xf0]  ;;  %v6897_v57 = vld [vmem:[#allocation8 + $0x1a4] sm:$0xf] }
 0x187   :  { %3956 = vmatpush.bf16.msrb.mxu0 %v5210_v53  ;;  %3921 = vmatpush.bf16.msra.mxu1 %v4986_v9  ;;  %v594_v21 = vsub.f32 %v544_v22, %v569_v61  ;;  %v6877_v53 = vld [vmem:[#allocation8 + $0x104] sm:$0xf]  ;;  %v5335_v22 = vld [vmem:[#allocation8 + $0x2f8] sm:$0xf0]  ;;  %v6955_v61 = vld [vmem:[#allocation8 + $0x374] sm:$0xf] }
 0x188   :  { %3934 = vmatpush.bf16.msra.mxu2 %v5050_v39  ;;  %3947 = vmatpush.bf16.msra.mxu3 %v5114_v56  ;;  %v5090_v9 = vor.u32 %v6877_v53, %v5087_v28  ;;  %v6923_v39 = vld [vmem:[#allocation8 + $0x274] sm:$0xf]  ;;  %v3693_v44 = vadd.f32 %v3692_v59, %v3680_v3  ;;  %v5399_v18 = vld [vmem:[#allocation8 + $0x378] sm:$0xf0]  ;;  %v5167_v7 = vld [vmem:[#allocation8 + $0x1a8] sm:$0xf0] }
 0x189   :  { %v9676_v52 = vadd.f32 1e-05, %v594_v21  ;;  %v6939_v56 = vld [vmem:[#allocation8 + $0x2f4] sm:$0xf]  ;;  %v5274_v15 = vor.u32 %v6923_v39, %v5271_v23  ;;  %v3655_v21 = vpop.f32.mrf.mxu0  ;;  %v5263_v24 = vld [vmem:[#allocation8 + $0x268] sm:$0xf0]  ;;  %v5170_v59 = vor.u32 %v6897_v57, %v5167_v7 }
 0x18a   :  { %v6937_v5 = vld [vmem:[#allocation8 + $0x2e4] sm:$0xf]  ;;  %v5327_v6 = vld [vmem:[#allocation8 + $0x2e8] sm:$0xf0]  ;;  %v6895_v14 = vld [vmem:[#allocation8 + $0x194] sm:$0xf] }
 0x18b   :  { %3957 = vmatpush.bf16.msrb.mxu0 %v5202_v13  ;;  %7380 = vrsqrt.f32 %v9676_v52  ;;  %3922 = vmatpush.bf16.msra.mxu1 %v4978_v8  ;;  %v5178_v13 = vor.u32 %v6899_v19, %v5175_v27  ;;  %v5338_v8 = vor.u32 %v6939_v56, %v5335_v22  ;;  %vm866_vm1 = vweird.f32 %v9676_v52  ;;  %v6953_v30 = vld [vmem:[#allocation8 + $0x364] sm:$0xf]  ;;  %v5391_v25 = vld [vmem:[#allocation8 + $0x368] sm:$0xf0]  ;;  %v5159_v32 = vld [vmem:[#allocation8 + $0x198] sm:$0xf0] }
 0x18c   :  { %3935 = vmatpush.bf16.msra.mxu2 %v5042_v33  ;;  %3948 = vmatpush.bf16.msra.mxu3 %v5106_v41  ;;  %v5402_v33 = vor.u32 %v6955_v61, %v5399_v18  ;;  %v6921_v41 = vld [vmem:[#allocation8 + $0x264] sm:$0xf]  ;;  %v5330_v2 = vor.u32 %v6937_v5, %v5327_v6  ;;  %v5394_v55 = vor.u32 %v6953_v30, %v5391_v25  ;;  %v6919_v62 = vld [vmem:[#allocation8 + $0x254] sm:$0xf]  ;;  %v5255_v58 = vld [vmem:[#allocation8 + $0x258] sm:$0xf0] }
 0x18d   :  { %v5319_v45 = vld [vmem:[#allocation8 + $0x2d8] sm:$0xf0]  ;;  %v6951_v31 = vld [vmem:[#allocation8 + $0x354] sm:$0xf]  ;;  %v155_v10 = vld [vmem:[#allocation5 + $0x18] sm:$0x1]  ;;  %v5162_v3 = vor.u32 %v6895_v14, %v5159_v32  ;;  %v3731_v22 = vpop.f32.mrf.mxu2 }
 0x18e   :  { %v10171_v47 = vld [vmem:[#allocation58_spill] sm:$0xff]  ;;  %v10173_v53 = vld [vmem:[#allocation57_spill] sm:$0xff]  ;;  %v3744_v61 = vpop.f32.mrf.mxu3  ;;  %v5311_v29 = vld [vmem:[#allocation8 + $0x2c8] sm:$0xf0] }
 0x18f   :  { %3958 = vmatpush.bf16.msrb.mxu0 %v5194_v60  ;;  %3923 = vmatpush.bf16.msra.mxu1 %v4970_v34  ;;  %v5266_v60 = vor.u32 %v6921_v41, %v5263_v24  ;;  %v5383_v37 = vld [vmem:[#allocation8 + $0x358] sm:$0xf0]  ;;  %v6893_v27 = vld [vmem:[#allocation8 + $0x184] sm:$0xf]  ;;  %v6931_v24 = vld [vmem:[#allocation8 + $0x2b4] sm:$0xf] }
 0x190   :  { %3936 = vmatpush.bf16.msra.mxu2 %v5034_v40  ;;  %3949 = vmatpush.bf16.msra.mxu3 %v5098_v49  ;;  %v6935_v49 = vld [vmem:[#allocation8 + $0x2d4] sm:$0xf]  ;;  %v5386_v39 = vor.u32 %v6951_v31, %v5383_v37  ;;  %v6917_v56 = vld [vmem:[#allocation8 + $0x244] sm:$0xf]  ;;  %v159_v57 = vld [vmem:[#allocation7 + $0x18] sm:$0x1] }
 0x191   :  { %v9680_v48 = vpop.eup %7380  ;;  %v5322_v28 = vor.u32 %v6935_v49, %v5319_v45  ;;  %v3705_v19 = vpop.f32.mrf.mxu0  ;;  %v5239_v41 = vld [vmem:[#allocation8 + $0x238] sm:$0xf0]  ;;  %v6947_v30 = vld [vmem:[#allocation8 + $0x334] sm:$0xf]  ;;  %v6913_v49 = vld [vmem:[#allocation8 + $0x224] sm:$0xf] }
 0x192   :  { %v861_v35 = vmul.f32 %v9680_v48, %v9676_v52  ;;  %vm867_vm2 = vweird.f32 %v9680_v48  ;;  %v3706_v23 = vadd.f32 %v3705_v19, %v3693_v44  ;;  %v5303_v6 = vld [vmem:[#allocation8 + $0x2b8] sm:$0xf0]  ;;  %v6971_v32 = vld [vmem:[#allocation8 + $0x3f4] sm:$0xf] }
 0x193   :  { %3959 = vmatpush.bf16.msrb.mxu0 %v5186_v51  ;;  %3924 = vmatpush.bf16.msra.mxu1 %v4962_v43  ;;  %vm9691_vm3 = vmor %vm866_vm1, %vm867_vm2  ;;  %v10172_v51 = vld [vmem:[#allocation59_spill] sm:$0xff]  ;;  %v5258_v43 = vor.u32 %v6919_v62, %v5255_v58  ;;  %v5306_v62 = vor.u32 %v6931_v24, %v5303_v6  ;;  %v6911_v19 = vld [vmem:[#allocation8 + $0x214] sm:$0xf] }
 0x194   :  { %v862_v0 = vmul.f32 %v9680_v48, %v861_v35  ;;  %3937 = vmatpush.bf16.msra.mxu2 %v5026_v38  ;;  %3950 = vmatpush.bf16.msra.mxu3 %v5090_v9  ;;  %v5151_v35 = vld [vmem:[#allocation8 + $0x188] sm:$0xf0]  ;;  %v3718_v38 = vpop.f32.mrf.mxu1  ;;  %v7003_v6 = vld [vmem:[#allocation8 + $0x4f4] sm:$0xf] }
 0x195   :  { %v3719_v18 = vadd.f32 %v3718_v38, %v3706_v23  ;;  %v5154_v36 = vor.u32 %v6893_v27, %v5151_v35  ;;  %v3733_v45 = vpop.f32.mrf.mxu2  ;;  %v5223_v27 = vld [vmem:[#allocation8 + $0x218] sm:$0xf0]  ;;  %v5455_v38 = vld [vmem:[#allocation8 + $0x3e8] sm:$0xf0] }
 0x196   :  { %v863_v46 = vmul.f32 0.5, %v862_v0  ;;  %3925 = vmatmul.bf16.vlgmr.msra.gmra.mxu1 %v10173_v53  ;;  %v6949_v0 = vld [vmem:[#allocation8 + $0x344] sm:$0xf]  ;;  %v3746_v31 = vpop.f32.mrf.mxu3  ;;  %v5287_v23 = vld [vmem:[#allocation8 + $0x298] sm:$0xf0] }
 0x197   :  { %3960 = vmatpush.bf16.msrb.mxu0 %v5178_v13  ;;  %3969 = vmatpush.bf16.msrb.mxu1 %v5274_v15  ;;  %v5247_v13 = vld [vmem:[#allocation8 + $0x248] sm:$0xf0]  ;;  %v6933_v15 = vld [vmem:[#allocation8 + $0x2c4] sm:$0xf]  ;;  %v3732_v5 = vadd.f32 %v3731_v22, %v3719_v18  ;;  %v5447_v22 = vld [vmem:[#allocation8 + $0x3d8] sm:$0xf0] }
 0x198   :  { %v864_v34 = vsub.f32 1.5, %v863_v46  ;;  %3982 = vmatpush.bf16.msrb.mxu2 %v5338_v8  ;;  %3995 = vmatpush.bf16.msrb.mxu3 %v5402_v33  ;;  %v5375_v8 = vld [vmem:[#allocation8 + $0x348] sm:$0xf0]  ;;  %v5314_v50 = vor.u32 %v6933_v15, %v5311_v29  ;;  %v6915_v33 = vld [vmem:[#allocation8 + $0x234] sm:$0xf] }
 0x199   :  { %3938 = vmatmul.bf16.vlgmr.msra.gmra.mxu2 %v10171_v47  ;;  %3951 = vmatmul.bf16.vlgmr.msra.gmra.mxu3 %v10172_v51  ;;  %v5378_v44 = vor.u32 %v6949_v0, %v5375_v8  ;;  %v3707_v40 = vpop.f32.mrf.mxu0  ;;  %v6929_v51 = vld [vmem:[#allocation8 + $0x2a4] sm:$0xf]  ;;  %v6967_v15 = vld [vmem:[#allocation8 + $0x3d4] sm:$0xf]  ;;  %v5519_v31 = vld [vmem:[#allocation8 + $0x468] sm:$0xf0] }
 0x19a   :  { %v865_v52 = vmul.f32 %v9680_v48, %v864_v34  ;;  %v5242_v34 = vor.u32 %v6915_v33, %v5239_v41  ;;  %v6909_v18 = vld [vmem:[#allocation8 + $0x204] sm:$0xf]  ;;  %v5343_v41 = vld [vmem:[#allocation8 + $0x308] sm:$0xf0] }
 0x19b   :  { %3961 = vmatpush.bf16.msrb.mxu0 %v5170_v59  ;;  %3970 = vmatpush.bf16.msrb.mxu1 %v5266_v60  ;;  %v5367_v59 = vld [vmem:[#allocation8 + $0x338] sm:$0xf0]  ;;  %v3745_v60 = vadd.f32 %v3744_v61, %v3732_v5  ;;  %v5226_v61 = vor.u32 %v6911_v19, %v5223_v27  ;;  %v6941_v33 = vld [vmem:[#allocation8 + $0x304] sm:$0xf]  ;;  %v6987_v5 = vld [vmem:[#allocation8 + $0x474] sm:$0xf] }
 0x19c   :  { %v869_v9 = vsel %vm9691_vm3, %v9680_v48, %v865_v52  ;;  %3983 = vmatpush.bf16.msrb.mxu2 %v5330_v2  ;;  %3996 = vmatpush.bf16.msrb.mxu3 %v5394_v55  ;;  %v5250_v48 = vor.u32 %v6917_v56, %v5247_v13  ;;  %v3720_v2 = vpop.f32.mrf.mxu1  ;;  %v5463_v55 = vld [vmem:[#allocation8 + $0x3f8] sm:$0xf0]  ;;  %v5370_v58 = vor.u32 %v6947_v30, %v5367_v59  ;;  %v6945_v52 = vld [vmem:[#allocation8 + $0x324] sm:$0xf]  ;;  %v6943_v56 = vld [vmem:[#allocation8 + $0x314] sm:$0xf] }
 0x19d   :  { %v949_v21 = vmul.f32 %v869_v9, %v155_v10  ;;  %v5295_v10 = vld [vmem:[#allocation8 + $0x2a8] sm:$0xf0]  ;;  %v5351_v13 = vld [vmem:[#allocation8 + $0x318] sm:$0xf0]  ;;  %v6965_v2 = vld [vmem:[#allocation8 + $0x3c4] sm:$0xf] }
 0x19e   :  { %v3796_v24 = vpop.f32.mrf.mxu3  ;;  %v6985_v45 = vld [vmem:[#allocation8 + $0x464] sm:$0xf]  ;;  %v5431_v19 = vld [vmem:[#allocation8 + $0x3b8] sm:$0xf0] }
 0x19f   :  { %v978_v7 = vperm.slane %v949_v21, 0  ;;  %3962 = vmatpush.bf16.msrb.mxu0 %v5162_v3  ;;  %3971 = vmatpush.bf16.msrb.mxu1 %v5258_v43  ;;  %v5466_v3 = vor.u32 %v6971_v32, %v5463_v55  ;;  %v6969_v43 = vld [vmem:[#allocation8 + $0x3e4] sm:$0xf]  ;;  %v5655_v32 = vld [vmem:[#allocation8 + $0x578] sm:$0xf0]  ;;  %v5522_v27 = vor.u32 %v6985_v45, %v5519_v31 }
 0x1a0   :  { %3984 = vmatpush.bf16.msrb.mxu2 %v5322_v28  ;;  %3997 = vmatpush.bf16.msrb.mxu3 %v5386_v39  ;;  %v5298_v28 = vor.u32 %v6929_v51, %v5295_v10  ;;  %v6927_v39 = vld [vmem:[#allocation8 + $0x294] sm:$0xf]  ;;  %v5458_v0 = vor.u32 %v6969_v43, %v5455_v38  ;;  %v5439_v55 = vld [vmem:[#allocation8 + $0x3c8] sm:$0xf0]  ;;  %v5719_v31 = vld [vmem:[#allocation8 + $0x5f8] sm:$0xf0] }
 0x1a1   :  { %v1028_v46 = vmul.f32 %v978_v7, %v9671_v4  ;;  %v1126_v14 = vmul.f32 %v978_v7, %v9633_v16  ;;  %v5231_v4 = vld [vmem:[#allocation8 + $0x228] sm:$0xf0]  ;;  %v3757_v21 = vpop.f32.mrf.mxu0  ;;  %v5290_v8 = vor.u32 %v6927_v39, %v5287_v23  ;;  %v6925_v7 = vld [vmem:[#allocation8 + $0x284] sm:$0xf]  ;;  %v6983_v23 = vld [vmem:[#allocation8 + $0x454] sm:$0xf] }
 0x1a2   :  { %v5359_v16 = vld [vmem:[#allocation8 + $0x328] sm:$0xf0]  ;;  %v5234_v53 = vor.u32 %v6913_v49, %v5231_v4  ;;  %v7035_v45 = vld [vmem:[#allocation8 + $0x5f4] sm:$0xf] }
 0x1a3   :  { %v1101_v25 = vsub.f32 %v159_v57, %v1028_v46  ;;  %3963 = vmatpush.bf16.msrb.mxu0 %v5154_v36  ;;  %3972 = vmatpush.bf16.msrb.mxu1 %v5250_v48  ;;  %v5362_v9 = vor.u32 %v6945_v52, %v5359_v16  ;;  %v5215_v57 = vld [vmem:[#allocation8 + $0x208] sm:$0xf0]  ;;  %v3758_v36 = vadd.f32 %v3757_v21, %v3745_v60  ;;  %v3783_v48 = vpop.f32.mrf.mxu2  ;;  %v5527_v46 = vld [vmem:[#allocation8 + $0x478] sm:$0xf0]  ;;  %v7017_v52 = vld [vmem:[#allocation8 + $0x564] sm:$0xf] }
 0x1a4   :  { %3985 = vmatpush.bf16.msrb.mxu2 %v5314_v50  ;;  %3998 = vmatpush.bf16.msrb.mxu3 %v5378_v44  ;;  %v3770_v29 = vpop.f32.mrf.mxu1  ;;  %v5354_v50 = vor.u32 %v6943_v56, %v5351_v13  ;;  %v5279_v44 = vld [vmem:[#allocation8 + $0x288] sm:$0xf0]  ;;  %v5218_v59 = vor.u32 %v6909_v18, %v5215_v57  ;;  %v5511_v56 = vld [vmem:[#allocation8 + $0x458] sm:$0xf0]  ;;  %v6999_v13 = vld [vmem:[#allocation8 + $0x4d4] sm:$0xf] }
 0x1a5   :  { %v1155_v47 = vperm.slane %v1101_v25, 0  ;;  %v3771_v30 = vadd.f32 %v3770_v29, %v3758_v36  ;;  %v5591_v25 = vld [vmem:[#allocation8 + $0x4f8] sm:$0xf0]  ;;  %v5282_v60 = vor.u32 %v6925_v7, %v5279_v44  ;;  %v5583_v10 = vld [vmem:[#allocation8 + $0x4e8] sm:$0xf0]  ;;  %v5514_v7 = vor.u32 %v6983_v23, %v5511_v56 }
 0x1a6   :  { %v5594_v49 = vor.u32 %v7003_v6, %v5591_v25  ;;  %v5647_v16 = vld [vmem:[#allocation8 + $0x568] sm:$0xf0]  ;;  %v3798_v38 = vpop.f32.mrf.mxu3  ;;  %v7015_v21 = vld [vmem:[#allocation8 + $0x554] sm:$0xf]  ;;  %v5639_v29 = vld [vmem:[#allocation8 + $0x558] sm:$0xf0] }
 0x1a7   :  { %v1205_v37 = vadd.f32 %v1155_v47, %v1126_v14  ;;  %3973 = vmatpush.bf16.msrb.mxu1 %v5242_v34  ;;  %v7019_v14 = vld [vmem:[#allocation8 + $0x574] sm:$0xf]  ;;  %v5450_v34 = vor.u32 %v6967_v15, %v5447_v22  ;;  %v3784_v40 = vadd.f32 %v3783_v48, %v3771_v30  ;;  %v7001_v47 = vld [vmem:[#allocation8 + $0x4e4] sm:$0xf]  ;;  %v5650_v39 = vor.u32 %v7017_v52, %v5647_v16  ;;  %v5423_v57 = vld [vmem:[#allocation8 + $0x3a8] sm:$0xf0] }
 0x1a8   :  { %3986 = vmatpush.bf16.msrb.mxu2 %v5306_v62  ;;  %3999 = vmatpush.bf16.msrb.mxu3 %v5370_v58  ;;  %v5346_v62 = vor.u32 %v6941_v33, %v5343_v41  ;;  %v5530_v58 = vor.u32 %v6987_v5, %v5527_v46  ;;  %v5658_v4 = vor.u32 %v7019_v14, %v5655_v32  ;;  %v10174_v15 = vld [vmem:[#allocation63_spill] sm:$0xff]  ;;  %v10175_v22 = vld [vmem:[#allocation61_spill] sm:$0xff]  ;;  %v10177_v41 = vld [vmem:[#allocation60_spill] sm:$0xff] }
 0x1a9   :  { %v9704_v35 = vpack.c.bf16 %v1205_v37, %v1205_v37  ;;  %v9708_v51 = vadd.f32 %v3796_v24, %v3784_v40  ;;  %v3759_v37 = vpop.f32.mrf.mxu0  ;;  %v6961_v18 = vld [vmem:[#allocation8 + $0x3a4] sm:$0xf]  ;;  %v5642_v48 = vor.u32 %v7015_v21, %v5639_v29  ;;  %v5503_v44 = vld [vmem:[#allocation8 + $0x448] sm:$0xf0]  ;;  %v6959_v30 = vld [vmem:[#allocation8 + $0x394] sm:$0xf] }
 0x1aa   :  { %v6997_v33 = vld [vmem:[#allocation8 + $0x4c4] sm:$0xf]  ;;  %v5567_v24 = vld [vmem:[#allocation8 + $0x4c8] sm:$0xf0]  ;;  %v5426_v6 = vor.u32 %v6961_v18, %v5423_v57  ;;  %v6995_v40 = vld [vmem:[#allocation8 + $0x4b4] sm:$0xf] }
 0x1ab   :  { %6523 = vmatmul.msk.bf16.vlgmr.msra.gmra.mxu0 %vm304_vm14, %v9704_v35  ;;  %3974 = vmatpush.bf16.msrb.mxu1 %v5234_v53  ;;  %v3785_v43 = vpop.f32.mrf.mxu2  ;;  %v7013_v5 = vld [vmem:[#allocation8 + $0x544] sm:$0xf]  ;;  %v5631_v46 = vld [vmem:[#allocation8 + $0x548] sm:$0xf0]  ;;  %v5570_v14 = vor.u32 %v6997_v33, %v5567_v24  ;;  %v7007_v21 = vld [vmem:[#allocation8 + $0x514] sm:$0xf] }
 0x1ac   :  { %4008 = vmatpush.bf16.msra.mxu0 %v5466_v3  ;;  %3987 = vmatpush.bf16.msrb.mxu2 %v5298_v28  ;;  %v3772_v53 = vpop.f32.mrf.mxu1  ;;  %v5442_v3 = vor.u32 %v6965_v2, %v5439_v55  ;;  %v6963_v28 = vld [vmem:[#allocation8 + $0x3b4] sm:$0xf]  ;;  %v5634_v32 = vor.u32 %v7013_v5, %v5631_v46  ;;  %v5559_v2 = vld [vmem:[#allocation8 + $0x4b8] sm:$0xf0]  ;;  %v6977_v16 = vld [vmem:[#allocation8 + $0x424] sm:$0xf] }
 0x1ad   :  { %4000 = vmatpush.bf16.msrb.mxu3 %v5362_v9  ;;  %v5586_v9 = vor.u32 %v7001_v47, %v5583_v10  ;;  %v7011_v55 = vld [vmem:[#allocation8 + $0x534] sm:$0xf]  ;;  %v5562_v10 = vor.u32 %v6995_v40, %v5559_v2  ;;  %v5487_v37 = vld [vmem:[#allocation8 + $0x428] sm:$0xf0]  ;;  %v6993_v53 = vld [vmem:[#allocation8 + $0x4a4] sm:$0xf] }
 0x1ae   :  { %v7009_v43 = vld [vmem:[#allocation8 + $0x524] sm:$0xf]  ;;  %v5607_v29 = vld [vmem:[#allocation8 + $0x518] sm:$0xf0]  ;;  %v5535_v33 = vld [vmem:[#allocation8 + $0x488] sm:$0xf0] }
 0x1af   :  { %3975 = vmatpush.bf16.msrb.mxu1 %v5226_v61  ;;  %v5575_v61 = vld [vmem:[#allocation8 + $0x4d8] sm:$0xf0]  ;;  %v7033_v38 = vld [vmem:[#allocation8 + $0x5e4] sm:$0xf]  ;;  %v5599_v5 = vld [vmem:[#allocation8 + $0x508] sm:$0xf0] }
 0x1b0   :  { %4009 = vmatpush.bf16.msra.mxu0 %v5458_v0  ;;  %3988 = vmatpush.bf16.msrb.mxu2 %v5290_v8  ;;  %v5434_v0 = vor.u32 %v6963_v28, %v5431_v19  ;;  %v10176_v8 = vld [vmem:[#allocation62_spill] sm:$0xff]  ;;  %v5578_v36 = vor.u32 %v6999_v13, %v5575_v61  ;;  %v5615_v28 = vld [vmem:[#allocation8 + $0x528] sm:$0xf0]  ;;  %v6975_v13 = vld [vmem:[#allocation8 + $0x414] sm:$0xf] }
 0x1b1   :  { %4001 = vmatpush.bf16.msrb.mxu3 %v5354_v50  ;;  %v6981_v50 = vld [vmem:[#allocation8 + $0x444] sm:$0xf]  ;;  %v5618_v56 = vor.u32 %v7009_v43, %v5615_v28  ;;  %v5543_v61 = vld [vmem:[#allocation8 + $0x498] sm:$0xf0]  ;;  %v7051_v46 = vld [vmem:[#allocation8 + $0x674] sm:$0xf] }
 0x1b2   :  { %v5506_v25 = vor.u32 %v6981_v50, %v5503_v44  ;;  %v5703_v18 = vld [vmem:[#allocation8 + $0x5d8] sm:$0xf0]  ;;  %v5471_v50 = vld [vmem:[#allocation8 + $0x408] sm:$0xf0]  ;;  %v6989_v44 = vld [vmem:[#allocation8 + $0x484] sm:$0xf] }
 0x1b3   :  { %3976 = vmatpush.bf16.msrb.mxu1 %v5218_v59  ;;  %v5415_v59 = vld [vmem:[#allocation8 + $0x398] sm:$0xf0]  ;;  %v7005_v24 = vld [vmem:[#allocation8 + $0x504] sm:$0xf]  ;;  %v5695_v40 = vld [vmem:[#allocation8 + $0x5c8] sm:$0xf0]  ;;  %v5538_v2 = vor.u32 %v6989_v44, %v5535_v33 }
 0x1b4   :  { %4010 = vmatpush.bf16.msra.mxu0 %v5450_v34  ;;  %3989 = vmatpush.bf16.msrb.mxu2 %v5282_v60  ;;  %v6979_v34 = vld [vmem:[#allocation8 + $0x434] sm:$0xf]  ;;  %v5495_v60 = vld [vmem:[#allocation8 + $0x438] sm:$0xf0]  ;;  %v5887_v44 = vld [vmem:[#allocation8 + $0x748] sm:$0xf0] }
 0x1b5   :  { %4002 = vmatpush.bf16.msrb.mxu3 %v5346_v62  ;;  %v5623_v62 = vld [vmem:[#allocation8 + $0x538] sm:$0xf0]  ;;  %v5498_v47 = vor.u32 %v6979_v34, %v5495_v60  ;;  %v7029_v60 = vld [vmem:[#allocation8 + $0x5c4] sm:$0xf]  ;;  %v7047_v28 = vld [vmem:[#allocation8 + $0x654] sm:$0xf] }
 0x1b6   :  { %3977 = vmatmul.bf16.vlgmr.msrb.gmra.mxu1 %v10175_v22  ;;  %v5626_v52 = vor.u32 %v7011_v55, %v5623_v62  ;;  %v6991_v22 = vld [vmem:[#allocation8 + $0x494] sm:$0xf]  ;;  %v5911_v34 = vld [vmem:[#allocation8 + $0x778] sm:$0xf0]  ;;  %v5602_v55 = vor.u32 %v7005_v24, %v5599_v5 }
 0x1b7   :  { %4021 = vmatpush.bf16.msra.mxu1 %v5530_v58  ;;  %3990 = vmatmul.bf16.vlgmr.msrb.gmra.mxu2 %v10174_v15  ;;  %v5418_v58 = vor.u32 %v6959_v30, %v5415_v59  ;;  %v5479_v15 = vld [vmem:[#allocation8 + $0x418] sm:$0xf0]  ;;  %v7067_v30 = vld [vmem:[#allocation8 + $0x6f4] sm:$0xf] }
 0x1b8   :  { %4034 = vmatpush.bf16.msra.mxu2 %v5594_v49  ;;  %4011 = vmatpush.bf16.msra.mxu0 %v5442_v3  ;;  %v6957_v49 = vld [vmem:[#allocation8 + $0x384] sm:$0xf]  ;;  %v5551_v3 = vld [vmem:[#allocation8 + $0x4a8] sm:$0xf0]  ;;  %v5482_v57 = vor.u32 %v6975_v13, %v5479_v15  ;;  %v5847_v59 = vld [vmem:[#allocation8 + $0x6f8] sm:$0xf0] }
 0x1b9   :  { %4047 = vmatpush.bf16.msra.mxu3 %v5658_v4  ;;  %v5407_v4 = vld [vmem:[#allocation8 + $0x388] sm:$0xf0]  ;;  %v5554_v23 = vor.u32 %v6993_v53, %v5551_v3  ;;  %v5687_v53 = vld [vmem:[#allocation8 + $0x5b8] sm:$0xf0]  ;;  %v7079_v13 = vld [vmem:[#allocation8 + $0x754] sm:$0xf] }
 0x1ba   :  { %4003 = vmatmul.bf16.vlgmr.msrb.gmra.mxu3 %v10176_v8  ;;  %v5410_v19 = vor.u32 %v6957_v49, %v5407_v4  ;;  %v7031_v8 = vld [vmem:[#allocation8 + $0x5d4] sm:$0xf]  ;;  %v7049_v49 = vld [vmem:[#allocation8 + $0x664] sm:$0xf]  ;;  %v5895_v15 = vld [vmem:[#allocation8 + $0x758] sm:$0xf0] }
 0x1bb   :  { %4022 = vmatpush.bf16.msra.mxu1 %v5522_v27  ;;  %3964 = vmatmul.bf16.vlgmr.msrb.gmra.mxu0 %v10177_v41  ;;  %v5722_v27 = vor.u32 %v7035_v45, %v5719_v31  ;;  %v10178_v41 = vld [vmem:[#allocation64_spill] sm:$0xff]  ;;  %v7065_v31 = vld [vmem:[#allocation8 + $0x6e4] sm:$0xf] }
 0x1bc   :  { %4035 = vmatpush.bf16.msra.mxu2 %v5586_v9  ;;  %4012 = vmatpush.bf16.msra.mxu0 %v5434_v0  ;;  %v5711_v9 = vld [vmem:[#allocation8 + $0x5e8] sm:$0xf0]  ;;  %v7023_v33 = vld [vmem:[#allocation8 + $0x594] sm:$0xf] }
 0x1bd   :  { %4048 = vmatpush.bf16.msra.mxu3 %v5650_v39  ;;  %v5490_v39 = vor.u32 %v6977_v16, %v5487_v37  ;;  %v5714_v0 = vor.u32 %v7033_v38, %v5711_v9  ;;  %v5775_v45 = vld [vmem:[#allocation8 + $0x668] sm:$0xf0]  ;;  %v7027_v37 = vld [vmem:[#allocation8 + $0x5b4] sm:$0xf]  ;;  %v5767_v38 = vld [vmem:[#allocation8 + $0x658] sm:$0xf0] }
 0x1be   :  { %v5903_v16 = vld [vmem:[#allocation8 + $0x768] sm:$0xf0]  ;;  %v5778_v3 = vor.u32 %v7049_v49, %v5775_v45  ;;  %v7063_v9 = vld [vmem:[#allocation8 + $0x6d4] sm:$0xf]  ;;  %v7041_v49 = vld [vmem:[#allocation8 + $0x624] sm:$0xf] }
 0x1bf   :  { %4023 = vmatpush.bf16.msra.mxu1 %v5514_v7  ;;  %v6973_v7 = vld [vmem:[#allocation8 + $0x404] sm:$0xf]  ;;  %v5743_v45 = vld [vmem:[#allocation8 + $0x628] sm:$0xf0] }
 0x1c0   :  { %4036 = vmatpush.bf16.msra.mxu2 %v5578_v36  ;;  %4013 = vmatpush.bf16.msra.mxu0 %v5426_v6  ;;  %v5546_v36 = vor.u32 %v6991_v22, %v5543_v61  ;;  %v5783_v6 = vld [vmem:[#allocation8 + $0x678] sm:$0xf0]  ;;  %v10181_v22 = vld [vmem:[#allocation20_spill] sm:$0xff]  ;;  %v7025_v61 = vld [vmem:[#allocation8 + $0x5a4] sm:$0xf] }
 0x1c1   :  { %4049 = vmatpush.bf16.msra.mxu3 %v5642_v48  ;;  %v5610_v48 = vor.u32 %v7007_v21, %v5607_v29  ;;  %v5786_v62 = vor.u32 %v7051_v46, %v5783_v6  ;;  %v5679_v21 = vld [vmem:[#allocation8 + $0x5a8] sm:$0xf0]  ;;  %v5770_v29 = vor.u32 %v7047_v28, %v5767_v38  ;;  %v7043_v46 = vld [vmem:[#allocation8 + $0x634] sm:$0xf]  ;;  %v5735_v38 = vld [vmem:[#allocation8 + $0x618] sm:$0xf0] }
 0x1c3   :  { %4024 = vmatpush.bf16.msra.mxu1 %v5506_v25  ;;  %v5706_v25 = vor.u32 %v7031_v8, %v5703_v18  ;;  %v7045_v8 = vld [vmem:[#allocation8 + $0x644] sm:$0xf]  ;;  %v5898_v18 = vor.u32 %v7079_v13, %v5895_v15  ;;  %v7095_v15 = vld [vmem:[#allocation8 + $0x7d4] sm:$0xf] }
 0x1c4   :  { %4037 = vmatpush.bf16.msra.mxu2 %v5570_v14  ;;  %4014 = vmatpush.bf16.msra.mxu0 %v5418_v58  ;;  %v5474_v14 = vor.u32 %v6973_v7, %v5471_v50  ;;  %v5850_v58 = vor.u32 %v7067_v30, %v5847_v59  ;;  %v7061_v7 = vld [vmem:[#allocation8 + $0x6c4] sm:$0xf]  ;;  %v5751_v30 = vld [vmem:[#allocation8 + $0x638] sm:$0xf0]  ;;  %v7059_v59 = vld [vmem:[#allocation8 + $0x6b4] sm:$0xf] }
 0x1c5   :  { %4050 = vmatpush.bf16.msra.mxu3 %v5634_v32  ;;  %v7083_v32 = vld [vmem:[#allocation8 + $0x774] sm:$0xf]  ;;  %v7077_v50 = vld [vmem:[#allocation8 + $0x744] sm:$0xf] }
 0x1c6   :  { %v5914_v4 = vor.u32 %v7083_v32, %v5911_v34  ;;  %v5890_v6 = vor.u32 %v7077_v50, %v5887_v44  ;;  %v7075_v32 = vld [vmem:[#allocation8 + $0x734] sm:$0xf]  ;;  %v5879_v34 = vld [vmem:[#allocation8 + $0x738] sm:$0xf0] }
 0x1c7   :  { %4025 = vmatpush.bf16.msra.mxu1 %v5498_v47  ;;  %v5839_v47 = vld [vmem:[#allocation8 + $0x6e8] sm:$0xf0]  ;;  %v7115_v50 = vld [vmem:[#allocation8 + $0x874] sm:$0xf]  ;;  %v6039_v44 = vld [vmem:[#allocation8 + $0x878] sm:$0xf0] }
 0x1c8   :  { %4038 = vmatpush.bf16.msra.mxu2 %v5562_v10  ;;  %4015 = vmatpush.bf16.msra.mxu0 %v5410_v19  ;;  %v5698_v10 = vor.u32 %v7029_v60, %v5695_v40  ;;  %v5842_v43 = vor.u32 %v7065_v31, %v5839_v47  ;;  %v10179_v19 = vld [vmem:[#allocation45_spill] sm:$0xff]  ;;  %v7021_v60 = vld [vmem:[#allocation8 + $0x584] sm:$0xf]  ;;  %v5663_v40 = vld [vmem:[#allocation8 + $0x588] sm:$0xf0] }
 0x1c9   :  { %4051 = vmatpush.bf16.msra.mxu3 %v5626_v52  ;;  %v7081_v52 = vld [vmem:[#allocation8 + $0x764] sm:$0xf]  ;;  %v5807_v47 = vld [vmem:[#allocation8 + $0x6a8] sm:$0xf0] }
 0x1ca   :  { %v7057_v31 = vld [vmem:[#allocation8 + $0x6a4] sm:$0xf] }
 0x1cb   :  { %4026 = vmatpush.bf16.msra.mxu1 %v5490_v39  ;;  %4016 = vmatmul.bf16.vlgmr.msra.gmra.mxu0 %v10178_v41  ;;  %v5831_v39 = vld [vmem:[#allocation8 + $0x6d8] sm:$0xf0]  ;;  %v5810_v28 = vor.u32 %v7057_v31, %v5807_v47  ;;  %v6159_v31 = vld [vmem:[#allocation8 + $0x968] sm:$0xf0]  ;;  %v7091_v47 = vld [vmem:[#allocation8 + $0x7b4] sm:$0xf] }
 0x1cc   :  { %4060 = vmatpush.bf16.msrb.mxu0 %v5722_v27  ;;  %4039 = vmatpush.bf16.msra.mxu2 %v5554_v23  ;;  %v5906_v27 = vor.u32 %v7081_v52, %v5903_v16  ;;  %v5690_v23 = vor.u32 %v7027_v37, %v5687_v53  ;;  %v5671_v41 = vld [vmem:[#allocation8 + $0x598] sm:$0xf0]  ;;  %v7073_v52 = vld [vmem:[#allocation8 + $0x724] sm:$0xf]  ;;  %v5871_v16 = vld [vmem:[#allocation8 + $0x728] sm:$0xf0] }
 0x1cd   :  { %4052 = vmatpush.bf16.msra.mxu3 %v5618_v56  ;;  %v10180_v56 = vld [vmem:[#allocation21_spill] sm:$0xff]  ;;  %v7097_v53 = vld [vmem:[#allocation8 + $0x7e4] sm:$0xf] }
 0x1cf   :  { %4027 = vmatpush.bf16.msra.mxu1 %v5482_v57  ;;  %v5759_v57 = vld [vmem:[#allocation8 + $0x648] sm:$0xf0] }
 0x1d0   :  { %4061 = vmatpush.bf16.msrb.mxu0 %v5714_v0  ;;  %4040 = vmatpush.bf16.msra.mxu2 %v5546_v36  ;;  %v5834_v0 = vor.u32 %v7063_v9, %v5831_v39  ;;  %v5823_v36 = vld [vmem:[#allocation8 + $0x6c8] sm:$0xf0]  ;;  %v5762_v24 = vor.u32 %v7045_v8, %v5759_v57  ;;  %v7055_v9 = vld [vmem:[#allocation8 + $0x694] sm:$0xf]  ;;  %v5799_v39 = vld [vmem:[#allocation8 + $0x698] sm:$0xf0] }
 0x1d1   :  { %4053 = vmatpush.bf16.msra.mxu3 %v5610_v48  ;;  %v5682_v48 = vor.u32 %v7025_v61, %v5679_v21  ;;  %v5826_v5 = vor.u32 %v7061_v7, %v5823_v36  ;;  %v5802_v21 = vor.u32 %v7055_v9, %v5799_v39  ;;  %v7053_v8 = vld [vmem:[#allocation8 + $0x684] sm:$0xf]  ;;  %v5791_v7 = vld [vmem:[#allocation8 + $0x688] sm:$0xf0]  ;;  %v7143_v9 = vld [vmem:[#allocation8 + $0x954] sm:$0xf] }
 0x1d2   :  { %v7069_v36 = vld [vmem:[#allocation8 + $0x704] sm:$0xf]  ;;  %v6151_v39 = vld [vmem:[#allocation8 + $0x958] sm:$0xf0] }
 0x1d3   :  { %4028 = vmatpush.bf16.msra.mxu1 %v5474_v14  ;;  %v5674_v14 = vor.u32 %v7023_v33, %v5671_v41  ;;  %v7131_v33 = vld [vmem:[#allocation8 + $0x8f4] sm:$0xf] }
 0x1d4   :  { %4062 = vmatpush.bf16.msrb.mxu0 %v5706_v25  ;;  %4041 = vmatpush.bf16.msra.mxu2 %v5538_v2  ;;  %v5815_v25 = vld [vmem:[#allocation8 + $0x6b8] sm:$0xf0]  ;;  %v7099_v2 = vld [vmem:[#allocation8 + $0x7f4] sm:$0xf] }
 0x1d5   :  { %4054 = vmatpush.bf16.msra.mxu3 %v5602_v55  ;;  %v5975_v55 = vld [vmem:[#allocation8 + $0x7f8] sm:$0xf0] }
 0x1d6   :  { %4029 = vmatmul.bf16.vlgmr.msra.gmra.mxu1 %v10179_v19  ;;  %v5978_v37 = vor.u32 %v7099_v2, %v5975_v55  ;;  %v7039_v19 = vld [vmem:[#allocation8 + $0x614] sm:$0xf]  ;;  %v7113_v55 = vld [vmem:[#allocation8 + $0x864] sm:$0xf] }
 0x1d7   :  { %4073 = vmatpush.bf16.msrb.mxu1 %v5786_v62  ;;  %4042 = vmatmul.bf16.vlgmr.msra.gmra.mxu2 %v10180_v56  ;;  %v5754_v62 = vor.u32 %v7043_v46, %v5751_v30  ;;  %v5863_v56 = vld [vmem:[#allocation8 + $0x718] sm:$0xf0]  ;;  %v5738_v61 = vor.u32 %v7039_v19, %v5735_v38  ;;  %v5951_v30 = vld [vmem:[#allocation8 + $0x7c8] sm:$0xf0] }
 0x1d8   :  { %4086 = vmatpush.bf16.msrb.mxu2 %v5850_v58  ;;  %4063 = vmatpush.bf16.msrb.mxu0 %v5698_v10  ;;  %v5818_v58 = vor.u32 %v7059_v59, %v5815_v25  ;;  %v5666_v10 = vor.u32 %v7021_v60, %v5663_v40  ;;  %v6167_v46 = vld [vmem:[#allocation8 + $0x978] sm:$0xf0]  ;;  %v5794_v25 = vor.u32 %v7053_v8, %v5791_v7  ;;  %v7125_v7 = vld [vmem:[#allocation8 + $0x8c4] sm:$0xf] }
 0x1d9   :  { %4099 = vmatpush.bf16.msrb.mxu3 %v5914_v4  ;;  %v5882_v4 = vor.u32 %v7075_v32, %v5879_v34  ;;  %v6042_v34 = vor.u32 %v7115_v50, %v6039_v44  ;;  %v6087_v38 = vld [vmem:[#allocation8 + $0x8d8] sm:$0xf0]  ;;  %v6154_v8 = vor.u32 %v7143_v9, %v6151_v39  ;;  %v7141_v50 = vld [vmem:[#allocation8 + $0x944] sm:$0xf]  ;;  %v6143_v44 = vld [vmem:[#allocation8 + $0x948] sm:$0xf0] }
 0x1da   :  { %4055 = vmatmul.bf16.vlgmr.msra.gmra.mxu3 %v10181_v22  ;;  %v5959_v22 = vld [vmem:[#allocation8 + $0x7d8] sm:$0xf0]  ;;  %v7161_v9 = vld [vmem:[#allocation8 + $0x9e4] sm:$0xf]  ;;  %v6223_v39 = vld [vmem:[#allocation8 + $0x9e8] sm:$0xf0] }
 0x1db   :  { %4074 = vmatpush.bf16.msrb.mxu1 %v5778_v3  ;;  %v5967_v3 = vld [vmem:[#allocation8 + $0x7e8] sm:$0xf0]  ;;  %v5962_v41 = vor.u32 %v7095_v15, %v5959_v22  ;;  %v7089_v15 = vld [vmem:[#allocation8 + $0x7a4] sm:$0xf] }
 0x1dc   :  { %4087 = vmatpush.bf16.msrb.mxu2 %v5842_v43  ;;  %4064 = vmatpush.bf16.msrb.mxu0 %v5690_v23  ;;  %v5746_v43 = vor.u32 %v7041_v49, %v5743_v45  ;;  %v7071_v23 = vld [vmem:[#allocation8 + $0x714] sm:$0xf]  ;;  %v5970_v13 = vor.u32 %v7097_v53, %v5967_v3  ;;  %v7145_v45 = vld [vmem:[#allocation8 + $0x964] sm:$0xf]  ;;  %v6023_v3 = vld [vmem:[#allocation8 + $0x858] sm:$0xf0] }
 0x1dd   :  { %4100 = vmatpush.bf16.msrb.mxu3 %v5906_v27  ;;  %v5874_v27 = vor.u32 %v7073_v52, %v5871_v16  ;;  %v5866_v57 = vor.u32 %v7071_v23, %v5863_v56  ;;  %v7111_v53 = vld [vmem:[#allocation8 + $0x854] sm:$0xf]  ;;  %v5935_v22 = vld [vmem:[#allocation8 + $0x7a8] sm:$0xf0] }
 0x1de   :  { %v10184_v56 = vld [vmem:[#allocation32_spill] sm:$0xff] }
 0x1df   :  { %4075 = vmatpush.bf16.msrb.mxu1 %v5770_v29  ;;  %v7037_v29 = vld [vmem:[#allocation8 + $0x604] sm:$0xf] }
 0x1e0   :  { %4088 = vmatpush.bf16.msrb.mxu2 %v5834_v0  ;;  %4065 = vmatpush.bf16.msrb.mxu0 %v5682_v48  ;;  %v5727_v0 = vld [vmem:[#allocation8 + $0x608] sm:$0xf0] }
 0x1e1   :  { %4101 = vmatpush.bf16.msrb.mxu3 %v5898_v18  ;;  %v10182_v18 = vld [vmem:[#allocation25_spill] sm:$0xff]  ;;  %v5855_v48 = vld [vmem:[#allocation8 + $0x708] sm:$0xf0]  ;;  %v5730_v59 = vor.u32 %v7037_v29, %v5727_v0 }
 0x1e2   :  { %v5858_v32 = vor.u32 %v7069_v36, %v5855_v48  ;;  %v5938_v36 = vor.u32 %v7089_v15, %v5935_v22  ;;  %v6079_v48 = vld [vmem:[#allocation8 + $0x8c8] sm:$0xf0]  ;;  %v7103_v15 = vld [vmem:[#allocation8 + $0x814] sm:$0xf]  ;;  %v5991_v22 = vld [vmem:[#allocation8 + $0x818] sm:$0xf0] }
 0x1e3   :  { %4076 = vmatpush.bf16.msrb.mxu1 %v5762_v24  ;;  %v6103_v24 = vld [vmem:[#allocation8 + $0x8f8] sm:$0xf0] }
 0x1e4   :  { %4089 = vmatpush.bf16.msrb.mxu2 %v5826_v5  ;;  %4066 = vmatpush.bf16.msrb.mxu0 %v5674_v14  ;;  %v7147_v5 = vld [vmem:[#allocation8 + $0x974] sm:$0xf]  ;;  %v6106_v40 = vor.u32 %v7131_v33, %v6103_v24 }
 0x1e5   :  { %4102 = vmatpush.bf16.msrb.mxu3 %v5890_v6  ;;  %v7093_v6 = vld [vmem:[#allocation8 + $0x7c4] sm:$0xf]  ;;  %v6170_v2 = vor.u32 %v7147_v5, %v6167_v46  ;;  %v7087_v33 = vld [vmem:[#allocation8 + $0x794] sm:$0xf]  ;;  %v6082_v5 = vor.u32 %v7125_v7, %v6079_v48  ;;  %v6146_v46 = vor.u32 %v7141_v50, %v6143_v44  ;;  %v6119_v7 = vld [vmem:[#allocation8 + $0x918] sm:$0xf0]  ;;  %v5994_v44 = vor.u32 %v7103_v15, %v5991_v22 }
 0x1e6   :  { %v5954_v49 = vor.u32 %v7093_v6, %v5951_v30  ;;  %v7107_v6 = vld [vmem:[#allocation8 + $0x834] sm:$0xf]  ;;  %v6007_v30 = vld [vmem:[#allocation8 + $0x838] sm:$0xf0]  ;;  %v6351_v15 = vld [vmem:[#allocation8 + $0xae8] sm:$0xf0] }
 0x1e7   :  { %4077 = vmatpush.bf16.msrb.mxu1 %v5754_v62  ;;  %v6031_v62 = vld [vmem:[#allocation8 + $0x868] sm:$0xf0]  ;;  %v7159_v48 = vld [vmem:[#allocation8 + $0x9d4] sm:$0xf]  ;;  %v6215_v50 = vld [vmem:[#allocation8 + $0x9d8] sm:$0xf0] }
 0x1e8   :  { %4090 = vmatpush.bf16.msrb.mxu2 %v5818_v58  ;;  %4067 = vmatpush.bf16.msrb.mxu0 %v5666_v10  ;;  %v7129_v58 = vld [vmem:[#allocation8 + $0x8e4] sm:$0xf]  ;;  %v5943_v10 = vld [vmem:[#allocation8 + $0x7b8] sm:$0xf0]  ;;  %v6034_v52 = vor.u32 %v7113_v55, %v6031_v62 }
 0x1e9   :  { %4103 = vmatpush.bf16.msrb.mxu3 %v5882_v4  ;;  %v6095_v4 = vld [vmem:[#allocation8 + $0x8e8] sm:$0xf0]  ;;  %v5946_v19 = vor.u32 %v7091_v47, %v5943_v10  ;;  %v7085_v62 = vld [vmem:[#allocation8 + $0x784] sm:$0xf] }
 0x1ea   :  { %v6098_v16 = vor.u32 %v7129_v58, %v6095_v4  ;;  %v5919_v58 = vld [vmem:[#allocation8 + $0x788] sm:$0xf0]  ;;  %v7163_v4 = vld [vmem:[#allocation8 + $0x9f4] sm:$0xf] }
 0x1eb   :  { %4078 = vmatpush.bf16.msrb.mxu1 %v5746_v43  ;;  %4068 = vmatmul.bf16.vlgmr.msrb.gmra.mxu0 %v10182_v18  ;;  %v7127_v43 = vld [vmem:[#allocation8 + $0x8d4] sm:$0xf]  ;;  %v7109_v18 = vld [vmem:[#allocation8 + $0x844] sm:$0xf] }
 0x1ec   :  { %4112 = vmatpush.bf16.msra.mxu0 %v5978_v37  ;;  %4091 = vmatpush.bf16.msrb.mxu2 %v5810_v28  ;;  %v6162_v37 = vor.u32 %v7145_v45, %v6159_v31  ;;  %v6090_v0 = vor.u32 %v7127_v43, %v6087_v38  ;;  %v6231_v45 = vld [vmem:[#allocation8 + $0x9f8] sm:$0xf0]  ;;  %v6010_v31 = vor.u32 %v7107_v6, %v6007_v30  ;;  %v6063_v43 = vld [vmem:[#allocation8 + $0x8a8] sm:$0xf0]  ;;  %v7117_v30 = vld [vmem:[#allocation8 + $0x884] sm:$0xf] }
 0x1ed   :  { %4104 = vmatpush.bf16.msrb.mxu3 %v5874_v27  ;;  %v10183_v27 = vld [vmem:[#allocation24_spill] sm:$0xff] }
 0x1ee   :  { %v6127_v38 = vld [vmem:[#allocation8 + $0x928] sm:$0xf0] }
 0x1ef   :  { %4079 = vmatpush.bf16.msrb.mxu1 %v5738_v61  ;;  %v5983_v6 = vld [vmem:[#allocation8 + $0x808] sm:$0xf0] }
 0x1f0   :  { %4113 = vmatpush.bf16.msra.mxu0 %v5970_v13  ;;  %4092 = vmatpush.bf16.msrb.mxu2 %v5802_v21  ;;  %v10185_v13 = vld [vmem:[#allocation28_spill] sm:$0xff]  ;;  %v6026_v21 = vor.u32 %v7111_v53, %v6023_v3  ;;  %v5922_v53 = vor.u32 %v7085_v62, %v5919_v58  ;;  %v7121_v3 = vld [vmem:[#allocation8 + $0x8a4] sm:$0xf] }
 0x1f1   :  { %4105 = vmatpush.bf16.msrb.mxu3 %v5866_v57  ;;  %v6015_v57 = vld [vmem:[#allocation8 + $0x848] sm:$0xf0]  ;;  %v7179_v62 = vld [vmem:[#allocation8 + $0xa74] sm:$0xf] }
 0x1f2   :  { %v9719_v14 = vpop.f32.mrf.mxu0  ;;  %v6018_v24 = vor.u32 %v7109_v18, %v6015_v57  ;;  %v7135_v57 = vld [vmem:[#allocation8 + $0x914] sm:$0xf] }
 0x1f3   :  { %v9721_v60 = vpop.f32.mrf.mxu1  ;;  %4080 = vmatpush.bf16.msrb.mxu1 %v5730_v59  ;;  %v7123_v59 = vld [vmem:[#allocation8 + $0x8b4] sm:$0xf] }
 0x1f4   :  { %4114 = vmatpush.bf16.msra.mxu0 %v5962_v41  ;;  %4093 = vmatpush.bf16.msrb.mxu2 %v5794_v25  ;;  %v5927_v41 = vld [vmem:[#allocation8 + $0x798] sm:$0xf0] }
 0x1f5   :  { %4106 = vmatpush.bf16.msrb.mxu3 %v5858_v32  ;;  %v5930_v25 = vor.u32 %v7087_v33, %v5927_v41  ;;  %v10186_v33 = vld [vmem:[#allocation33_spill] sm:$0xff] }
 0x1f6   :  { %4081 = vmatmul.bf16.vlgmr.msrb.gmra.mxu1 %v10183_v27  ;;  %v7137_v27 = vld [vmem:[#allocation8 + $0x924] sm:$0xf] }
 0x1f7   :  { %4125 = vmatpush.bf16.msra.mxu1 %v6042_v34  ;;  %4094 = vmatmul.bf16.vlgmr.msrb.gmra.mxu2 %v10184_v56  ;;  %v6071_v34 = vld [vmem:[#allocation8 + $0x8b8] sm:$0xf0] }
 0x1f8   :  { %4138 = vmatpush.bf16.msra.mxu2 %v6106_v40  ;;  %v9723_v28 = vpop.f32.mrf.mxu2  ;;  %4115 = vmatpush.bf16.msra.mxu0 %v5954_v49  ;;  %v7139_v40 = vld [vmem:[#allocation8 + $0x934] sm:$0xf]  ;;  %v6074_v10 = vor.u32 %v7123_v59, %v6071_v34  ;;  %v6218_v59 = vor.u32 %v7159_v48, %v6215_v50  ;;  %v6111_v34 = vld [vmem:[#allocation8 + $0x908] sm:$0xf0]  ;;  %v6279_v50 = vld [vmem:[#allocation8 + $0xa58] sm:$0xf0] }
 0x1f9   :  { %4151 = vmatpush.bf16.msra.mxu3 %v6170_v2  ;;  %v9726_v23 = vpop.f32.mrf.mxu3  ;;  %v6135_v2 = vld [vmem:[#allocation8 + $0x938] sm:$0xf0]  ;;  %v7175_v48 = vld [vmem:[#allocation8 + $0xa54] sm:$0xf] }
 0x1fa   :  { %4107 = vmatmul.bf16.vlgmr.msrb.gmra.mxu3 %v10185_v13  ;;  %v3811_v61 = vpop.f32.mrf.mxu0  ;;  %v6066_v13 = vor.u32 %v7121_v3, %v6063_v43 }
 0x1fb   :  { %4126 = vmatpush.bf16.msra.mxu1 %v6034_v52  ;;  %v3824_v29 = vpop.f32.mrf.mxu1  ;;  %v6138_v52 = vor.u32 %v7139_v40, %v6135_v2  ;;  %v7157_v40 = vld [vmem:[#allocation8 + $0x9c4] sm:$0xf]  ;;  %v6207_v2 = vld [vmem:[#allocation8 + $0x9c8] sm:$0xf0] }
 0x1fc   :  { %4139 = vmatpush.bf16.msra.mxu2 %v6098_v16  ;;  %4116 = vmatpush.bf16.msra.mxu0 %v5946_v19  ;;  %v7105_v16 = vld [vmem:[#allocation8 + $0x824] sm:$0xf]  ;;  %v6234_v19 = vor.u32 %v7163_v4, %v6231_v45  ;;  %v7119_v29 = vld [vmem:[#allocation8 + $0x894] sm:$0xf]  ;;  %v6295_v4 = vld [vmem:[#allocation8 + $0xa78] sm:$0xf0]  ;;  %v6210_v43 = vor.u32 %v7157_v40, %v6207_v2 }
 0x1fd   :  { %4152 = vmatpush.bf16.msra.mxu3 %v6162_v37  ;;  %v5999_v37 = vld [vmem:[#allocation8 + $0x828] sm:$0xf0]  ;;  %v7195_v45 = vld [vmem:[#allocation8 + $0xaf4] sm:$0xf] }
 0x1fe   :  { %v6002_v56 = vor.u32 %v7105_v16, %v5999_v37  ;;  %v7211_v37 = vld [vmem:[#allocation8 + $0xb74] sm:$0xf]  ;;  %v6335_v40 = vld [vmem:[#allocation8 + $0xac8] sm:$0xf0] }
 0x1ff   :  { %4127 = vmatpush.bf16.msra.mxu1 %v6026_v21  ;;  %v6130_v21 = vor.u32 %v7137_v27, %v6127_v38  ;;  %v6199_v27 = vld [vmem:[#allocation8 + $0x9b8] sm:$0xf0]  ;;  %v6399_v2 = vld [vmem:[#allocation8 + $0xb48] sm:$0xf0] }
 0x200   :  { %4140 = vmatpush.bf16.msra.mxu2 %v6090_v0  ;;  %4117 = vmatpush.bf16.msra.mxu0 %v5938_v36  ;;  %v3837_v32 = vpop.f32.mrf.mxu2  ;;  %v6055_v0 = vld [vmem:[#allocation8 + $0x898] sm:$0xf0] }
 0x201   :  { %4153 = vmatpush.bf16.msra.mxu3 %v6154_v8  ;;  %v3850_v55 = vpop.f32.mrf.mxu3  ;;  %v6226_v8 = vor.u32 %v7161_v9, %v6223_v39  ;;  %v6058_v41 = vor.u32 %v7119_v29, %v6055_v0  ;;  %v7133_v32 = vld [vmem:[#allocation8 + $0x904] sm:$0xf]  ;;  %v6415_v29 = vld [vmem:[#allocation8 + $0xb68] sm:$0xf0] }
 0x202   :  { %v9730_v49 = vpop.f32.mrf.mxu0  ;;  %v7177_v9 = vld [vmem:[#allocation8 + $0xa64] sm:$0xf] }
 0x203   :  { %4128 = vmatpush.bf16.msra.mxu1 %v6018_v24  ;;  %v9732_v47 = vpop.f32.mrf.mxu1 }
 0x204   :  { %4141 = vmatpush.bf16.msra.mxu2 %v6082_v5  ;;  %4118 = vmatpush.bf16.msra.mxu0 %v5930_v25  ;;  %v6122_v5 = vor.u32 %v7135_v57, %v6119_v7  ;;  %v6047_v25 = vld [vmem:[#allocation8 + $0x888] sm:$0xf0]  ;;  %v7153_v57 = vld [vmem:[#allocation8 + $0x9a4] sm:$0xf] }
 0x205   :  { %4154 = vmatpush.bf16.msra.mxu3 %v6146_v46  ;;  %v7101_v46 = vld [vmem:[#allocation8 + $0x804] sm:$0xf]  ;;  %v6050_v58 = vor.u32 %v7117_v30, %v6047_v25  ;;  %v6191_v7 = vld [vmem:[#allocation8 + $0x9a8] sm:$0xf0] }
 0x206   :  { %v5986_v55 = vor.u32 %v7101_v46, %v5983_v6  ;;  %v6407_v46 = vld [vmem:[#allocation8 + $0xb58] sm:$0xf0]  ;;  %v6194_v30 = vor.u32 %v7153_v57, %v6191_v7  ;;  %v7173_v25 = vld [vmem:[#allocation8 + $0xa44] sm:$0xf] }
 0x207   :  { %4129 = vmatpush.bf16.msra.mxu1 %v6010_v31  ;;  %v6359_v31 = vld [vmem:[#allocation8 + $0xaf8] sm:$0xf0] }
 0x208   :  { %4142 = vmatpush.bf16.msra.mxu2 %v6074_v10  ;;  %4119 = vmatpush.bf16.msra.mxu0 %v5922_v53  ;;  %v9734_v61 = vpop.f32.mrf.mxu2  ;;  %v6114_v10 = vor.u32 %v7133_v32, %v6111_v34  ;;  %v6362_v16 = vor.u32 %v7195_v45, %v6359_v31  ;;  %v6423_v53 = vld [vmem:[#allocation8 + $0xb78] sm:$0xf0]  ;;  %v6271_v32 = vld [vmem:[#allocation8 + $0xa48] sm:$0xf0]  ;;  %v7189_v34 = vld [vmem:[#allocation8 + $0xac4] sm:$0xf] }
 0x209   :  { %4155 = vmatpush.bf16.msra.mxu3 %v6138_v52  ;;  %v9736_v18 = vpop.f32.mrf.mxu3  ;;  %v6298_v52 = vor.u32 %v7179_v62, %v6295_v4  ;;  %v6426_v38 = vor.u32 %v7211_v37, %v6423_v53  ;;  %v6175_v62 = vld [vmem:[#allocation8 + $0x988] sm:$0xf0]  ;;  %v6327_v37 = vld [vmem:[#allocation8 + $0xab8] sm:$0xf0]  ;;  %v7203_v53 = vld [vmem:[#allocation8 + $0xb34] sm:$0xf] }
 0x20a   :  { %v3863_v36 = vpop.f32.mrf.mxu0 }
 0x20b   :  { %4130 = vmatpush.bf16.msra.mxu1 %v6002_v56  ;;  %4120 = vmatmul.bf16.vlgmr.msra.gmra.mxu0 %v10186_v33  ;;  %v3876_v24 = vpop.f32.mrf.mxu1  ;;  %v6287_v56 = vld [vmem:[#allocation8 + $0xa68] sm:$0xf0]  ;;  %v6343_v33 = vld [vmem:[#allocation8 + $0xad8] sm:$0xf0] }
 0x20c   :  { %4164 = vmatpush.bf16.msrb.mxu0 %v6234_v19  ;;  %4143 = vmatpush.bf16.msra.mxu2 %v6066_v13  ;;  %v7155_v19 = vld [vmem:[#allocation8 + $0x9b4] sm:$0xf]  ;;  %v7193_v13 = vld [vmem:[#allocation8 + $0xae4] sm:$0xf]  ;;  %v6290_v22 = vor.u32 %v7177_v9, %v6287_v56  ;;  %v6282_v24 = vor.u32 %v7175_v48, %v6279_v50  ;;  %v6255_v56 = vld [vmem:[#allocation8 + $0xa28] sm:$0xf0] }
 0x20d   :  { %4156 = vmatpush.bf16.msra.mxu3 %v6130_v21  ;;  %v7209_v21 = vld [vmem:[#allocation8 + $0xb64] sm:$0xf]  ;;  %v6354_v0 = vor.u32 %v7193_v13, %v6351_v15 }
 0x20e   :  { %v6418_v36 = vor.u32 %v7209_v21, %v6415_v29  ;;  %v7185_v13 = vld [vmem:[#allocation8 + $0xaa4] sm:$0xf]  ;;  %v6319_v21 = vld [vmem:[#allocation8 + $0xaa8] sm:$0xf0] }
 0x20f   :  { %4131 = vmatpush.bf16.msra.mxu1 %v5994_v44  ;;  %v7191_v44 = vld [vmem:[#allocation8 + $0xad4] sm:$0xf]  ;;  %v7201_v29 = vld [vmem:[#allocation8 + $0xb24] sm:$0xf]  ;;  %v6322_v50 = vor.u32 %v7185_v13, %v6319_v21 }
 0x210   :  { %4165 = vmatpush.bf16.msrb.mxu0 %v6226_v8  ;;  %4144 = vmatpush.bf16.msra.mxu2 %v6058_v41  ;;  %v3889_v3 = vpop.f32.mrf.mxu2  ;;  %v6202_v8 = vor.u32 %v7155_v19, %v6199_v27  ;;  %v3810_v41 = vadd.f32 %v9719_v14, %v9708_v51  ;;  %v6346_v6 = vor.u32 %v7191_v44, %v6343_v33  ;;  %v7205_v14 = vld [vmem:[#allocation8 + $0xb44] sm:$0xf]  ;;  %v7167_v44 = vld [vmem:[#allocation8 + $0xa14] sm:$0xf]  ;;  %v6247_v33 = vld [vmem:[#allocation8 + $0xa18] sm:$0xf0] }
 0x211   :  { %4157 = vmatpush.bf16.msra.mxu3 %v6122_v5  ;;  %v3902_v39 = vpop.f32.mrf.mxu3  ;;  %v7207_v5 = vld [vmem:[#allocation8 + $0xb54] sm:$0xf]  ;;  %v6402_v31 = vor.u32 %v7205_v14, %v6399_v2  ;;  %v7269_v21 = vld [vmem:[#allocation11 + $0x100] sm:$0xf0] }
 0x212   :  { %v3823_v51 = vadd.f32 %v9721_v60, %v3810_v41  ;;  %v6391_v60 = vld [vmem:[#allocation8 + $0xb38] sm:$0xf0]  ;;  %v7227_v3 = vld [vmem:[#allocation8 + $0xbf4] sm:$0xf]  ;;  %v7169_v39 = vld [vmem:[#allocation8 + $0xa24] sm:$0xf] }
 0x213   :  { %4132 = vmatpush.bf16.msra.mxu1 %v5986_v55  ;;  %v7149_v55 = vld [vmem:[#allocation8 + $0x984] sm:$0xf]  ;;  %v6394_v9 = vor.u32 %v7203_v53, %v6391_v60  ;;  %v3926_v15 = vpop.f32.mrf.mxu1  ;;  %v6258_v48 = vor.u32 %v7169_v39, %v6255_v56  ;;  %v6463_v53 = vld [vmem:[#allocation8 + $0xbc8] sm:$0xf0] }
 0x214   :  { %4166 = vmatpush.bf16.msrb.mxu0 %v6218_v59  ;;  %4145 = vmatpush.bf16.msra.mxu2 %v6050_v58  ;;  %v6183_v59 = vld [vmem:[#allocation8 + $0x998] sm:$0xf0]  ;;  %v6338_v58 = vor.u32 %v7189_v34, %v6335_v40  ;;  %v3836_v4 = vadd.f32 %v9723_v28, %v3823_v51  ;;  %v6178_v28 = vor.u32 %v7149_v55, %v6175_v62  ;;  %v7181_v40 = vld [vmem:[#allocation8 + $0xa84] sm:$0xf]  ;;  %v6303_v51 = vld [vmem:[#allocation8 + $0xa88] sm:$0xf0] }
 0x215   :  { %4158 = vmatpush.bf16.msra.mxu3 %v6114_v10  ;;  %v7171_v10 = vld [vmem:[#allocation8 + $0xa34] sm:$0xf]  ;;  %v6367_v55 = vld [vmem:[#allocation8 + $0xb08] sm:$0xf0]  ;;  %v6667_v62 = vld [vmem:[#allocation11 + $0x118] sm:$0xf] }
 0x216   :  { %4133 = vmatmul.bf16.vlgmr.msra.gmra.mxu1 %v9621_v17  ;;  %v7151_v17 = vld [vmem:[#allocation8 + $0x994] sm:$0xf]  ;;  %v6511_v39 = vld [vmem:[#allocation8 + $0xc28] sm:$0xf0] }
 0x217   :  { %4177 = vmatpush.bf16.msrb.mxu1 %v6298_v52  ;;  %4146 = vmatmul.bf16.vlgmr.msra.gmra.mxu2 %v9625_v12  ;;  %v6410_v12 = vor.u32 %v7207_v5, %v6407_v46  ;;  %v6186_v45 = vor.u32 %v7151_v17, %v6183_v59  ;;  %v6263_v52 = vld [vmem:[#allocation8 + $0xa38] sm:$0xf0] }
 0x218   :  { %4190 = vmatpush.bf16.msrb.mxu2 %v6362_v16  ;;  %4167 = vmatpush.bf16.msrb.mxu0 %v6210_v43  ;;  %v7187_v16 = vld [vmem:[#allocation8 + $0xab4] sm:$0xf]  ;;  %v6487_v43 = vld [vmem:[#allocation8 + $0xbf8] sm:$0xf0]  ;;  %v6266_v19 = vor.u32 %v7171_v10, %v6263_v52 }
 0x219   :  { %4203 = vmatpush.bf16.msrb.mxu3 %v6426_v38  ;;  %v6330_v27 = vor.u32 %v7187_v16, %v6327_v37  ;;  %v3849_v38 = vadd.f32 %v9726_v23, %v3836_v4  ;;  %v6479_v23 = vld [vmem:[#allocation8 + $0xbe8] sm:$0xf0]  ;;  %v6311_v5 = vld [vmem:[#allocation8 + $0xa98] sm:$0xf0]  ;;  %v7235_v10 = vld [vmem:[#allocation8 + $0xc34] sm:$0xf] }
 0x21a   :  { %4159 = vmatmul.bf16.vlgmr.msra.gmra.mxu3 %v9623_v54  ;;  %v6274_v54 = vor.u32 %v7173_v25, %v6271_v32  ;;  %v6375_v17 = vld [vmem:[#allocation8 + $0xb18] sm:$0xf0]  ;;  %v7165_v25 = vld [vmem:[#allocation8 + $0xa04] sm:$0xf]  ;;  %v6239_v32 = vld [vmem:[#allocation8 + $0xa08] sm:$0xf0] }
 0x21b   :  { %4178 = vmatpush.bf16.msrb.mxu1 %v6290_v22  ;;  %v6490_v22 = vor.u32 %v7227_v3, %v6487_v43  ;;  %v3862_v7 = vadd.f32 %v9730_v49, %v3849_v38  ;;  %v6471_v59 = vld [vmem:[#allocation8 + $0xbd8] sm:$0xf0]  ;;  %v3928_v4 = vpop.f32.mrf.mxu1  ;;  %v7221_v37 = vld [vmem:[#allocation8 + $0xbc4] sm:$0xf]  ;;  %v6242_v60 = vor.u32 %v7165_v25, %v6239_v32  ;;  %v7215_v25 = vld [vmem:[#allocation8 + $0xb94] sm:$0xf] }
 0x21c   :  { %4191 = vmatpush.bf16.msrb.mxu2 %v6354_v0  ;;  %4168 = vmatpush.bf16.msrb.mxu0 %v6202_v8  ;;  %v6383_v0 = vld [vmem:[#allocation8 + $0xb28] sm:$0xf0]  ;;  %v3939_v8 = vpop.f32.mrf.mxu2  ;;  %v9747_v57 = vpop.f32.mrf.mxu3  ;;  %v6519_v52 = vld [vmem:[#allocation8 + $0xc38] sm:$0xf0]  ;;  %v6466_v13 = vor.u32 %v7221_v37, %v6463_v53  ;;  %v7267_v37 = vld [vmem:[#allocation11 + $0xf4] sm:$0xf] }
 0x21d   :  { %4204 = vmatpush.bf16.msrb.mxu3 %v6418_v36  ;;  %v7225_v36 = vld [vmem:[#allocation8 + $0xbe4] sm:$0xf]  ;;  %v6386_v41 = vor.u32 %v7201_v29, %v6383_v0  ;;  %v3875_v49 = vadd.f32 %v9732_v47, %v3862_v7  ;;  %v6522_v43 = vor.u32 %v7235_v10, %v6519_v52  ;;  %v7219_v0 = vld [vmem:[#allocation8 + $0xbb4] sm:$0xf]  ;;  %v6439_v32 = vld [vmem:[#allocation8 + $0xb98] sm:$0xf0] }
 0x21e   :  { %v6482_v46 = vor.u32 %v7225_v36, %v6479_v23  ;;  %v7231_v23 = vld [vmem:[#allocation8 + $0xc14] sm:$0xf]  ;;  %v7249_v52 = vld [vmem:[#allocation11 + $0x60] sm:$0xf0]  ;;  %v6649_v53 = vld [vmem:[#allocation11 + $0x104] sm:$0xf0] }
 0x21f   :  { %4179 = vmatpush.bf16.msrb.mxu1 %v6282_v24  ;;  %v7183_v24 = vld [vmem:[#allocation8 + $0xa94] sm:$0xf]  ;;  %v3888_v14 = vadd.f32 %v9734_v61, %v3875_v49  ;;  %v6306_v61 = vor.u32 %v7181_v40, %v6303_v51  ;;  %v6587_v51 = vld [vmem:[#allocation11 + $0x78] sm:$0xf] }
 0x220   :  { %4192 = vmatpush.bf16.msrb.mxu2 %v6346_v6  ;;  %4169 = vmatpush.bf16.msrb.mxu0 %v6194_v30  ;;  %v7223_v6 = vld [vmem:[#allocation8 + $0xbd4] sm:$0xf]  ;;  %v6314_v34 = vor.u32 %v7183_v24, %v6311_v5  ;;  %v7217_v24 = vld [vmem:[#allocation8 + $0xba4] sm:$0xf] }
 0x221   :  { %4205 = vmatpush.bf16.msrb.mxu3 %v6410_v12  ;;  %v7199_v30 = vld [vmem:[#allocation8 + $0xb14] sm:$0xf]  ;;  %v6250_v12 = vor.u32 %v7167_v44, %v6247_v33  ;;  %v6627_v44 = vld [vmem:[#allocation11 + $0xc8] sm:$0xf]  ;;  %v7264_v33 = vld [vmem:[#allocation11 + $0xd8] sm:$0xf0] }
 0x222   :  { %v6378_v2 = vor.u32 %v7199_v30, %v6375_v17  ;;  %v6495_v30 = vld [vmem:[#allocation8 + $0xc08] sm:$0xf0]  ;;  %v6567_v10 = vld [vmem:[#allocation11 + $0x50] sm:$0xf] }
 0x223   :  { %4180 = vmatpush.bf16.msrb.mxu1 %v6274_v54  ;;  %v7197_v54 = vld [vmem:[#allocation8 + $0xb04] sm:$0xf] }
 0x224   :  { %4193 = vmatpush.bf16.msrb.mxu2 %v6338_v58  ;;  %4170 = vmatpush.bf16.msrb.mxu0 %v6186_v45  ;;  %v7395_v58 = vld [vmem:[#allocation10] sm:$0x3]  ;;  %v6474_v45 = vor.u32 %v7223_v6, %v6471_v59  ;;  %v3954_v16 = vpop.f32.mrf.mxu3  ;;  %v7229_v6 = vld [vmem:[#allocation8 + $0xc04] sm:$0xf] }
 0x225   :  { %4206 = vmatpush.bf16.msrb.mxu3 %v6402_v31  ;;  %v1626_v47 = vperm.slane %v7395_v58, 1  ;;  %v7274_v31 = vld [vmem:[#allocation11 + $0x128] sm:$0xf0]  ;;  %v6669_v58 = vld [vmem:[#allocation11 + $0x12c] sm:$0xf0] }
 0x226   :  { %v6668_v38 = vor.u32 %v7274_v31, %v6667_v62  ;;  %v7272_v62 = vld [vmem:[#allocation11 + $0x11c] sm:$0xf] }
 0x227   :  { %4181 = vmatpush.bf16.msrb.mxu1 %v6266_v19  ;;  %v3927_v3 = vadd.f32 %v3926_v15, %v1626_v47  ;;  %v3901_v19 = vadd.f32 %v9736_v18, %v3888_v14  ;;  %v6455_v15 = vld [vmem:[#allocation8 + $0xbb8] sm:$0xf0]  ;;  %v6672_v16 = vor.u32 %v7272_v62, %v6669_v58  ;;  %v6595_v58 = vld [vmem:[#allocation11 + $0x80] sm:$0xf] }
 0x228   :  { %4194 = vmatpush.bf16.msrb.mxu2 %v6330_v27  ;;  %4171 = vmatpush.bf16.msrb.mxu0 %v6178_v28  ;;  %v6370_v27 = vor.u32 %v7197_v54, %v6367_v55  ;;  %v3913_v56 = vpop.f32.mrf.mxu0  ;;  %v7254_v54 = vld [vmem:[#allocation11 + $0x88] sm:$0xf0] }
 0x229   :  { %4207 = vmatpush.bf16.msrb.mxu3 %v6394_v9  ;;  %v3940_v28 = vadd.f32 %v3939_v8, %v3927_v3  ;;  %v7233_v9 = vld [vmem:[#allocation8 + $0xc24] sm:$0xf]  ;;  %v3914_v29 = vadd.f32 %v3913_v56, %v3901_v19  ;;  %v6431_v55 = vld [vmem:[#allocation8 + $0xb88] sm:$0xf0]  ;;  %v6588_v47 = vor.u32 %v7254_v54, %v6587_v51 }
 0x22a   :  { %v6514_v18 = vor.u32 %v7233_v9, %v6511_v39  ;;  %v6652_v9 = vor.u32 %v7267_v37, %v6649_v53  ;;  %v7262_v56 = vld [vmem:[#allocation11 + $0xcc] sm:$0xf]  ;;  %v6549_v54 = vld [vmem:[#allocation11 + $0x3c] sm:$0xf0]  ;;  %v6575_v37 = vld [vmem:[#allocation11 + $0x58] sm:$0xf] }
 0x22b   :  { %4182 = vmatpush.bf16.msrb.mxu1 %v6258_v48  ;;  %4172 = vmatmul.bf16.vlgmr.msrb.gmra.mxu0 %v9627_v26  ;;  %v3941_v26 = vpop.f32.mrf.mxu2  ;;  %v3953_v7 = vadd.f32 %v9747_v57, %v3940_v28  ;;  %v4242_v36 = vmax.f32 %v3914_v29, 0.0  ;;  %v6503_v48 = vld [vmem:[#allocation8 + $0xc18] sm:$0xf0]  ;;  %v6447_v57 = vld [vmem:[#allocation8 + $0xba8] sm:$0xf0] }
 0x22c   :  { %4216 = vmatpush.bf16.msra.mxu0 %v6490_v22  ;;  %4195 = vmatpush.bf16.msrb.mxu2 %v6322_v50  ;;  %v6647_v22 = vld [vmem:[#allocation11 + $0xf0] sm:$0xf]  ;;  %v6458_v50 = vor.u32 %v7219_v0, %v6455_v15  ;;  %v6506_v5 = vor.u32 %v7231_v23, %v6503_v48  ;;  %v6450_v59 = vor.u32 %v7217_v24, %v6447_v57  ;;  %v6527_v15 = vld [vmem:[#allocation11] sm:$0xf]  ;;  %v6609_v23 = vld [vmem:[#allocation11 + $0xb4] sm:$0xf0] }
 0x22d   :  { %4208 = vmatpush.bf16.msrb.mxu3 %v6386_v41  ;;  %v6648_v8 = vor.u32 %v7269_v21, %v6647_v22  ;;  %v4244_v41 = vrot.slane %v4242_v36, 4  ;;  %v6655_v24 = vld [vmem:[#allocation11 + $0xf8] sm:$0xf]  ;;  %v7270_v57 = vld [vmem:[#allocation11 + $0x108] sm:$0xf0] }
 0x22e   :  { %v7242_v51 = vld [vmem:[#allocation11 + $0x2c] sm:$0xf] }
 0x22f   :  { %4183 = vmatpush.bf16.msrb.mxu1 %v6250_v12  ;;  %v4245_v17 = vadd.f32 %v4244_v41, %v4242_v36  ;;  %v7259_v12 = vld [vmem:[#allocation11 + $0xb0] sm:$0xf0]  ;;  %v7250_v53 = vld [vmem:[#allocation11 + $0x68] sm:$0xf0] }
 0x230   :  { %4217 = vmatpush.bf16.msra.mxu0 %v6482_v46  ;;  %4196 = vmatpush.bf16.msrb.mxu2 %v6314_v34  ;;  %v6628_v46 = vor.u32 %v7264_v33, %v6627_v44  ;;  %v3915_v49 = vpop.f32.mrf.mxu0  ;;  %v7275_v36 = vld [vmem:[#allocation11 + $0x130] sm:$0xf0] }
 0x231   :  { %4209 = vmatpush.bf16.msrb.mxu3 %v6378_v2  ;;  %v4246_v40 = vrot.slane %v4245_v17, 2  ;;  %v7213_v2 = vld [vmem:[#allocation8 + $0xb84] sm:$0xf] }
 0x232   :  { %v6434_v31 = vor.u32 %v7213_v2, %v6431_v55  ;;  %v6552_v55 = vor.u32 %v7242_v51, %v6549_v54 }
 0x233   :  { %4184 = vmatpush.bf16.msrb.mxu1 %v6242_v60  ;;  %v3978_v14 = vpop.f32.mrf.mxu1  ;;  %v4247_v4 = vadd.f32 %v4246_v40, %v4245_v17  ;;  %v6656_v17 = vor.u32 %v7270_v57, %v6655_v24  ;;  %v6615_v40 = vld [vmem:[#allocation11 + $0xa8] sm:$0xf]  ;;  %v7253_v24 = vld [vmem:[#allocation11 + $0x84] sm:$0xf]  ;;  %v6597_v57 = vld [vmem:[#allocation11 + $0x94] sm:$0xf0] }
 0x234   :  { %4218 = vmatpush.bf16.msra.mxu0 %v6474_v45  ;;  %4197 = vmatpush.bf16.msrb.mxu2 %v6306_v61  ;;  %v6568_v61 = vor.u32 %v7249_v52, %v6567_v10  ;;  %v7273_v10 = vld [vmem:[#allocation11 + $0x124] sm:$0xf]  ;;  %v6677_v52 = vld [vmem:[#allocation11 + $0x134] sm:$0xf0] }
 0x235   :  { %4210 = vmatpush.bf16.msrb.mxu3 %v6370_v27  ;;  %v4248_v19 = vrot.slane %v4247_v4, 1  ;;  %v6547_v27 = vld [vmem:[#allocation11 + $0x28] sm:$0xf] }
 0x236   :  { %4185 = vmatmul.bf16.vlgmr.msrb.gmra.mxu1 %v9658_v42  ;;  %v6607_v42 = vld [vmem:[#allocation11 + $0xa0] sm:$0xf] }
 0x237   :  { %4233 = vmatpush.bf16.msra.mxu1 %v6522_v43  ;;  %4198 = vmatmul.bf16.vlgmr.msrb.gmra.mxu2 %v9662_v1  ;;  %v6498_v1 = vor.u32 %v7229_v6, %v6495_v30  ;;  %v6608_v34 = vor.u32 %v7259_v12, %v6607_v42  ;;  %v4249_v29 = vadd.f32 %v4248_v19, %v4247_v4  ;;  %v6635_v42 = vld [vmem:[#allocation11 + $0xd0] sm:$0xf]  ;;  %v7265_v12 = vld [vmem:[#allocation11 + $0xe0] sm:$0xf0] }
 0x238   :  { %4784 = vmatpush.bf16.msra.mxu2 %v6668_v38  ;;  %4219 = vmatpush.bf16.msra.mxu0 %v6466_v13  ;;  %v3965_v45 = vpop.f32.mrf.mxu0  ;;  %v7244_v38 = vld [vmem:[#allocation11 + $0x38] sm:$0xf0]  ;;  %v6629_v13 = vld [vmem:[#allocation11 + $0xdc] sm:$0xf0]  ;;  %v6576_v19 = vor.u32 %v7250_v53, %v6575_v37  ;;  %v7246_v37 = vld [vmem:[#allocation11 + $0x48] sm:$0xf0] }
 0x239   :  { %4211 = vmatmul.bf16.vlgmr.msrb.gmra.mxu3 %v9660_v63  ;;  %v6442_v63 = vor.u32 %v7215_v25, %v6439_v32  ;;  %v3966_v26 = vadd.f32 %v3965_v45, %v3953_v7  ;;  %v6548_v21 = vor.u32 %v7244_v38, %v6547_v27  ;;  %v7239_v7 = vld [vmem:[#allocation11 + $0x10] sm:$0xf0]  ;;  %v4256_v33 = vmul.f32 %v4249_v29, %v7932_v11  ;;  %v6569_v32 = vld [vmem:[#allocation11 + $0x64] sm:$0xf0]  ;;  %v7237_v45 = vld [vmem:[#allocation11 + $0x4] sm:$0xf] }
 0x23a   :  { %v3991_v60 = vpop.f32.mrf.mxu2  ;;  %v7247_v25 = vld [vmem:[#allocation11 + $0x54] sm:$0xf]  ;;  %v6827_v53 = vld [vmem:[#allocation11 + $0x258] sm:$0xf] }
 0x23b   :  { %4234 = vmatpush.bf16.msra.mxu1 %v6514_v18  ;;  %v3979_v3 = vadd.f32 %v3978_v14, %v3966_v26  ;;  %v3980_v28 = vpop.f32.mrf.mxu1  ;;  %v6632_v18 = vor.u32 %v7262_v56, %v6629_v13  ;;  %v9762_v6 = vpack.c.bf16 %v4256_v33, %v4256_v33 }
 0x23c   :  { %4785 = vmatpush.bf16.msra.mxu2 %v6648_v8  ;;  %4220 = vmatpush.bf16.msra.mxu0 %v6458_v50  ;;  %v7257_v8 = vld [vmem:[#allocation11 + $0xa4] sm:$0xf]  ;;  %v6528_v50 = vor.u32 %v7239_v7, %v6527_v15  ;;  %v6555_v28 = vld [vmem:[#allocation11 + $0x30] sm:$0xf]  ;;  %v7240_v15 = vld [vmem:[#allocation11 + $0x18] sm:$0xf0] }
 0x23d   :  { %v4004_v43 = vpop.f32.mrf.mxu3  ;;  %v3992_v39 = vadd.f32 %v3991_v60, %v3979_v3  ;;  %v6612_v41 = vor.u32 %v7257_v8, %v6609_v23  ;;  %v6680_v60 = vor.u32 %v7273_v10, %v6677_v52  ;;  %v7268_v3 = vld [vmem:[#allocation11 + $0xfc] sm:$0xf]  ;;  %v6617_v8 = vld [vmem:[#allocation11 + $0xbc] sm:$0xf0]  ;;  %v6563_v52 = vld [vmem:[#allocation11 + $0x38] sm:$0xf] }
 0x23f   :  { %4235 = vmatpush.bf16.msra.mxu1 %v6506_v5  ;;  %v4005_v22 = vadd.f32 %v4004_v43, %v3992_v39  ;;  %v7252_v5 = vld [vmem:[#allocation11 + $0x7c] sm:$0xf] }
 0x240   :  { %4786 = vmatpush.bf16.msra.mxu2 %v6628_v46  ;;  %4221 = vmatpush.bf16.msra.mxu0 %v6450_v59  ;;  %v3967_v0 = vpop.f32.mrf.mxu0  ;;  %v6589_v46 = vld [vmem:[#allocation11 + $0x8c] sm:$0xf0] }
 0x241   :  { %v6592_v59 = vor.u32 %v7252_v5, %v6589_v46  ;;  %v6535_v0 = vld [vmem:[#allocation11 + $0x8] sm:$0xf] }
 0x242   :  { %v3993_v48 = vpop.f32.mrf.mxu2  ;;  %v6536_v23 = vor.u32 %v7240_v15, %v6535_v0  ;;  %v7312_v15 = vld [vmem:[#allocation11 + $0x25c] sm:$0xf] }
 0x243   :  { %4236 = vmatpush.bf16.msra.mxu1 %v6498_v1  ;;  %v6636_v1 = vor.u32 %v7265_v12, %v6635_v42  ;;  %v6577_v42 = vld [vmem:[#allocation11 + $0x6c] sm:$0xf0] }
 0x244   :  { %4787 = vmatpush.bf16.msra.mxu2 %v6608_v34  ;;  %4222 = vmatpush.bf16.msra.mxu0 %v6442_v63  ;;  %v6572_v34 = vor.u32 %v7247_v25, %v6569_v32  ;;  %v7260_v63 = vld [vmem:[#allocation11 + $0xb8] sm:$0xf0]  ;;  %v6623_v32 = vld [vmem:[#allocation11 + $0xb0] sm:$0xf] }
 0x245   :  { %v4006_v44 = vpop.f32.mrf.mxu3  ;;  %v6616_v14 = vor.u32 %v7260_v63, %v6615_v40  ;;  %v6557_v40 = vld [vmem:[#allocation11 + $0x44] sm:$0xf0] }
 0x246   :  { %6524 = vmatmul.msk.bf16.vlgmr.msra.gmra.mxu1 %vm304_vm14, %v9704_v35  ;;  %v6675_v35 = vld [vmem:[#allocation11 + $0x120] sm:$0xf] }
 0x248   :  { %4788 = vmatpush.bf16.msra.mxu2 %v6588_v47  ;;  %4223 = vmatpush.bf16.msra.mxu0 %v6434_v31  ;;  %v4017_v30 = vpop.f32.mrf.mxu0  ;;  %v7255_v47 = vld [vmem:[#allocation11 + $0x90] sm:$0xf0]  ;;  %v6529_v31 = vld [vmem:[#allocation11 + $0x14] sm:$0xf0] }
 0x249   :  { %v4018_v49 = vadd.f32 %v4017_v30, %v4005_v22  ;;  %v6596_v26 = vor.u32 %v7255_v47, %v6595_v58  ;;  %v7263_v22 = vld [vmem:[#allocation11 + $0xd4] sm:$0xf]  ;;  %v6600_v30 = vor.u32 %v7253_v24, %v6597_v57  ;;  %v6537_v58 = vld [vmem:[#allocation11 + $0x1c] sm:$0xf0]  ;;  %v7302_v24 = vld [vmem:[#allocation11 + $0x20c] sm:$0xf] }
 0x24b   :  { %4224 = vmatmul.bf16.vlgmr.msra.gmra.mxu0 %v9664_v20  ;;  %v6676_v20 = vor.u32 %v7275_v36, %v6675_v35  ;;  %v7276_v35 = vld [vmem:[#allocation11 + $0x138] sm:$0xf0]  ;;  %v7258_v36 = vld [vmem:[#allocation11 + $0xac] sm:$0xf] }
 0x24c   :  { %4810 = vmatpush.bf16.msrb.mxu0 %v6672_v16  ;;  %4789 = vmatpush.bf16.msra.mxu2 %v6568_v61  ;;  %v6532_v16 = vor.u32 %v7237_v45, %v6529_v31  ;;  %v6657_v61 = vld [vmem:[#allocation11 + $0x10c] sm:$0xf0]  ;;  %v6620_v33 = vor.u32 %v7258_v36, %v6617_v8  ;;  %v6583_v45 = vld [vmem:[#allocation11 + $0x60] sm:$0xf]  ;;  %v7251_v31 = vld [vmem:[#allocation11 + $0x70] sm:$0xf0] }
 0x24d   :  { %v6660_v56 = vor.u32 %v7268_v3, %v6657_v61  ;;  %v6584_v10 = vor.u32 %v7251_v31, %v6583_v45  ;;  %v7307_v36 = vld [vmem:[#allocation11 + $0x234] sm:$0xf]  ;;  %v6809_v8 = vld [vmem:[#allocation11 + $0x244] sm:$0xf0] }
 0x250   :  { %4811 = vmatpush.bf16.msrb.mxu0 %v6652_v9  ;;  %4790 = vmatpush.bf16.msra.mxu2 %v6548_v21  ;;  %v4019_v2 = vpop.f32.mrf.mxu0  ;;  %v7245_v9 = vld [vmem:[#allocation11 + $0x40] sm:$0xf0]  ;;  %v6637_v21 = vld [vmem:[#allocation11 + $0xe4] sm:$0xf0] }
 0x251   :  { %v6556_v29 = vor.u32 %v7245_v9, %v6555_v28  ;;  %v6640_v7 = vor.u32 %v7263_v22, %v6637_v21  ;;  %v7256_v2 = vld [vmem:[#allocation11 + $0x98] sm:$0xf0]  ;;  %v6787_v22 = vld [vmem:[#allocation11 + $0x208] sm:$0xf] }
 0x253   :  { %v4030_v62 = vpop.f32.mrf.mxu1 }
 0x254   :  { %4812 = vmatpush.bf16.msrb.mxu0 %v6632_v18  ;;  %4791 = vmatpush.bf16.msra.mxu2 %v6528_v50  ;;  %v4031_v4 = vadd.f32 %v4030_v62, %v4018_v49  ;;  %v6683_v18 = vld [vmem:[#allocation11 + $0x128] sm:$0xf]  ;;  %v7266_v49 = vld [vmem:[#allocation11 + $0xe8] sm:$0xf0] }
 0x255   :  { %v6684_v50 = vor.u32 %v7276_v35, %v6683_v18  ;;  %v7238_v62 = vld [vmem:[#allocation11 + $0xc] sm:$0xf] }
 0x257   :  { %4792 = vmatmul.bf16.vlgmr.msra.gmra.mxu2 %v9762_v6 }
 0x258   :  { %4836 = vmatpush.bf16.msrb.mxu2 %v6676_v20  ;;  %4813 = vmatpush.bf16.msrb.mxu0 %v6612_v41  ;;  %v6663_v20 = vld [vmem:[#allocation11 + $0x100] sm:$0xf]  ;;  %v7271_v41 = vld [vmem:[#allocation11 + $0x110] sm:$0xf0] }
 0x259   :  { %v6664_v46 = vor.u32 %v7271_v41, %v6663_v20  ;;  %v7294_v20 = vld [vmem:[#allocation11 + $0x1c8] sm:$0xf0] }
 0x25a   :  { %v4043_v43 = vpop.f32.mrf.mxu2 }
 0x25b   :  { %v4044_v27 = vadd.f32 %v4043_v43, %v4031_v4  ;;  %v4032_v39 = vpop.f32.mrf.mxu1  ;;  %v6540_v4 = vor.u32 %v7238_v62, %v6537_v58  ;;  %v6564_v43 = vor.u32 %v7246_v37, %v6563_v52  ;;  %v7287_v37 = vld [vmem:[#allocation11 + $0x194] sm:$0xf] }
 0x25c   :  { %4837 = vmatpush.bf16.msrb.mxu2 %v6656_v17  ;;  %4814 = vmatpush.bf16.msrb.mxu0 %v6592_v59  ;;  %v6643_v17 = vld [vmem:[#allocation11 + $0xd8] sm:$0xf]  ;;  %v7248_v59 = vld [vmem:[#allocation11 + $0x5c] sm:$0xf]  ;;  %v6807_v39 = vld [vmem:[#allocation11 + $0x230] sm:$0xf] }
 0x25d   :  { %v4056_v38 = vpop.f32.mrf.mxu3  ;;  %v6644_v12 = vor.u32 %v7266_v49, %v6643_v17  ;;  %v6580_v25 = vor.u32 %v7248_v59, %v6577_v42  ;;  %v7289_v17 = vld [vmem:[#allocation11 + $0x1a0] sm:$0xf0]  ;;  %v6769_v42 = vld [vmem:[#allocation11 + $0x1f4] sm:$0xf0] }
 0x25e   :  { %v9765_v13 = vadd.f32 %v4056_v38, %v4044_v27  ;;  %v7241_v27 = vld [vmem:[#allocation11 + $0x20] sm:$0xf0] }
 0x25f   :  { %v7297_v59 = vld [vmem:[#allocation11 + $0x1e4] sm:$0xf] }
 0x260   :  { %4838 = vmatpush.bf16.msrb.mxu2 %v6636_v1  ;;  %4815 = vmatpush.bf16.msrb.mxu0 %v6572_v34  ;;  %v7261_v1 = vld [vmem:[#allocation11 + $0xc0] sm:$0xf0]  ;;  %v7243_v34 = vld [vmem:[#allocation11 + $0x34] sm:$0xf] }
 0x261   :  { %v6624_v63 = vor.u32 %v7261_v1, %v6623_v32  ;;  %v6560_v54 = vor.u32 %v7243_v34, %v6557_v40  ;;  %v6707_v32 = vld [vmem:[#allocation11 + $0x168] sm:$0xf]  ;;  %v7284_v1 = vld [vmem:[#allocation11 + $0x178] sm:$0xf0] }
 0x262   :  { %v4045_v48 = vpop.f32.mrf.mxu2  ;;  %v6708_v40 = vor.u32 %v7284_v1, %v6707_v32  ;;  %v6735_v1 = vld [vmem:[#allocation11 + $0x198] sm:$0xf] }
 0x263   :  { %v7299_v48 = vld [vmem:[#allocation11 + $0x1f0] sm:$0xf0] }
 0x264   :  { %4839 = vmatpush.bf16.msrb.mxu2 %v6616_v14  ;;  %4816 = vmatpush.bf16.msrb.mxu0 %v6552_v55  ;;  %v6603_v14 = vld [vmem:[#allocation11 + $0x88] sm:$0xf] }
 0x265   :  { %v4058_v44 = vpop.f32.mrf.mxu3  ;;  %v6604_v47 = vor.u32 %v7256_v2, %v6603_v14  ;;  %v7279_v14 = vld [vmem:[#allocation11 + $0x150] sm:$0xf0]  ;;  %v6749_v2 = vld [vmem:[#allocation11 + $0x1cc] sm:$0xf0] }
 0x268   :  { %4840 = vmatpush.bf16.msrb.mxu2 %v6596_v26  ;;  %4817 = vmatpush.bf16.msrb.mxu0 %v6532_v16  ;;  %v9768_v5 = vpop.f32.mrf.mxu0 }
 0x26b   :  { %4818 = vmatmul.bf16.vlgmr.msrb.gmra.mxu0 %v9762_v6 }
 0x26c   :  { %4862 = vmatpush.bf16.msra.mxu0 %v6680_v60  ;;  %4841 = vmatpush.bf16.msrb.mxu2 %v6576_v19  ;;  %v7314_v60 = vld [vmem:[#allocation11 + $0x268] sm:$0xf0]  ;;  %v6543_v19 = vld [vmem:[#allocation11 + $0x10] sm:$0xf] }
 0x26d   :  { %v6828_v61 = vor.u32 %v7314_v60, %v6827_v53  ;;  %v6544_v38 = vor.u32 %v7241_v27, %v6543_v19  ;;  %v6729_v53 = vld [vmem:[#allocation11 + $0x1a4] sm:$0xf0]  ;;  %v6815_v60 = vld [vmem:[#allocation11 + $0x238] sm:$0xf] }
 0x26f   :  { %4797 = vmatpush.bf16.msra.mxu3 %v6828_v61  ;;  %v7310_v61 = vld [vmem:[#allocation11 + $0x248] sm:$0xf0] }
 0x270   :  { %4863 = vmatpush.bf16.msra.mxu0 %v6660_v56  ;;  %4842 = vmatpush.bf16.msrb.mxu2 %v6556_v29  ;;  %v4071_v51 = vpop.f32.mrf.mxu0  ;;  %v7309_v56 = vld [vmem:[#allocation11 + $0x240] sm:$0xf0]  ;;  %v7304_v29 = vld [vmem:[#allocation11 + $0x218] sm:$0xf0]  ;;  %v6816_v27 = vor.u32 %v7310_v61, %v6815_v60  ;;  %v6695_v60 = vld [vmem:[#allocation11 + $0x148] sm:$0xf] }
 0x271   :  { %v6808_v21 = vor.u32 %v7309_v56, %v6807_v39  ;;  %v6788_v18 = vor.u32 %v7304_v29, %v6787_v22  ;;  %v7293_v61 = vld [vmem:[#allocation11 + $0x1c4] sm:$0xf] }
 0x273   :  { %v9771_v55 = vpop.f32.mrf.mxu1  ;;  %4798 = vmatpush.bf16.msra.mxu3 %v6808_v21 }
 0x274   :  { %4864 = vmatpush.bf16.msra.mxu0 %v6640_v7  ;;  %4843 = vmatpush.bf16.msrb.mxu2 %v6536_v23  ;;  %v6829_v7 = vld [vmem:[#allocation11 + $0x26c] sm:$0xf0]  ;;  %v6767_v23 = vld [vmem:[#allocation11 + $0x1e0] sm:$0xf] }
 0x275   :  { %v6832_v35 = vor.u32 %v7312_v15, %v6829_v7  ;;  %v6768_v44 = vor.u32 %v7299_v48, %v6767_v23  ;;  %v7277_v23 = vld [vmem:[#allocation11 + $0x144] sm:$0xf]  ;;  %v6689_v48 = vld [vmem:[#allocation11 + $0x154] sm:$0xf0] }
 0x277   :  { %4844 = vmatmul.bf16.vlgmr.msrb.gmra.mxu2 %v9762_v6  ;;  %4823 = vmatpush.bf16.msrb.mxu1 %v6832_v35  ;;  %v6709_v35 = vld [vmem:[#allocation11 + $0x17c] sm:$0xf0] }
 0x278   :  { %4888 = vmatpush.bf16.msra.mxu2 %v6684_v50  ;;  %4865 = vmatpush.bf16.msra.mxu0 %v6620_v33  ;;  %v6812_v50 = vor.u32 %v7307_v36, %v6809_v8  ;;  %v6747_v33 = vld [vmem:[#allocation11 + $0x1b8] sm:$0xf]  ;;  %v6795_v36 = vld [vmem:[#allocation11 + $0x210] sm:$0xf] }
 0x279   :  { %4799 = vmatpush.bf16.msra.mxu3 %v6788_v18  ;;  %v6748_v57 = vor.u32 %v7294_v20, %v6747_v33  ;;  %v7313_v33 = vld [vmem:[#allocation11 + $0x264] sm:$0xf]  ;;  %v6837_v20 = vld [vmem:[#allocation11 + $0x274] sm:$0xf0] }
 0x27a   :  { %v9773_v26 = vpop.f32.mrf.mxu2 }
 0x27b   :  { %v4084_v3 = vpop.f32.mrf.mxu1  ;;  %4824 = vmatpush.bf16.msrb.mxu1 %v6812_v50 }
 0x27c   :  { %4889 = vmatpush.bf16.msra.mxu2 %v6664_v46  ;;  %4866 = vmatpush.bf16.msra.mxu0 %v6600_v30  ;;  %v6727_v46 = vld [vmem:[#allocation11 + $0x190] sm:$0xf]  ;;  %v6789_v30 = vld [vmem:[#allocation11 + $0x21c] sm:$0xf0]  ;;  %v6732_v3 = vor.u32 %v7287_v37, %v6729_v53 }
 0x27d   :  { %v9775_v16 = vpop.f32.mrf.mxu3  ;;  %4800 = vmatpush.bf16.msra.mxu3 %v6768_v44  ;;  %v6792_v49 = vor.u32 %v7302_v24, %v6789_v30  ;;  %v7300_v44 = vld [vmem:[#allocation11 + $0x1f8] sm:$0xf0]  ;;  %v7295_v30 = vld [vmem:[#allocation11 + $0x1d0] sm:$0xf0] }
 0x27f   :  { %4825 = vmatpush.bf16.msrb.mxu1 %v6792_v49  ;;  %v6817_v49 = vld [vmem:[#allocation11 + $0x24c] sm:$0xf0] }
 0x280   :  { %4890 = vmatpush.bf16.msra.mxu2 %v6644_v12  ;;  %4867 = vmatpush.bf16.msra.mxu0 %v6580_v25  ;;  %v6772_v12 = vor.u32 %v7297_v59, %v6769_v42  ;;  %v6728_v25 = vor.u32 %v7289_v17, %v6727_v46  ;;  %v6755_v46 = vld [vmem:[#allocation11 + $0x1c0] sm:$0xf]  ;;  %v7308_v17 = vld [vmem:[#allocation11 + $0x23c] sm:$0xf] }
 0x281   :  { %4801 = vmatpush.bf16.msra.mxu3 %v6748_v57  ;;  %v6840_v57 = vor.u32 %v7313_v33, %v6837_v20  ;;  %v6820_v32 = vor.u32 %v7308_v17, %v6817_v49  ;;  %v7301_v17 = vld [vmem:[#allocation11 + $0x200] sm:$0xf0]  ;;  %v6763_v49 = vld [vmem:[#allocation11 + $0x1c8] sm:$0xf] }
 0x282   :  { %v4097_v28 = vpop.f32.mrf.mxu2 }
 0x283   :  { %4826 = vmatpush.bf16.msrb.mxu1 %v6772_v12 }
 0x284   :  { %4891 = vmatpush.bf16.msra.mxu2 %v6624_v63  ;;  %4868 = vmatpush.bf16.msra.mxu0 %v6560_v54  ;;  %v7292_v63 = vld [vmem:[#allocation11 + $0x1bc] sm:$0xf]  ;;  %v6687_v54 = vld [vmem:[#allocation11 + $0x140] sm:$0xf] }
 0x285   :  { %v4110_v9 = vpop.f32.mrf.mxu3  ;;  %4802 = vmatpush.bf16.msra.mxu3 %v6728_v25  ;;  %v6752_v58 = vor.u32 %v7292_v63, %v6749_v2  ;;  %v6688_v45 = vor.u32 %v7279_v14, %v6687_v54  ;;  %v6756_v25 = vor.u32 %v7295_v30, %v6755_v46  ;;  %v6797_v63 = vld [vmem:[#allocation11 + $0x224] sm:$0xf0]  ;;  %v6783_v30 = vld [vmem:[#allocation11 + $0x1f0] sm:$0xf] }
 0x287   :  { %4827 = vmatpush.bf16.msrb.mxu1 %v6752_v58  ;;  %v6715_v58 = vld [vmem:[#allocation11 + $0x170] sm:$0xf] }
 0x288   :  { %4892 = vmatpush.bf16.msra.mxu2 %v6604_v47  ;;  %4869 = vmatpush.bf16.msra.mxu0 %v6540_v4  ;;  %v9778_v0 = vpop.f32.mrf.mxu0  ;;  %v6835_v47 = vld [vmem:[#allocation11 + $0x260] sm:$0xf]  ;;  %v7315_v4 = vld [vmem:[#allocation11 + $0x270] sm:$0xf0] }
 0x289   :  { %4803 = vmatpush.bf16.msra.mxu3 %v6708_v40  ;;  %v6836_v31 = vor.u32 %v7315_v4, %v6835_v47  ;;  %v7303_v40 = vld [vmem:[#allocation11 + $0x214] sm:$0xf]  ;;  %v7285_v47 = vld [vmem:[#allocation11 + $0x180] sm:$0xf0]  ;;  %v7298_v4 = vld [vmem:[#allocation11 + $0x1ec] sm:$0xf] }
 0x28a   :  { %v6716_v37 = vor.u32 %v7285_v47, %v6715_v58 }
 0x28b   :  { %4870 = vmatmul.bf16.vlgmr.msra.gmra.mxu0 %v9762_v6  ;;  %4828 = vmatpush.bf16.msrb.mxu1 %v6732_v3  ;;  %v7280_v3 = vld [vmem:[#allocation11 + $0x158] sm:$0xf0] }
 0x28c   :  { %4893 = vmatpush.bf16.msra.mxu2 %v6584_v10 }
 0x28d   :  { %4804 = vmatpush.bf16.msra.mxu3 %v6688_v45  ;;  %v6777_v45 = vld [vmem:[#allocation11 + $0x1fc] sm:$0xf0] }
 0x28e   :  { %v6780_v53 = vor.u32 %v7298_v4, %v6777_v45  ;;  %v4356_v45 = vld [vmem:[#allocation13] sm:$0x1f] }
 0x290   :  { %4894 = vmatpush.bf16.msra.mxu2 %v6564_v43  ;;  %v4123_v41 = vpop.f32.mrf.mxu0  ;;  %v4070_v43 = vadd.f32 %v9768_v5, %v9765_v13  ;;  %v7282_v5 = vld [vmem:[#allocation11 + $0x16c] sm:$0xf] }
 0x291   :  { %4849 = vmatpush.bf16.msrb.mxu3 %v6836_v31  ;;  %v6712_v8 = vor.u32 %v7282_v5, %v6709_v35  ;;  %v6843_v35 = vld [vmem:[#allocation11 + $0x268] sm:$0xf] }
 0x293   :  { %4829 = vmatpush.bf16.msrb.mxu1 %v6712_v8 }
 0x294   :  { %4895 = vmatpush.bf16.msra.mxu2 %v6544_v38  ;;  %v4083_v38 = vadd.f32 %v9771_v55, %v4070_v43  ;;  %v7305_v55 = vld [vmem:[#allocation11 + $0x220] sm:$0xf0]  ;;  %v6757_v43 = vld [vmem:[#allocation11 + $0x1d4] sm:$0xf0] }
 0x295   :  { %4850 = vmatpush.bf16.msrb.mxu3 %v6816_v27  ;;  %v6796_v50 = vor.u32 %v7305_v55, %v6795_v36  ;;  %v7316_v36 = vld [vmem:[#allocation11 + $0x278] sm:$0xf0]  ;;  %v7278_v55 = vld [vmem:[#allocation11 + $0x14c] sm:$0xf] }
 0x296   :  { %v4096_v28 = vadd.f32 %v9773_v26, %v4083_v38 }
 0x297   :  { %4896 = vmatmul.bf16.vlgmr.msra.gmra.mxu2 %v9762_v6  ;;  %v4134_v6 = vpop.f32.mrf.mxu1 }
 0x298   :  { %v4109_v9 = vadd.f32 %v9775_v16, %v4096_v28  ;;  %v6775_v16 = vld [vmem:[#allocation11 + $0x1e8] sm:$0xf]  ;;  %v6696_v28 = vor.u32 %v7280_v3, %v6695_v60 }
 0x299   :  { %4851 = vmatpush.bf16.msrb.mxu3 %v6796_v50  ;;  %v6776_v24 = vor.u32 %v7300_v44, %v6775_v16  ;;  %v6823_v16 = vld [vmem:[#allocation11 + $0x240] sm:$0xf]  ;;  %v7311_v44 = vld [vmem:[#allocation11 + $0x250] sm:$0xf0] }
 0x29a   :  { %v4147_v34 = vpop.f32.mrf.mxu2  ;;  %v4122_v56 = vadd.f32 %v9778_v0, %v4109_v9  ;;  %v6692_v0 = vor.u32 %v7277_v23, %v6689_v48  ;;  %v6760_v9 = vor.u32 %v7293_v61, %v6757_v43  ;;  %v6697_v23 = vld [vmem:[#allocation11 + $0x15c] sm:$0xf0] }
 0x29b   :  { %v6700_v33 = vor.u32 %v7278_v55, %v6697_v23  ;;  %v4930_v55 = vlaneseq }
 0x29c   :  { %v4135_v21 = vadd.f32 %v4134_v6, %v4122_v56  ;;  %4830 = vmatpush.bf16.msrb.mxu1 %v6692_v0  ;;  %v6737_v56 = vld [vmem:[#allocation11 + $0x1ac] sm:$0xf0]  ;;  %v6824_v0 = vor.u32 %v7311_v44, %v6823_v16 }
 0x29d   :  { %v4160_v51 = vpop.f32.mrf.mxu3  ;;  %4852 = vmatpush.bf16.msrb.mxu3 %v6776_v24  ;;  %v7306_v24 = vld [vmem:[#allocation11 + $0x228] sm:$0xf0]  ;;  %vm4932_vm8 = vcmp.lt.s32.totalorder %v4930_v55, 640 }
 0x29e   :  { %v4148_v29 = vadd.f32 %v4147_v34, %v4135_v21  ;;  %v7290_v34 = vld [vmem:[#allocation11 + $0x1a8] sm:$0xf0] }
 0x29f   :  { %v4136_v62 = vpop.f32.mrf.mxu1  ;;  %v6736_v2 = vor.u32 %v7290_v34, %v6735_v1  ;;  %v6723_v1 = vld [vmem:[#allocation11 + $0x178] sm:$0xf]  ;;  %v7286_v34 = vld [vmem:[#allocation11 + $0x188] sm:$0xf0] }
 0x2a0   :  { %v4161_v7 = vadd.f32 %v4160_v51, %v4148_v29  ;;  %4875 = vmatpush.bf16.msra.mxu1 %v6840_v57  ;;  %v6800_v62 = vor.u32 %v7303_v40, %v6797_v63  ;;  %v6724_v40 = vor.u32 %v7286_v34, %v6723_v1  ;;  %v6703_v63 = vld [vmem:[#allocation11 + $0x150] sm:$0xf] }
 0x2a1   :  { %4853 = vmatpush.bf16.msrb.mxu3 %v6756_v25  ;;  %v7291_v25 = vld [vmem:[#allocation11 + $0x1b0] sm:$0xf0] }
 0x2a2   :  { %v4149_v10 = vpop.f32.mrf.mxu2 }
 0x2a4   :  { %4876 = vmatpush.bf16.msra.mxu1 %v6820_v32 }
 0x2a5   :  { %v4162_v52 = vpop.f32.mrf.mxu3  ;;  %4854 = vmatpush.bf16.msrb.mxu3 %v6736_v2 }
 0x2a8   :  { %v4173_v19 = vpop.f32.mrf.mxu0  ;;  %4877 = vmatpush.bf16.msra.mxu1 %v6800_v62 }
 0x2a9   :  { %v4174_v26 = vadd.f32 %v4173_v19, %v4161_v7  ;;  %4855 = vmatpush.bf16.msrb.mxu3 %v6716_v37  ;;  %v6717_v7 = vld [vmem:[#allocation11 + $0x184] sm:$0xf0] }
 0x2ac   :  { %4878 = vmatpush.bf16.msra.mxu1 %v6780_v53 }
 0x2ad   :  { %4856 = vmatpush.bf16.msrb.mxu3 %v6696_v28 }
 0x2b0   :  { %v4175_v39 = vpop.f32.mrf.mxu0  ;;  %4879 = vmatpush.bf16.msra.mxu1 %v6760_v9  ;;  %v4776_v9 = vperm.slane %v4356_v45, 2 }
 0x2b1   :  { %v7288_v39 = vld [vmem:[#allocation11 + $0x19c] sm:$0xf] }
 0x2b2   :  { %v6740_v29 = vor.u32 %v7288_v39, %v6737_v56 }
 0x2b3   :  { %v4186_v22 = vpop.f32.mrf.mxu1 }
 0x2b4   :  { %v4187_v41 = vadd.f32 %v4186_v22, %v4174_v26  ;;  %4880 = vmatpush.bf16.msra.mxu1 %v6740_v29  ;;  %v6844_v26 = vor.u32 %v7316_v36, %v6843_v35 }
 0x2ba   :  { %v4199_v15 = vpop.f32.mrf.mxu2 }
 0x2bb   :  { %v4188_v13 = vpop.f32.mrf.mxu1  ;;  %v4200_v59 = vadd.f32 %v4199_v15, %v4187_v41  ;;  %v7283_v15 = vld [vmem:[#allocation11 + $0x174] sm:$0xf]  ;;  %v6803_v41 = vld [vmem:[#allocation11 + $0x218] sm:$0xf] }
 0x2bc   :  { %v4212_v18 = vpop.f32.mrf.mxu3  ;;  %v6720_v8 = vor.u32 %v7283_v15, %v6717_v7  ;;  %v6804_v57 = vor.u32 %v7306_v24, %v6803_v41 }
 0x2bd   :  { %v4213_v51 = vadd.f32 %v4212_v18, %v4200_v59  ;;  %v7296_v59 = vld [vmem:[#allocation11 + $0x1d8] sm:$0xf0] }
 0x2be   :  { %4881 = vmatpush.bf16.msra.mxu1 %v6720_v8 }
 0x2c2   :  { %v4201_v42 = vpop.f32.mrf.mxu2  ;;  %4882 = vmatpush.bf16.msra.mxu1 %v6700_v33 }
 0x2c3   :  { %v4238_v12 = vpop.f32.mrf.mxu1  ;;  %v6764_v42 = vor.u32 %v7296_v59, %v6763_v49 }
 0x2c4   :  { %v4214_v6 = vpop.f32.mrf.mxu3 }
 0x2c8   :  { %v4225_v54 = vpop.f32.mrf.mxu0 }
 0x2c9   :  { %v4226_v14 = vadd.f32 %v4225_v54, %v4213_v51  ;;  %v7281_v51 = vld [vmem:[#allocation11 + $0x160] sm:$0xf0] }
 0x2cb   :  { %v4239_v31 = vadd.f32 %v4238_v12, %v4226_v14  ;;  %v4240_v52 = vpop.f32.mrf.mxu1  ;;  %v6743_v12 = vld [vmem:[#allocation11 + $0x1a0] sm:$0xf]  ;;  %v6704_v14 = vor.u32 %v7281_v51, %v6703_v63 }
 0x2cc   :  { %v6744_v32 = vor.u32 %v7291_v25, %v6743_v12  ;;  %v4774_v52 = vperm.slane %v4356_v45, 0 }
 0x2cd   :  { %v4243_v10 = vmax.f32 %v4239_v31, 0.0  ;;  %v4775_v31 = vperm.slane %v4356_v45, 1 }
 0x2cf   :  { %v4250_v19 = vrot.slane %v4243_v10, 4 }
 0x2d0   :  { %v4227_v27 = vpop.f32.mrf.mxu0 }
 0x2d1   :  { %v4251_v38 = vadd.f32 %v4250_v19, %v4243_v10 }
 0x2d3   :  { %v4252_v22 = vrot.slane %v4251_v38, 2 }
 0x2d5   :  { %v4253_v21 = vadd.f32 %v4252_v22, %v4251_v38 }
 0x2d7   :  { %v4254_v18 = vrot.slane %v4253_v21, 1 }
 0x2d9   :  { %v4255_v13 = vadd.f32 %v4254_v18, %v4253_v21  ;;  %v4777_v18 = vperm.slane %v4356_v45, 3 }
 0x2da   :  { %v4793_v5 = vpop.f32.mrf.mxu2 }
 0x2db   :  { %v4257_v48 = vmul.f32 %v4255_v13, %v7932_v11  ;;  %v6784_v11 = vor.u32 %v7301_v17, %v6783_v30  ;;  %v4794_v60 = vadd.f32 %v4793_v5, %v4774_v52  ;;  %v4778_v13 = vperm.slane %v4356_v45, 4 }
 0x2dd   :  { %v4259_v50 = vpack.c.bf16 %v4257_v48, %v4257_v48 }
 0x2df   :  { %4805 = vmatmul.bf16.vlgmr.msra.gmra.mxu3 %v4259_v50  ;;  %4831 = vmatmul.bf16.vlgmr.msrb.gmra.mxu1 %v4259_v50 }
 0x2e0   :  { %4901 = vmatpush.bf16.msra.mxu3 %v6844_v26 }
 0x2e2   :  { %v4795_v20 = vpop.f32.mrf.mxu2 }
 0x2e4   :  { %4902 = vmatpush.bf16.msra.mxu3 %v6824_v0 }
 0x2e8   :  { %v4819_v46 = vpop.f32.mrf.mxu0  ;;  %4903 = vmatpush.bf16.msra.mxu3 %v6804_v57 }
 0x2e9   :  { %v4820_v37 = vadd.f32 %v4819_v46, %v4775_v31 }
 0x2ec   :  { %4904 = vmatpush.bf16.msra.mxu3 %v6784_v11 }
 0x2ef   :  { %4857 = vmatmul.bf16.vlgmr.msrb.gmra.mxu3 %v4259_v50  ;;  %4883 = vmatmul.bf16.vlgmr.msra.gmra.mxu1 %v4259_v50 }
 0x2f0   :  { %v4821_v6 = vpop.f32.mrf.mxu0  ;;  %4905 = vmatpush.bf16.msra.mxu3 %v6764_v42 }
 0x2f4   :  { %4906 = vmatpush.bf16.msra.mxu3 %v6744_v32 }
 0x2f8   :  { %4907 = vmatpush.bf16.msra.mxu3 %v6724_v40 }
 0x2fa   :  { %v4845_v54 = vpop.f32.mrf.mxu2 }
 0x2fb   :  { %v4846_v39 = vadd.f32 %v4845_v54, %v4776_v9 }
 0x2fc   :  { %4908 = vmatpush.bf16.msra.mxu3 %v6704_v14 }
 0x2ff   :  { %4909 = vmatmul.bf16.vlgmr.msra.gmra.mxu3 %v4259_v50 }
 0x302   :  { %v4847_v2 = vpop.f32.mrf.mxu2 }
 0x308   :  { %v4871_v62 = vpop.f32.mrf.mxu0 }
 0x309   :  { %v4872_v5 = vadd.f32 %v4871_v62, %v4777_v18 }
 0x310   :  { %v4873_v58 = vpop.f32.mrf.mxu0 }
 0x31a   :  { %v4897_v47 = vpop.f32.mrf.mxu2 }
 0x31b   :  { %v4898_v35 = vadd.f32 %v4897_v47, %v4778_v13 }
 0x322   :  { %v4899_v4 = vpop.f32.mrf.mxu2 }
 0x35c   :  { %v4832_v10 = vpop.f32.mrf.mxu1 }
 0x35d   :  { %v4833_v53 = vadd.f32 %v4832_v10, %v4820_v37 }
 0x35f   :  { %v4919_v61 = vrot.slane %v4833_v53, 7 }
 0x362   :  { %v4806_v3 = vpop.f32.mrf.mxu3 }
 0x363   :  { %v4807_v43 = vadd.f32 %v4806_v3, %v4794_v60 }
 0x364   :  { %v4834_v19 = vpop.f32.mrf.mxu1 }
 0x365   :  { %v4923_v27 = vsel %vm10187_vm5, %v4807_v43, %v4919_v61 }
 0x36a   :  { %v4808_v38 = vpop.f32.mrf.mxu3 }
 0x36c   :  { %v4884_v28 = vpop.f32.mrf.mxu1 }
 0x36d   :  { %v4885_v36 = vadd.f32 %v4884_v28, %v4872_v5 }
 0x36f   :  { %v4921_v48 = vrot.slane %v4885_v36, 5 }
 0x372   :  { %v4858_v56 = vpop.f32.mrf.mxu3 }
 0x373   :  { %v4859_v22 = vadd.f32 %v4858_v56, %v4846_v39 }
 0x374   :  { %v4886_v21 = vpop.f32.mrf.mxu1 }
 0x375   :  { %v4920_v29 = vrot.slane %v4859_v22, 6 }
 0x377   :  { %v4924_v15 = vsel %vm10158_vm6, %v4923_v27, %v4920_v29 }
 0x37a   :  { %v4860_v7 = vpop.f32.mrf.mxu3 }
 0x382   :  { %v4910_v8 = vpop.f32.mrf.mxu3 }
 0x383   :  { %v4911_v23 = vadd.f32 %v4910_v8, %v4898_v35 }
 0x385   :  { %v4922_v26 = vrot.slane %v4911_v23, 4 }
 0x387   :  { %v4926_v50 = vsel %vm4925_vm4, %v4921_v48, %v4922_v26 }
 0x388   :  { %v4928_v16 = vsel %vm4927_vm7, %v4924_v15, %v4926_v50 }
 0x389   :  { %4934 = vst.msk [vmem:[#allocation14] sm:$0x1f] %vm4932_vm8, %v4928_v16 }
 0x38a   :  { %v4912_v44 = vpop.f32.mrf.mxu3  ;;  %4945 = dma.vmem_to_hbm [thread:$0]  %s4941_s6, 80, %s4943_s14, [#allocation4]  }
 0x38b   :  { %7596 = dma.done.wait [#allocation4], 80  }
 0x38c   :  { %7597 = vsyncadd [#allocation4], 4294967216 }
 0x38d   :  { %4950 = vsyncpa [#allocation3], 1 }
 0x38e   :  { %4951 = vsyncpa [#allocation6], 1 }
 0x38f   :  { %4952 = vsyncpa [#allocation9], 1 }
 0x390   :  { %4953 = vsyncpa [#allocation12], 1 }
 0x391   :  { %4954 = vsyncpa [#allocation4], 1 }

</bundles_post_ra>
